<compile_context>
chip_gen: v5e
topology: v5e:2x2
jax: 0.10.0
libtpu: 0.0.40
codegen_flags: <defaults>
</compile_context>

<pallas_src>
import functools

import jax
import jax.numpy as jnp
from jax import lax
from jax.experimental import pallas as pl
from jax.experimental.pallas import tpu as pltpu

EPS = 1e-5
B_BLK = 8            # batch rows per grid step (f32 sublane count)


def _round_up(n, m):
    return -(-n // m) * m


def _shift_rows(max_k):
    # Extra conv1 rows so conv2's shifted reads stay in range, and extra zeroed
    # embedding rows so conv1's shifted reads do (both rounded to sublanes).
    r1_extra = _round_up(max_k - 1, 8)
    emb_extra = _round_up(r1_extra + max_k - 1, 8)
    return r1_extra, emb_extra


# ----------------------------------------------------------------------------
# Fused kernel: embedding gather + all branches + head.
# ----------------------------------------------------------------------------
def _fused_kernel(n_kernels, L, *refs):
    num_seq = len(n_kernels)
    max_k = max(n_kernels)
    nb = 4 * num_seq
    inp_ref, tok_ref = refs[0], refs[1]                 # SMEM tokens, HBM table
    branch_refs = refs[2:2 + nb]                        # per branch: w1, b1, w2, b2
    (wh1_ref, bh1_ref, wb_ref, bb_ref,
     wf1_ref, bf1_ref, wf2_ref, bf2_ref) = refs[2 + nb:10 + nb]
    out_ref = refs[10 + nb]                             # (B_BLK, OUT_pad) f32
    emb_ref = refs[11 + nb]                             # VMEM scratch (R_emb, E) f32
    sem = refs[12 + nb]                                 # DMA semaphore

    R = B_BLK * L                                       # real token rows in this block
    r1_extra, _ = _shift_rows(max_k)
    R1 = R + r1_extra                                   # conv1 rows (covers conv2 shifts)
    R_emb, E = emb_ref.shape
    b0 = pl.program_id(0) * B_BLK                       # first batch row of this block

    # ---- fused embedding gather: one small row DMA per token ---------------
    def row_copy(b, t):                                 # b static, t dynamic
        tok = inp_ref[b0 + b, t]
        return pltpu.make_async_copy(tok_ref.at[tok], emb_ref.at[b * L + t],
                                     sem.at[0])

    if R_emb > R:                                       # zero the shift-padding tail
        emb_ref[pl.ds(R, R_emb - R), :] = jnp.zeros((R_emb - R, E), jnp.float32)

    for b in range(B_BLK):                              # issue all DMAs (kept in flight)
        def _issue(t, carry, b=b):
            row_copy(b, t).start()
            return carry
        lax.fori_loop(0, L, _issue, 0)
    for b in range(B_BLK):                              # then wait for all of them
        def _wait(t, carry, b=b):
            row_copy(b, t).wait()
            return carry
        lax.fori_loop(0, L, _wait, 0)

    x = emb_ref[...].astype(jnp.bfloat16)               # hoisted bf16 cast, (R_emb, E)

    def tap_matmul(src, w_ref, k, rows):                # per-tap conv == shifted matmuls
        acc = jnp.dot(src[0:rows, :], w_ref[0], preferred_element_type=jnp.float32)
        for dk in range(1, k):
            acc = acc + jnp.dot(src[dk:dk + rows, :], w_ref[dk],
                                preferred_element_type=jnp.float32)
        return acc

    # ---- question_conv branches (BN folded; rows = flattened batch*position) ----
    feats = []
    for i, k in enumerate(n_kernels):
        w1_ref, b1_ref = branch_refs[4 * i], branch_refs[4 * i + 1]
        w2_ref, b2_ref = branch_refs[4 * i + 2], branch_refs[4 * i + 3]
        L2 = L - 2 * k + 2                              # conv2 length == MaxPool window

        # conv1 -> BN(folded) -> ReLU.  Positions past each sequence's valid
        # range hold finite garbage that is never pooled.
        h1 = jnp.maximum(tap_matmul(x, w1_ref, k, R1) + b1_ref[...],
                         0.0).astype(jnp.bfloat16)      # (R1, F_pad)

        # conv2 -> BN(folded) -> ReLU.  Padded channels of h1 are exactly zero
        # (zero bias padding + ReLU), so the K=F_pad contraction is exact.
        h2 = jnp.maximum(tap_matmul(h1, w2_ref, k, R) + b2_ref[...], 0.0)

        # MaxPool1d(kernel_size = L - 2k + 2): max over the valid positions of
        # each sequence -> one (F_pad,) vector per batch row.
        per_row = [jnp.max(h2[b * L:b * L + L2, :], axis=0, keepdims=True)
                   for b in range(B_BLK)]
        feats.append(jnp.concatenate(per_row, axis=0).astype(jnp.bfloat16))

    fb = jnp.concatenate(feats, axis=-1)                # (B_BLK, num_seq*F_pad) bf16
    M_pad = wb_ref.shape[0]

    # ---- head: spatial length is 1, everything is a matmul -----------------
    # change_dim_conv and conv3x3 #1 share the LHS -> one fused N=2*M_pad matmul.
    y = jnp.dot(fb, wh1_ref[...], preferred_element_type=jnp.float32) + bh1_ref[...]
    xp = y[:, :M_pad]                                   # change_dim_conv output
    h = jnp.maximum(y[:, M_pad:], 0.0)                  # conv3x3 #1 (+BN), ReLU
    h = jnp.dot(h.astype(jnp.bfloat16), wb_ref[...],
                preferred_element_type=jnp.float32) + bb_ref[...]
    h = jnp.maximum(h, 0.0) + xp                        # conv3x3 #2 (+BN), ReLU, residual
    # `while x.size(2) > 2:` never executes -- the spatial length is already 1.

    h = jnp.dot(h.astype(jnp.bfloat16), wf1_ref[...],
                preferred_element_type=jnp.float32) + bf1_ref[...]
    h = jnp.maximum(h, 0.0)
    # TODO(synk): Dropout(0.5) is identity in eval mode; train-mode masking not implemented.
    out_ref[...] = (jnp.dot(h.astype(jnp.bfloat16), wf2_ref[...],
                            preferred_element_type=jnp.float32) + bf2_ref[...])


# ----------------------------------------------------------------------------
# Wrapper
# ----------------------------------------------------------------------------
def textcnn_deep_forward(inp, token_embeddings, prepared, n_kernels, output_size):
    B, L = inp.shape
    E = token_embeddings.shape[1]
    max_k = max(n_kernels)
    OUT_pad = prepared['OUT_pad']

    B_pad = _round_up(max(B, B_BLK), B_BLK)
    inp_p = jnp.pad(inp.astype(jnp.int32), ((0, B_pad - B), (0, 0)))  # pad token id 0
    tok = token_embeddings.astype(jnp.float32)                        # stays in HBM

    wargs = []
    for bp in prepared['branches']:
        wargs += [bp['w1'], bp['b1'], bp['w2'], bp['b2']]
    hd = prepared['head']
    wargs += [hd['wh1'], hd['bh1'], hd['wb'], hd['bb'],
              hd['wf1'], hd['bf1'], hd['wf2'], hd['bf2']]

    _, emb_extra = _shift_rows(max_k)
    R_emb = B_BLK * L + emb_extra

    def _resident(a):     # full-array block, constant index_map -> stays in VMEM
        zeros = (0,) * a.ndim
        return pl.BlockSpec(a.shape, lambda i, inp_smem: zeros)

    grid_spec = pltpu.PrefetchScalarGridSpec(
        num_scalar_prefetch=1,                          # `inp` lands in SMEM
        grid=(B_pad // B_BLK,),
        in_specs=[pl.BlockSpec(memory_space=pl.ANY)]    # embedding table (HBM)
                 + [_resident(a) for a in wargs],
        out_specs=pl.BlockSpec((B_BLK, OUT_pad), lambda i, inp_smem: (i, 0)),
        scratch_shapes=[pltpu.VMEM((R_emb, E), jnp.float32),
                        pltpu.SemaphoreType.DMA((1,))],
    )
    out_pad = pl.pallas_call(
        functools.partial(_fused_kernel, tuple(n_kernels), L),
        out_shape=jax.ShapeDtypeStruct((B_pad, OUT_pad), jnp.float32),
        grid_spec=grid_spec,
        compiler_params=pltpu.CompilerParams(
            dimension_semantics=("parallel",),          # megacore split over batch blocks
            vmem_limit_bytes=32 * 1024 * 1024),         # ~1 MB live; fits v7x's 64 MiB
    )(inp_p, tok, *wargs)
    return out_pad[:B, :output_size]


# ----------------------------------------------------------------------------
# Raw (torch-layout) parameters + BN-folding / padding preparation
# ----------------------------------------------------------------------------
def make_raw_params(key, n_emb, n_filter, n_kernels, n_feature_map, output_size):
    def nrm(k, shape, scale):
        return jax.random.normal(k, shape, jnp.float32) * scale

    def bn(k, c):
        k1, k2 = jax.random.split(k)
        return dict(gamma=1.0 + nrm(k1, (c,), 0.1), beta=nrm(k2, (c,), 0.1),
                    mean=jnp.zeros((c,), jnp.float32), var=jnp.ones((c,), jnp.float32))

    keys = jax.random.split(key, len(n_kernels) + 1)
    branches = []
    for i, ksz in enumerate(n_kernels):
        bk = jax.random.split(keys[i], 6)
        branches.append(dict(
            w1=nrm(bk[0], (n_filter, n_emb, ksz), (n_emb * ksz) ** -0.5),
            b1=nrm(bk[1], (n_filter,), 0.01),
            bn1=bn(bk[2], n_filter),
            w2=nrm(bk[3], (n_filter, n_filter, ksz), (n_filter * ksz) ** -0.5),
            b2=nrm(bk[4], (n_filter,), 0.01),
            bn2=bn(bk[5], n_filter)))

    C = n_filter * len(n_kernels)
    hk = jax.random.split(keys[-1], 10)
    head = dict(
        wcd=nrm(hk[0], (n_feature_map, C, 1), C ** -0.5),
        bcd=nrm(hk[1], (n_feature_map,), 0.01),
        wa=nrm(hk[2], (n_feature_map, C, 3), (3 * C) ** -0.5),
        wb=nrm(hk[3], (n_feature_map, n_feature_map, 3), (3 * n_feature_map) ** -0.5),
        bn_std=bn(hk[4], n_feature_map),                 # shared standard_batchnm
        wf1=nrm(hk[5], (output_size, n_feature_map), n_feature_map ** -0.5),
        bf1=nrm(hk[6], (output_size,), 0.01),
        bn_fc=bn(hk[7], output_size),
        wf2=nrm(hk[8], (output_size, output_size), output_size ** -0.5),
        bf2=nrm(hk[9], (output_size,), 0.01))
    return dict(branches=branches, head=head)


def prepare_params(raw, n_kernels, n_filter, n_emb, n_feature_map, output_size):
    num_seq = len(n_kernels)
    F = n_filter
    F_pad = _round_up(max(F, 128), 128)                  # 16  -> 128
    M_pad = _round_up(n_feature_map, 128)                # 250 -> 256
    OUT_pad = _round_up(max(output_size, 128), 128)      # 8   -> 128

    def fold(w_oik, b_o, bnp):      # eval-mode BN fold into conv weight/bias
        s = bnp['gamma'] * lax.rsqrt(bnp['var'] + EPS)
        return w_oik * s[:, None, None], (b_o - bnp['mean']) * s + bnp['beta']

    def pad_bias(b, n):
        # NOTE: padding MUST be exactly zero -- padded channels rely on
        # relu(0) == 0 so they can never win the length-wise max pool.
        return jnp.pad(b, (0, n - b.shape[0])).reshape(1, n).astype(jnp.float32)

    def pad_mat(w, rows, cols):
        return jnp.pad(w, ((0, rows - w.shape[0]), (0, cols - w.shape[1])))

    branches = []
    for i, k in enumerate(n_kernels):
        bp = raw['branches'][i]
        w1, b1 = fold(bp['w1'], bp['b1'], bp['bn1'])     # (F, E, k), (F,)
        w2, b2 = fold(bp['w2'], bp['b2'], bp['bn2'])     # (F, F, k), (F,)
        w1t = jnp.pad(jnp.transpose(w1, (2, 1, 0)),      # (k, E, F) -> (k, E, F_pad)
                      ((0, 0), (0, 0), (0, F_pad - F)))
        w2t = jnp.pad(jnp.transpose(w2, (2, 1, 0)),      # (k, F, F) -> (k, F_pad, F_pad)
                      ((0, 0), (0, F_pad - F), (0, F_pad - F)))
        branches.append(dict(w1=w1t.astype(jnp.bfloat16), b1=pad_bias(b1, F_pad),
                             w2=w2t.astype(jnp.bfloat16), b2=pad_bias(b2, F_pad)))

    hd = raw['head']

    def pad_head_in(w_co, out_pad):
        # (num_seq*F, out) -> (num_seq*F_pad, out_pad): branch i channel j lands
        # at padded row i*F_pad + j (matches the in-kernel feature concat layout).
        out = w_co.shape[1]
        w3 = w_co.reshape(num_seq, F, out)
        w3 = jnp.pad(w3, ((0, 0), (0, F_pad - F), (0, out_pad - out)))
        return w3.reshape(num_seq * F_pad, out_pad)

    s_std = hd['bn_std']['gamma'] * lax.rsqrt(hd['bn_std']['var'] + EPS)
    wcd = jnp.transpose(hd['wcd'][:, :, 0])                      # (C, M), bias, no BN
    wa = jnp.transpose(hd['wa'][:, :, 1] * s_std[:, None])       # middle tap, BN folded
    ba = hd['bn_std']['beta'] - hd['bn_std']['mean'] * s_std
    wb = jnp.transpose(hd['wb'][:, :, 1] * s_std[:, None])       # (M, M), shared BN
    bb = ba
    s_fc = hd['bn_fc']['gamma'] * lax.rsqrt(hd['bn_fc']['var'] + EPS)
    wf1 = jnp.transpose(hd['wf1'] * s_fc[:, None])               # (M, out), BN folded
    bf1 = (hd['bf1'] - hd['bn_fc']['mean']) * s_fc + hd['bn_fc']['beta']
    wf2 = jnp.transpose(hd['wf2'])                               # (out, out)

    # Fuse change_dim_conv and conv3x3 #1 (same LHS) into one N = 2*M_pad matmul.
    wh1 = jnp.concatenate([pad_head_in(wcd, M_pad), pad_head_in(wa, M_pad)], axis=1)
    bh1 = jnp.concatenate([pad_bias(hd['bcd'], M_pad), pad_bias(ba, M_pad)], axis=1)

    head = dict(
        wh1=wh1.astype(jnp.bfloat16), bh1=bh1,
        wb=pad_mat(wb, M_pad, M_pad).astype(jnp.bfloat16), bb=pad_bias(bb, M_pad),
        wf1=pad_mat(wf1, M_pad, OUT_pad).astype(jnp.bfloat16), bf1=pad_bias(bf1, OUT_pad),
        wf2=pad_mat(wf2, OUT_pad, OUT_pad).astype(jnp.bfloat16), bf2=pad_bias(hd['bf2'], OUT_pad))

    return dict(branches=branches, head=head, F_pad=F_pad, OUT_pad=OUT_pad, M_pad=M_pad)


# ----------------------------------------------------------------------------
# Pure-JAX f32 eval-mode reference (validation only)
# ----------------------------------------------------------------------------
def _reference_forward(inp, token_embeddings, raw, n_kernels):
    def bn_c(v, p):                                     # (B, C, L) BatchNorm1d, eval
        s = p['gamma'] * lax.rsqrt(p['var'] + EPS)
        return v * s[None, :, None] + (p['beta'] - p['mean'] * s)[None, :, None]

    def conv1d(v, w, b=None, pad='VALID'):              # v (B, Cin, L), w (Cout, Cin, k)
        out = lax.conv_general_dilated(v, w, (1,), pad,
                                       dimension_numbers=('NCH', 'OIH', 'NCH'))
        return out if b is None else out + b[None, :, None]

    emb = jnp.take(token_embeddings, inp, axis=0)       # (B, L, E)
    x = jnp.transpose(emb, (0, 2, 1))                   # (B, E, L)

    feats = []
    for i, _k in enumerate(n_kernels):
        bp = raw['branches'][i]
        h = jax.nn.relu(bn_c(conv1d(x, bp['w1'], bp['b1']), bp['bn1']))
        h = jax.nn.relu(bn_c(conv1d(h, bp['w2'], bp['b2']), bp['bn2']))
        feats.append(jnp.max(h, axis=2))                # MaxPool over whole length
    f = jnp.concatenate(feats, axis=1)[:, :, None]      # (B, C, 1)

    hd = raw['head']
    xp = conv1d(f, hd['wcd'], hd['bcd'])
    h = jax.nn.relu(bn_c(conv1d(f, hd['wa'], pad=[(1, 1)]), hd['bn_std']))
    h = jax.nn.relu(bn_c(conv1d(h, hd['wb'], pad=[(1, 1)]), hd['bn_std']))
    h = (h + xp)[:, :, 0]                               # residual; spatial length 1

    s_fc = hd['bn_fc']['gamma'] * lax.rsqrt(hd['bn_fc']['var'] + EPS)
    h = h @ hd['wf1'].T + hd['bf1']
    h = jax.nn.relu((h - hd['bn_fc']['mean']) * s_fc + hd['bn_fc']['beta'])
    return h @ hd['wf2'].T + hd['bf2']


if __name__ == "__main__":
    # Small, forward-consistent config.
    B, MAX_LEN = 2, 16
    N_DICT, N_EMB = 50, 32
    N_KERNELS = (2, 3)
    N_FILTER = 16
    N_FEATURE_MAP = 250              # hardcoded in the module
    OUTPUT_SIZE = 8

    root = jax.random.PRNGKey(0)
    k_emb, k_inp, k_par = jax.random.split(root, 3)

    # token_embeddings (n_dict, n_emb); padding_idx=0 row is zero.
    token_embeddings = jax.random.normal(k_emb, (N_DICT, N_EMB), jnp.float32)
    token_embeddings = token_embeddings.at[0].set(0.0)

    # forward(inp, x_pre, x_alt, x_cur, seq_lens): only `inp` reaches the math.
    inp = jax.random.randint(k_inp, (B, MAX_LEN), 0, N_DICT, dtype=jnp.int32)

    raw = make_raw_params(k_par, N_EMB, N_FILTER, N_KERNELS, N_FEATURE_MAP, OUTPUT_SIZE)
    prepared = prepare_params(raw, N_KERNELS, N_FILTER, N_EMB, N_FEATURE_MAP, OUTPUT_SIZE)

    out = textcnn_deep_forward(inp, token_embeddings, prepared, N_KERNELS, OUTPUT_SIZE)
    out = jax.block_until_ready(out)

    ref = _reference_forward(inp, token_embeddings, raw, N_KERNELS)
    assert out.shape == (B, OUTPUT_SIZE)
    assert bool(jnp.all(jnp.isfinite(out)))
    assert bool(jnp.allclose(out, ref, rtol=1e-1, atol=1e-1)), \
        float(jnp.max(jnp.abs(out - ref)))
    print("KERNEL_OK")
</pallas_src>

<mosaic_0001>
module attributes {stable_mosaic.version = 11 : i64} {
  func.func @_fused_kernel(%arg0: i32, %arg1: memref<8x16xi32, #tpu.memory_space<smem>>, %arg2: memref<50x32xf32, #tpu.memory_space<any>>, %arg3: memref<2x32x128xbf16, #tpu.memory_space<vmem>>, %arg4: memref<1x128xf32, #tpu.memory_space<vmem>>, %arg5: memref<2x128x128xbf16, #tpu.memory_space<vmem>>, %arg6: memref<1x128xf32, #tpu.memory_space<vmem>>, %arg7: memref<3x32x128xbf16, #tpu.memory_space<vmem>>, %arg8: memref<1x128xf32, #tpu.memory_space<vmem>>, %arg9: memref<3x128x128xbf16, #tpu.memory_space<vmem>>, %arg10: memref<1x128xf32, #tpu.memory_space<vmem>>, %arg11: memref<256x512xbf16, #tpu.memory_space<vmem>>, %arg12: memref<1x512xf32, #tpu.memory_space<vmem>>, %arg13: memref<256x256xbf16, #tpu.memory_space<vmem>>, %arg14: memref<1x256xf32, #tpu.memory_space<vmem>>, %arg15: memref<256x128xbf16, #tpu.memory_space<vmem>>, %arg16: memref<1x128xf32, #tpu.memory_space<vmem>>, %arg17: memref<128x128xbf16, #tpu.memory_space<vmem>>, %arg18: memref<1x128xf32, #tpu.memory_space<vmem>>, %arg19: memref<8x128xf32, #tpu.memory_space<vmem>>, %arg20: memref<144x32xf32, #tpu.memory_space<vmem>>, %arg21: memref<1x!tpu.dma_semaphore, #tpu.memory_space<semaphore_mem>>) attributes {dimension_semantics = [#tpu.dimension_semantics<parallel>], iteration_bounds = array<i64: 1>, scalar_prefetch = 1 : i64, scratch_operands = 2 : i64, tpu.core_type = #tpu.core_type<tc>, window_params = [{}, {pipeline_mode = #tpu.pipeline_mode<synchronous>, transform_indices = @transform_1, window_bounds = array<i64: 2, 32, 128>}, {pipeline_mode = #tpu.pipeline_mode<synchronous>, transform_indices = @transform_2, window_bounds = array<i64: 1, 128>}, {pipeline_mode = #tpu.pipeline_mode<synchronous>, transform_indices = @transform_3, window_bounds = array<i64: 2, 128, 128>}, {pipeline_mode = #tpu.pipeline_mode<synchronous>, transform_indices = @transform_4, window_bounds = array<i64: 1, 128>}, {pipeline_mode = #tpu.pipeline_mode<synchronous>, transform_indices = @transform_5, window_bounds = array<i64: 3, 32, 128>}, {pipeline_mode = #tpu.pipeline_mode<synchronous>, transform_indices = @transform_6, window_bounds = array<i64: 1, 128>}, {pipeline_mode = #tpu.pipeline_mode<synchronous>, transform_indices = @transform_7, window_bounds = array<i64: 3, 128, 128>}, {pipeline_mode = #tpu.pipeline_mode<synchronous>, transform_indices = @transform_8, window_bounds = array<i64: 1, 128>}, {pipeline_mode = #tpu.pipeline_mode<synchronous>, transform_indices = @transform_9, window_bounds = array<i64: 256, 512>}, {pipeline_mode = #tpu.pipeline_mode<synchronous>, transform_indices = @transform_10, window_bounds = array<i64: 1, 512>}, {pipeline_mode = #tpu.pipeline_mode<synchronous>, transform_indices = @transform_11, window_bounds = array<i64: 256, 256>}, {pipeline_mode = #tpu.pipeline_mode<synchronous>, transform_indices = @transform_12, window_bounds = array<i64: 1, 256>}, {pipeline_mode = #tpu.pipeline_mode<synchronous>, transform_indices = @transform_13, window_bounds = array<i64: 256, 128>}, {pipeline_mode = #tpu.pipeline_mode<synchronous>, transform_indices = @transform_14, window_bounds = array<i64: 1, 128>}, {pipeline_mode = #tpu.pipeline_mode<synchronous>, transform_indices = @transform_15, window_bounds = array<i64: 128, 128>}, {pipeline_mode = #tpu.pipeline_mode<synchronous>, transform_indices = @transform_16, window_bounds = array<i64: 1, 128>}, {transform_indices = @transform_17, window_bounds = array<i64: 8, 128>}]} {
    %c8_i32 = arith.constant 8 : i32
    %0 = arith.muli %arg0, %c8_i32 : i32
    %cst = arith.constant 0.000000e+00 : f32
    %1 = vector.broadcast %cst : f32 to vector<16x32xf32>
    %c128 = arith.constant 128 : index
    %c0 = arith.constant 0 : index
    %2 = vector.load %arg20[%c128, %c0] : memref<144x32xf32, #tpu.memory_space<vmem>>, vector<16x32xf32>
    tpu.vector_store %arg20[%c128, %c0], %1 {strides = array<i32>} : memref<144x32xf32, #tpu.memory_space<vmem>>, vector<16x32xf32>,
    %c0_i32 = arith.constant 0 : i32
    %c16_i32 = arith.constant 16 : i32
    %3 = arith.addi %c0_i32, %c16_i32 : i32
    %c1_i32 = arith.constant 1 : i32
    scf.for %arg22 = %c0_i32 to %3 step %c1_i32  : i32 {
      %c0_i32_154 = arith.constant 0 : i32
      %175 = arith.addi %0, %c0_i32_154 : i32
      %176 = arith.index_cast %175 : i32 to index
      %177 = arith.index_cast %arg22 : i32 to index
      %178 = memref.load %arg1[%176, %177] : memref<8x16xi32, #tpu.memory_space<smem>>
      %c0_i32_155 = arith.constant 0 : i32
      %179 = arith.addi %c0_i32_155, %arg22 : i32
      %c0_i32_156 = arith.constant 0 : i32
      %c0_i32_157 = arith.constant 0 : i32
      %180 = tpu.memref_slice %arg2[%178, %c0_i32_157] : memref<50x32xf32, #tpu.memory_space<any>> -> memref<1x32xf32, #tpu.memory_space<any>>
      %181 = tpu.memref_squeeze %180 : memref<1x32xf32, #tpu.memory_space<any>> -> memref<32xf32, #tpu.memory_space<any>>
      %c0_i32_158 = arith.constant 0 : i32
      %182 = tpu.memref_slice %arg20[%179, %c0_i32_158] : memref<144x32xf32, #tpu.memory_space<vmem>> -> memref<1x32xf32, #tpu.memory_space<vmem>>
      %183 = tpu.memref_squeeze %182 : memref<1x32xf32, #tpu.memory_space<vmem>> -> memref<32xf32, #tpu.memory_space<vmem>>
      %184 = tpu.memref_slice %arg21[%c0_i32_156] : memref<1x!tpu.dma_semaphore, #tpu.memory_space<semaphore_mem>> -> memref<1x!tpu.dma_semaphore, #tpu.memory_space<semaphore_mem>>
      %185 = tpu.memref_squeeze %184 : memref<1x!tpu.dma_semaphore, #tpu.memory_space<semaphore_mem>> -> memref<!tpu.dma_semaphore, #tpu.memory_space<semaphore_mem>>
      tpu.enqueue_dma source(%181 : memref<32xf32, #tpu.memory_space<any>>) target(%183 : memref<32xf32, #tpu.memory_space<vmem>>) target_semaphore(%185 : memref<!tpu.dma_semaphore, #tpu.memory_space<semaphore_mem>>)
    }
    %c16_i32_0 = arith.constant 16 : i32
    %c0_i32_1 = arith.constant 0 : i32
    %c16_i32_2 = arith.constant 16 : i32
    %4 = arith.addi %c0_i32_1, %c16_i32_2 : i32
    %c1_i32_3 = arith.constant 1 : i32
    scf.for %arg22 = %c0_i32_1 to %4 step %c1_i32_3  : i32 {
      %c1_i32_154 = arith.constant 1 : i32
      %175 = arith.addi %0, %c1_i32_154 : i32
      %176 = arith.index_cast %175 : i32 to index
      %177 = arith.index_cast %arg22 : i32 to index
      %178 = memref.load %arg1[%176, %177] : memref<8x16xi32, #tpu.memory_space<smem>>
      %c16_i32_155 = arith.constant 16 : i32
      %179 = arith.addi %c16_i32_155, %arg22 : i32
      %c0_i32_156 = arith.constant 0 : i32
      %c0_i32_157 = arith.constant 0 : i32
      %180 = tpu.memref_slice %arg2[%178, %c0_i32_157] : memref<50x32xf32, #tpu.memory_space<any>> -> memref<1x32xf32, #tpu.memory_space<any>>
      %181 = tpu.memref_squeeze %180 : memref<1x32xf32, #tpu.memory_space<any>> -> memref<32xf32, #tpu.memory_space<any>>
      %c0_i32_158 = arith.constant 0 : i32
      %182 = tpu.memref_slice %arg20[%179, %c0_i32_158] : memref<144x32xf32, #tpu.memory_space<vmem>> -> memref<1x32xf32, #tpu.memory_space<vmem>>
      %183 = tpu.memref_squeeze %182 : memref<1x32xf32, #tpu.memory_space<vmem>> -> memref<32xf32, #tpu.memory_space<vmem>>
      %184 = tpu.memref_slice %arg21[%c0_i32_156] : memref<1x!tpu.dma_semaphore, #tpu.memory_space<semaphore_mem>> -> memref<1x!tpu.dma_semaphore, #tpu.memory_space<semaphore_mem>>
      %185 = tpu.memref_squeeze %184 : memref<1x!tpu.dma_semaphore, #tpu.memory_space<semaphore_mem>> -> memref<!tpu.dma_semaphore, #tpu.memory_space<semaphore_mem>>
      tpu.enqueue_dma source(%181 : memref<32xf32, #tpu.memory_space<any>>) target(%183 : memref<32xf32, #tpu.memory_space<vmem>>) target_semaphore(%185 : memref<!tpu.dma_semaphore, #tpu.memory_space<semaphore_mem>>)
    }
    %c16_i32_4 = arith.constant 16 : i32
    %c0_i32_5 = arith.constant 0 : i32
    %c16_i32_6 = arith.constant 16 : i32
    %5 = arith.addi %c0_i32_5, %c16_i32_6 : i32
    %c1_i32_7 = arith.constant 1 : i32
    scf.for %arg22 = %c0_i32_5 to %5 step %c1_i32_7  : i32 {
      %c2_i32 = arith.constant 2 : i32
      %175 = arith.addi %0, %c2_i32 : i32
      %176 = arith.index_cast %175 : i32 to index
      %177 = arith.index_cast %arg22 : i32 to index
      %178 = memref.load %arg1[%176, %177] : memref<8x16xi32, #tpu.memory_space<smem>>
      %c32_i32 = arith.constant 32 : i32
      %179 = arith.addi %c32_i32, %arg22 : i32
      %c0_i32_154 = arith.constant 0 : i32
      %c0_i32_155 = arith.constant 0 : i32
      %180 = tpu.memref_slice %arg2[%178, %c0_i32_155] : memref<50x32xf32, #tpu.memory_space<any>> -> memref<1x32xf32, #tpu.memory_space<any>>
      %181 = tpu.memref_squeeze %180 : memref<1x32xf32, #tpu.memory_space<any>> -> memref<32xf32, #tpu.memory_space<any>>
      %c0_i32_156 = arith.constant 0 : i32
      %182 = tpu.memref_slice %arg20[%179, %c0_i32_156] : memref<144x32xf32, #tpu.memory_space<vmem>> -> memref<1x32xf32, #tpu.memory_space<vmem>>
      %183 = tpu.memref_squeeze %182 : memref<1x32xf32, #tpu.memory_space<vmem>> -> memref<32xf32, #tpu.memory_space<vmem>>
      %184 = tpu.memref_slice %arg21[%c0_i32_154] : memref<1x!tpu.dma_semaphore, #tpu.memory_space<semaphore_mem>> -> memref<1x!tpu.dma_semaphore, #tpu.memory_space<semaphore_mem>>
      %185 = tpu.memref_squeeze %184 : memref<1x!tpu.dma_semaphore, #tpu.memory_space<semaphore_mem>> -> memref<!tpu.dma_semaphore, #tpu.memory_space<semaphore_mem>>
      tpu.enqueue_dma source(%181 : memref<32xf32, #tpu.memory_space<any>>) target(%183 : memref<32xf32, #tpu.memory_space<vmem>>) target_semaphore(%185 : memref<!tpu.dma_semaphore, #tpu.memory_space<semaphore_mem>>)
    }
    %c16_i32_8 = arith.constant 16 : i32
    %c0_i32_9 = arith.constant 0 : i32
    %c16_i32_10 = arith.constant 16 : i32
    %6 = arith.addi %c0_i32_9, %c16_i32_10 : i32
    %c1_i32_11 = arith.constant 1 : i32
    scf.for %arg22 = %c0_i32_9 to %6 step %c1_i32_11  : i32 {
      %c3_i32 = arith.constant 3 : i32
      %175 = arith.addi %0, %c3_i32 : i32
      %176 = arith.index_cast %175 : i32 to index
      %177 = arith.index_cast %arg22 : i32 to index
      %178 = memref.load %arg1[%176, %177] : memref<8x16xi32, #tpu.memory_space<smem>>
      %c48_i32 = arith.constant 48 : i32
      %179 = arith.addi %c48_i32, %arg22 : i32
      %c0_i32_154 = arith.constant 0 : i32
      %c0_i32_155 = arith.constant 0 : i32
      %180 = tpu.memref_slice %arg2[%178, %c0_i32_155] : memref<50x32xf32, #tpu.memory_space<any>> -> memref<1x32xf32, #tpu.memory_space<any>>
      %181 = tpu.memref_squeeze %180 : memref<1x32xf32, #tpu.memory_space<any>> -> memref<32xf32, #tpu.memory_space<any>>
      %c0_i32_156 = arith.constant 0 : i32
      %182 = tpu.memref_slice %arg20[%179, %c0_i32_156] : memref<144x32xf32, #tpu.memory_space<vmem>> -> memref<1x32xf32, #tpu.memory_space<vmem>>
      %183 = tpu.memref_squeeze %182 : memref<1x32xf32, #tpu.memory_space<vmem>> -> memref<32xf32, #tpu.memory_space<vmem>>
      %184 = tpu.memref_slice %arg21[%c0_i32_154] : memref<1x!tpu.dma_semaphore, #tpu.memory_space<semaphore_mem>> -> memref<1x!tpu.dma_semaphore, #tpu.memory_space<semaphore_mem>>
      %185 = tpu.memref_squeeze %184 : memref<1x!tpu.dma_semaphore, #tpu.memory_space<semaphore_mem>> -> memref<!tpu.dma_semaphore, #tpu.memory_space<semaphore_mem>>
      tpu.enqueue_dma source(%181 : memref<32xf32, #tpu.memory_space<any>>) target(%183 : memref<32xf32, #tpu.memory_space<vmem>>) target_semaphore(%185 : memref<!tpu.dma_semaphore, #tpu.memory_space<semaphore_mem>>)
    }
    %c16_i32_12 = arith.constant 16 : i32
    %c0_i32_13 = arith.constant 0 : i32
    %c16_i32_14 = arith.constant 16 : i32
    %7 = arith.addi %c0_i32_13, %c16_i32_14 : i32
    %c1_i32_15 = arith.constant 1 : i32
    scf.for %arg22 = %c0_i32_13 to %7 step %c1_i32_15  : i32 {
      %c4_i32 = arith.constant 4 : i32
      %175 = arith.addi %0, %c4_i32 : i32
      %176 = arith.index_cast %175 : i32 to index
      %177 = arith.index_cast %arg22 : i32 to index
      %178 = memref.load %arg1[%176, %177] : memref<8x16xi32, #tpu.memory_space<smem>>
      %c64_i32 = arith.constant 64 : i32
      %179 = arith.addi %c64_i32, %arg22 : i32
      %c0_i32_154 = arith.constant 0 : i32
      %c0_i32_155 = arith.constant 0 : i32
      %180 = tpu.memref_slice %arg2[%178, %c0_i32_155] : memref<50x32xf32, #tpu.memory_space<any>> -> memref<1x32xf32, #tpu.memory_space<any>>
      %181 = tpu.memref_squeeze %180 : memref<1x32xf32, #tpu.memory_space<any>> -> memref<32xf32, #tpu.memory_space<any>>
      %c0_i32_156 = arith.constant 0 : i32
      %182 = tpu.memref_slice %arg20[%179, %c0_i32_156] : memref<144x32xf32, #tpu.memory_space<vmem>> -> memref<1x32xf32, #tpu.memory_space<vmem>>
      %183 = tpu.memref_squeeze %182 : memref<1x32xf32, #tpu.memory_space<vmem>> -> memref<32xf32, #tpu.memory_space<vmem>>
      %184 = tpu.memref_slice %arg21[%c0_i32_154] : memref<1x!tpu.dma_semaphore, #tpu.memory_space<semaphore_mem>> -> memref<1x!tpu.dma_semaphore, #tpu.memory_space<semaphore_mem>>
      %185 = tpu.memref_squeeze %184 : memref<1x!tpu.dma_semaphore, #tpu.memory_space<semaphore_mem>> -> memref<!tpu.dma_semaphore, #tpu.memory_space<semaphore_mem>>
      tpu.enqueue_dma source(%181 : memref<32xf32, #tpu.memory_space<any>>) target(%183 : memref<32xf32, #tpu.memory_space<vmem>>) target_semaphore(%185 : memref<!tpu.dma_semaphore, #tpu.memory_space<semaphore_mem>>)
    }
    %c16_i32_16 = arith.constant 16 : i32
    %c0_i32_17 = arith.constant 0 : i32
    %c16_i32_18 = arith.constant 16 : i32
    %8 = arith.addi %c0_i32_17, %c16_i32_18 : i32
    %c1_i32_19 = arith.constant 1 : i32
    scf.for %arg22 = %c0_i32_17 to %8 step %c1_i32_19  : i32 {
      %c5_i32 = arith.constant 5 : i32
      %175 = arith.addi %0, %c5_i32 : i32
      %176 = arith.index_cast %175 : i32 to index
      %177 = arith.index_cast %arg22 : i32 to index
      %178 = memref.load %arg1[%176, %177] : memref<8x16xi32, #tpu.memory_space<smem>>
      %c80_i32 = arith.constant 80 : i32
      %179 = arith.addi %c80_i32, %arg22 : i32
      %c0_i32_154 = arith.constant 0 : i32
      %c0_i32_155 = arith.constant 0 : i32
      %180 = tpu.memref_slice %arg2[%178, %c0_i32_155] : memref<50x32xf32, #tpu.memory_space<any>> -> memref<1x32xf32, #tpu.memory_space<any>>
      %181 = tpu.memref_squeeze %180 : memref<1x32xf32, #tpu.memory_space<any>> -> memref<32xf32, #tpu.memory_space<any>>
      %c0_i32_156 = arith.constant 0 : i32
      %182 = tpu.memref_slice %arg20[%179, %c0_i32_156] : memref<144x32xf32, #tpu.memory_space<vmem>> -> memref<1x32xf32, #tpu.memory_space<vmem>>
      %183 = tpu.memref_squeeze %182 : memref<1x32xf32, #tpu.memory_space<vmem>> -> memref<32xf32, #tpu.memory_space<vmem>>
      %184 = tpu.memref_slice %arg21[%c0_i32_154] : memref<1x!tpu.dma_semaphore, #tpu.memory_space<semaphore_mem>> -> memref<1x!tpu.dma_semaphore, #tpu.memory_space<semaphore_mem>>
      %185 = tpu.memref_squeeze %184 : memref<1x!tpu.dma_semaphore, #tpu.memory_space<semaphore_mem>> -> memref<!tpu.dma_semaphore, #tpu.memory_space<semaphore_mem>>
      tpu.enqueue_dma source(%181 : memref<32xf32, #tpu.memory_space<any>>) target(%183 : memref<32xf32, #tpu.memory_space<vmem>>) target_semaphore(%185 : memref<!tpu.dma_semaphore, #tpu.memory_space<semaphore_mem>>)
    }
    %c16_i32_20 = arith.constant 16 : i32
    %c0_i32_21 = arith.constant 0 : i32
    %c16_i32_22 = arith.constant 16 : i32
    %9 = arith.addi %c0_i32_21, %c16_i32_22 : i32
    %c1_i32_23 = arith.constant 1 : i32
    scf.for %arg22 = %c0_i32_21 to %9 step %c1_i32_23  : i32 {
      %c6_i32 = arith.constant 6 : i32
      %175 = arith.addi %0, %c6_i32 : i32
      %176 = arith.index_cast %175 : i32 to index
      %177 = arith.index_cast %arg22 : i32 to index
      %178 = memref.load %arg1[%176, %177] : memref<8x16xi32, #tpu.memory_space<smem>>
      %c96_i32 = arith.constant 96 : i32
      %179 = arith.addi %c96_i32, %arg22 : i32
      %c0_i32_154 = arith.constant 0 : i32
      %c0_i32_155 = arith.constant 0 : i32
      %180 = tpu.memref_slice %arg2[%178, %c0_i32_155] : memref<50x32xf32, #tpu.memory_space<any>> -> memref<1x32xf32, #tpu.memory_space<any>>
      %181 = tpu.memref_squeeze %180 : memref<1x32xf32, #tpu.memory_space<any>> -> memref<32xf32, #tpu.memory_space<any>>
      %c0_i32_156 = arith.constant 0 : i32
      %182 = tpu.memref_slice %arg20[%179, %c0_i32_156] : memref<144x32xf32, #tpu.memory_space<vmem>> -> memref<1x32xf32, #tpu.memory_space<vmem>>
      %183 = tpu.memref_squeeze %182 : memref<1x32xf32, #tpu.memory_space<vmem>> -> memref<32xf32, #tpu.memory_space<vmem>>
      %184 = tpu.memref_slice %arg21[%c0_i32_154] : memref<1x!tpu.dma_semaphore, #tpu.memory_space<semaphore_mem>> -> memref<1x!tpu.dma_semaphore, #tpu.memory_space<semaphore_mem>>
      %185 = tpu.memref_squeeze %184 : memref<1x!tpu.dma_semaphore, #tpu.memory_space<semaphore_mem>> -> memref<!tpu.dma_semaphore, #tpu.memory_space<semaphore_mem>>
      tpu.enqueue_dma source(%181 : memref<32xf32, #tpu.memory_space<any>>) target(%183 : memref<32xf32, #tpu.memory_space<vmem>>) target_semaphore(%185 : memref<!tpu.dma_semaphore, #tpu.memory_space<semaphore_mem>>)
    }
    %c16_i32_24 = arith.constant 16 : i32
    %c0_i32_25 = arith.constant 0 : i32
    %c16_i32_26 = arith.constant 16 : i32
    %10 = arith.addi %c0_i32_25, %c16_i32_26 : i32
    %c1_i32_27 = arith.constant 1 : i32
    scf.for %arg22 = %c0_i32_25 to %10 step %c1_i32_27  : i32 {
      %c7_i32 = arith.constant 7 : i32
      %175 = arith.addi %0, %c7_i32 : i32
      %176 = arith.index_cast %175 : i32 to index
      %177 = arith.index_cast %arg22 : i32 to index
      %178 = memref.load %arg1[%176, %177] : memref<8x16xi32, #tpu.memory_space<smem>>
      %c112_i32 = arith.constant 112 : i32
      %179 = arith.addi %c112_i32, %arg22 : i32
      %c0_i32_154 = arith.constant 0 : i32
      %c0_i32_155 = arith.constant 0 : i32
      %180 = tpu.memref_slice %arg2[%178, %c0_i32_155] : memref<50x32xf32, #tpu.memory_space<any>> -> memref<1x32xf32, #tpu.memory_space<any>>
      %181 = tpu.memref_squeeze %180 : memref<1x32xf32, #tpu.memory_space<any>> -> memref<32xf32, #tpu.memory_space<any>>
      %c0_i32_156 = arith.constant 0 : i32
      %182 = tpu.memref_slice %arg20[%179, %c0_i32_156] : memref<144x32xf32, #tpu.memory_space<vmem>> -> memref<1x32xf32, #tpu.memory_space<vmem>>
      %183 = tpu.memref_squeeze %182 : memref<1x32xf32, #tpu.memory_space<vmem>> -> memref<32xf32, #tpu.memory_space<vmem>>
      %184 = tpu.memref_slice %arg21[%c0_i32_154] : memref<1x!tpu.dma_semaphore, #tpu.memory_space<semaphore_mem>> -> memref<1x!tpu.dma_semaphore, #tpu.memory_space<semaphore_mem>>
      %185 = tpu.memref_squeeze %184 : memref<1x!tpu.dma_semaphore, #tpu.memory_space<semaphore_mem>> -> memref<!tpu.dma_semaphore, #tpu.memory_space<semaphore_mem>>
      tpu.enqueue_dma source(%181 : memref<32xf32, #tpu.memory_space<any>>) target(%183 : memref<32xf32, #tpu.memory_space<vmem>>) target_semaphore(%185 : memref<!tpu.dma_semaphore, #tpu.memory_space<semaphore_mem>>)
    }
    %c16_i32_28 = arith.constant 16 : i32
    %c0_i32_29 = arith.constant 0 : i32
    %c16_i32_30 = arith.constant 16 : i32
    %11 = arith.addi %c0_i32_29, %c16_i32_30 : i32
    %c1_i32_31 = arith.constant 1 : i32
    scf.for %arg22 = %c0_i32_29 to %11 step %c1_i32_31  : i32 {
      %c0_i32_154 = arith.constant 0 : i32
      %175 = arith.addi %0, %c0_i32_154 : i32
      %176 = arith.index_cast %175 : i32 to index
      %177 = arith.index_cast %arg22 : i32 to index
      %178 = memref.load %arg1[%176, %177] : memref<8x16xi32, #tpu.memory_space<smem>>
      %c0_i32_155 = arith.constant 0 : i32
      %179 = arith.addi %c0_i32_155, %arg22 : i32
      %c0_i32_156 = arith.constant 0 : i32
      %c0_i32_157 = arith.constant 0 : i32
      %180 = tpu.memref_slice %arg2[%178, %c0_i32_157] : memref<50x32xf32, #tpu.memory_space<any>> -> memref<1x32xf32, #tpu.memory_space<any>>
      %181 = tpu.memref_squeeze %180 : memref<1x32xf32, #tpu.memory_space<any>> -> memref<32xf32, #tpu.memory_space<any>>
      %c0_i32_158 = arith.constant 0 : i32
      %182 = tpu.memref_slice %arg20[%179, %c0_i32_158] : memref<144x32xf32, #tpu.memory_space<vmem>> -> memref<1x32xf32, #tpu.memory_space<vmem>>
      %183 = tpu.memref_squeeze %182 : memref<1x32xf32, #tpu.memory_space<vmem>> -> memref<32xf32, #tpu.memory_space<vmem>>
      %184 = tpu.memref_slice %arg21[%c0_i32_156] : memref<1x!tpu.dma_semaphore, #tpu.memory_space<semaphore_mem>> -> memref<1x!tpu.dma_semaphore, #tpu.memory_space<semaphore_mem>>
      %185 = tpu.memref_squeeze %184 : memref<1x!tpu.dma_semaphore, #tpu.memory_space<semaphore_mem>> -> memref<!tpu.dma_semaphore, #tpu.memory_space<semaphore_mem>>
      tpu.wait_dma2 semaphore(%185 : memref<!tpu.dma_semaphore, #tpu.memory_space<semaphore_mem>>) src(%181 : memref<32xf32, #tpu.memory_space<any>>) dst(%183 : memref<32xf32, #tpu.memory_space<vmem>>)
    }
    %c16_i32_32 = arith.constant 16 : i32
    %c0_i32_33 = arith.constant 0 : i32
    %c16_i32_34 = arith.constant 16 : i32
    %12 = arith.addi %c0_i32_33, %c16_i32_34 : i32
    %c1_i32_35 = arith.constant 1 : i32
    scf.for %arg22 = %c0_i32_33 to %12 step %c1_i32_35  : i32 {
      %c1_i32_154 = arith.constant 1 : i32
      %175 = arith.addi %0, %c1_i32_154 : i32
      %176 = arith.index_cast %175 : i32 to index
      %177 = arith.index_cast %arg22 : i32 to index
      %178 = memref.load %arg1[%176, %177] : memref<8x16xi32, #tpu.memory_space<smem>>
      %c16_i32_155 = arith.constant 16 : i32
      %179 = arith.addi %c16_i32_155, %arg22 : i32
      %c0_i32_156 = arith.constant 0 : i32
      %c0_i32_157 = arith.constant 0 : i32
      %180 = tpu.memref_slice %arg2[%178, %c0_i32_157] : memref<50x32xf32, #tpu.memory_space<any>> -> memref<1x32xf32, #tpu.memory_space<any>>
      %181 = tpu.memref_squeeze %180 : memref<1x32xf32, #tpu.memory_space<any>> -> memref<32xf32, #tpu.memory_space<any>>
      %c0_i32_158 = arith.constant 0 : i32
      %182 = tpu.memref_slice %arg20[%179, %c0_i32_158] : memref<144x32xf32, #tpu.memory_space<vmem>> -> memref<1x32xf32, #tpu.memory_space<vmem>>
      %183 = tpu.memref_squeeze %182 : memref<1x32xf32, #tpu.memory_space<vmem>> -> memref<32xf32, #tpu.memory_space<vmem>>
      %184 = tpu.memref_slice %arg21[%c0_i32_156] : memref<1x!tpu.dma_semaphore, #tpu.memory_space<semaphore_mem>> -> memref<1x!tpu.dma_semaphore, #tpu.memory_space<semaphore_mem>>
      %185 = tpu.memref_squeeze %184 : memref<1x!tpu.dma_semaphore, #tpu.memory_space<semaphore_mem>> -> memref<!tpu.dma_semaphore, #tpu.memory_space<semaphore_mem>>
      tpu.wait_dma2 semaphore(%185 : memref<!tpu.dma_semaphore, #tpu.memory_space<semaphore_mem>>) src(%181 : memref<32xf32, #tpu.memory_space<any>>) dst(%183 : memref<32xf32, #tpu.memory_space<vmem>>)
    }
    %c16_i32_36 = arith.constant 16 : i32
    %c0_i32_37 = arith.constant 0 : i32
    %c16_i32_38 = arith.constant 16 : i32
    %13 = arith.addi %c0_i32_37, %c16_i32_38 : i32
    %c1_i32_39 = arith.constant 1 : i32
    scf.for %arg22 = %c0_i32_37 to %13 step %c1_i32_39  : i32 {
      %c2_i32 = arith.constant 2 : i32
      %175 = arith.addi %0, %c2_i32 : i32
      %176 = arith.index_cast %175 : i32 to index
      %177 = arith.index_cast %arg22 : i32 to index
      %178 = memref.load %arg1[%176, %177] : memref<8x16xi32, #tpu.memory_space<smem>>
      %c32_i32 = arith.constant 32 : i32
      %179 = arith.addi %c32_i32, %arg22 : i32
      %c0_i32_154 = arith.constant 0 : i32
      %c0_i32_155 = arith.constant 0 : i32
      %180 = tpu.memref_slice %arg2[%178, %c0_i32_155] : memref<50x32xf32, #tpu.memory_space<any>> -> memref<1x32xf32, #tpu.memory_space<any>>
      %181 = tpu.memref_squeeze %180 : memref<1x32xf32, #tpu.memory_space<any>> -> memref<32xf32, #tpu.memory_space<any>>
      %c0_i32_156 = arith.constant 0 : i32
      %182 = tpu.memref_slice %arg20[%179, %c0_i32_156] : memref<144x32xf32, #tpu.memory_space<vmem>> -> memref<1x32xf32, #tpu.memory_space<vmem>>
      %183 = tpu.memref_squeeze %182 : memref<1x32xf32, #tpu.memory_space<vmem>> -> memref<32xf32, #tpu.memory_space<vmem>>
      %184 = tpu.memref_slice %arg21[%c0_i32_154] : memref<1x!tpu.dma_semaphore, #tpu.memory_space<semaphore_mem>> -> memref<1x!tpu.dma_semaphore, #tpu.memory_space<semaphore_mem>>
      %185 = tpu.memref_squeeze %184 : memref<1x!tpu.dma_semaphore, #tpu.memory_space<semaphore_mem>> -> memref<!tpu.dma_semaphore, #tpu.memory_space<semaphore_mem>>
      tpu.wait_dma2 semaphore(%185 : memref<!tpu.dma_semaphore, #tpu.memory_space<semaphore_mem>>) src(%181 : memref<32xf32, #tpu.memory_space<any>>) dst(%183 : memref<32xf32, #tpu.memory_space<vmem>>)
    }
    %c16_i32_40 = arith.constant 16 : i32
    %c0_i32_41 = arith.constant 0 : i32
    %c16_i32_42 = arith.constant 16 : i32
    %14 = arith.addi %c0_i32_41, %c16_i32_42 : i32
    %c1_i32_43 = arith.constant 1 : i32
    scf.for %arg22 = %c0_i32_41 to %14 step %c1_i32_43  : i32 {
      %c3_i32 = arith.constant 3 : i32
      %175 = arith.addi %0, %c3_i32 : i32
      %176 = arith.index_cast %175 : i32 to index
      %177 = arith.index_cast %arg22 : i32 to index
      %178 = memref.load %arg1[%176, %177] : memref<8x16xi32, #tpu.memory_space<smem>>
      %c48_i32 = arith.constant 48 : i32
      %179 = arith.addi %c48_i32, %arg22 : i32
      %c0_i32_154 = arith.constant 0 : i32
      %c0_i32_155 = arith.constant 0 : i32
      %180 = tpu.memref_slice %arg2[%178, %c0_i32_155] : memref<50x32xf32, #tpu.memory_space<any>> -> memref<1x32xf32, #tpu.memory_space<any>>
      %181 = tpu.memref_squeeze %180 : memref<1x32xf32, #tpu.memory_space<any>> -> memref<32xf32, #tpu.memory_space<any>>
      %c0_i32_156 = arith.constant 0 : i32
      %182 = tpu.memref_slice %arg20[%179, %c0_i32_156] : memref<144x32xf32, #tpu.memory_space<vmem>> -> memref<1x32xf32, #tpu.memory_space<vmem>>
      %183 = tpu.memref_squeeze %182 : memref<1x32xf32, #tpu.memory_space<vmem>> -> memref<32xf32, #tpu.memory_space<vmem>>
      %184 = tpu.memref_slice %arg21[%c0_i32_154] : memref<1x!tpu.dma_semaphore, #tpu.memory_space<semaphore_mem>> -> memref<1x!tpu.dma_semaphore, #tpu.memory_space<semaphore_mem>>
      %185 = tpu.memref_squeeze %184 : memref<1x!tpu.dma_semaphore, #tpu.memory_space<semaphore_mem>> -> memref<!tpu.dma_semaphore, #tpu.memory_space<semaphore_mem>>
      tpu.wait_dma2 semaphore(%185 : memref<!tpu.dma_semaphore, #tpu.memory_space<semaphore_mem>>) src(%181 : memref<32xf32, #tpu.memory_space<any>>) dst(%183 : memref<32xf32, #tpu.memory_space<vmem>>)
    }
    %c16_i32_44 = arith.constant 16 : i32
    %c0_i32_45 = arith.constant 0 : i32
    %c16_i32_46 = arith.constant 16 : i32
    %15 = arith.addi %c0_i32_45, %c16_i32_46 : i32
    %c1_i32_47 = arith.constant 1 : i32
    scf.for %arg22 = %c0_i32_45 to %15 step %c1_i32_47  : i32 {
      %c4_i32 = arith.constant 4 : i32
      %175 = arith.addi %0, %c4_i32 : i32
      %176 = arith.index_cast %175 : i32 to index
      %177 = arith.index_cast %arg22 : i32 to index
      %178 = memref.load %arg1[%176, %177] : memref<8x16xi32, #tpu.memory_space<smem>>
      %c64_i32 = arith.constant 64 : i32
      %179 = arith.addi %c64_i32, %arg22 : i32
      %c0_i32_154 = arith.constant 0 : i32
      %c0_i32_155 = arith.constant 0 : i32
      %180 = tpu.memref_slice %arg2[%178, %c0_i32_155] : memref<50x32xf32, #tpu.memory_space<any>> -> memref<1x32xf32, #tpu.memory_space<any>>
      %181 = tpu.memref_squeeze %180 : memref<1x32xf32, #tpu.memory_space<any>> -> memref<32xf32, #tpu.memory_space<any>>
      %c0_i32_156 = arith.constant 0 : i32
      %182 = tpu.memref_slice %arg20[%179, %c0_i32_156] : memref<144x32xf32, #tpu.memory_space<vmem>> -> memref<1x32xf32, #tpu.memory_space<vmem>>
      %183 = tpu.memref_squeeze %182 : memref<1x32xf32, #tpu.memory_space<vmem>> -> memref<32xf32, #tpu.memory_space<vmem>>
      %184 = tpu.memref_slice %arg21[%c0_i32_154] : memref<1x!tpu.dma_semaphore, #tpu.memory_space<semaphore_mem>> -> memref<1x!tpu.dma_semaphore, #tpu.memory_space<semaphore_mem>>
      %185 = tpu.memref_squeeze %184 : memref<1x!tpu.dma_semaphore, #tpu.memory_space<semaphore_mem>> -> memref<!tpu.dma_semaphore, #tpu.memory_space<semaphore_mem>>
      tpu.wait_dma2 semaphore(%185 : memref<!tpu.dma_semaphore, #tpu.memory_space<semaphore_mem>>) src(%181 : memref<32xf32, #tpu.memory_space<any>>) dst(%183 : memref<32xf32, #tpu.memory_space<vmem>>)
    }
    %c16_i32_48 = arith.constant 16 : i32
    %c0_i32_49 = arith.constant 0 : i32
    %c16_i32_50 = arith.constant 16 : i32
    %16 = arith.addi %c0_i32_49, %c16_i32_50 : i32
    %c1_i32_51 = arith.constant 1 : i32
    scf.for %arg22 = %c0_i32_49 to %16 step %c1_i32_51  : i32 {
      %c5_i32 = arith.constant 5 : i32
      %175 = arith.addi %0, %c5_i32 : i32
      %176 = arith.index_cast %175 : i32 to index
      %177 = arith.index_cast %arg22 : i32 to index
      %178 = memref.load %arg1[%176, %177] : memref<8x16xi32, #tpu.memory_space<smem>>
      %c80_i32 = arith.constant 80 : i32
      %179 = arith.addi %c80_i32, %arg22 : i32
      %c0_i32_154 = arith.constant 0 : i32
      %c0_i32_155 = arith.constant 0 : i32
      %180 = tpu.memref_slice %arg2[%178, %c0_i32_155] : memref<50x32xf32, #tpu.memory_space<any>> -> memref<1x32xf32, #tpu.memory_space<any>>
      %181 = tpu.memref_squeeze %180 : memref<1x32xf32, #tpu.memory_space<any>> -> memref<32xf32, #tpu.memory_space<any>>
      %c0_i32_156 = arith.constant 0 : i32
      %182 = tpu.memref_slice %arg20[%179, %c0_i32_156] : memref<144x32xf32, #tpu.memory_space<vmem>> -> memref<1x32xf32, #tpu.memory_space<vmem>>
      %183 = tpu.memref_squeeze %182 : memref<1x32xf32, #tpu.memory_space<vmem>> -> memref<32xf32, #tpu.memory_space<vmem>>
      %184 = tpu.memref_slice %arg21[%c0_i32_154] : memref<1x!tpu.dma_semaphore, #tpu.memory_space<semaphore_mem>> -> memref<1x!tpu.dma_semaphore, #tpu.memory_space<semaphore_mem>>
      %185 = tpu.memref_squeeze %184 : memref<1x!tpu.dma_semaphore, #tpu.memory_space<semaphore_mem>> -> memref<!tpu.dma_semaphore, #tpu.memory_space<semaphore_mem>>
      tpu.wait_dma2 semaphore(%185 : memref<!tpu.dma_semaphore, #tpu.memory_space<semaphore_mem>>) src(%181 : memref<32xf32, #tpu.memory_space<any>>) dst(%183 : memref<32xf32, #tpu.memory_space<vmem>>)
    }
    %c16_i32_52 = arith.constant 16 : i32
    %c0_i32_53 = arith.constant 0 : i32
    %c16_i32_54 = arith.constant 16 : i32
    %17 = arith.addi %c0_i32_53, %c16_i32_54 : i32
    %c1_i32_55 = arith.constant 1 : i32
    scf.for %arg22 = %c0_i32_53 to %17 step %c1_i32_55  : i32 {
      %c6_i32 = arith.constant 6 : i32
      %175 = arith.addi %0, %c6_i32 : i32
      %176 = arith.index_cast %175 : i32 to index
      %177 = arith.index_cast %arg22 : i32 to index
      %178 = memref.load %arg1[%176, %177] : memref<8x16xi32, #tpu.memory_space<smem>>
      %c96_i32 = arith.constant 96 : i32
      %179 = arith.addi %c96_i32, %arg22 : i32
      %c0_i32_154 = arith.constant 0 : i32
      %c0_i32_155 = arith.constant 0 : i32
      %180 = tpu.memref_slice %arg2[%178, %c0_i32_155] : memref<50x32xf32, #tpu.memory_space<any>> -> memref<1x32xf32, #tpu.memory_space<any>>
      %181 = tpu.memref_squeeze %180 : memref<1x32xf32, #tpu.memory_space<any>> -> memref<32xf32, #tpu.memory_space<any>>
      %c0_i32_156 = arith.constant 0 : i32
      %182 = tpu.memref_slice %arg20[%179, %c0_i32_156] : memref<144x32xf32, #tpu.memory_space<vmem>> -> memref<1x32xf32, #tpu.memory_space<vmem>>
      %183 = tpu.memref_squeeze %182 : memref<1x32xf32, #tpu.memory_space<vmem>> -> memref<32xf32, #tpu.memory_space<vmem>>
      %184 = tpu.memref_slice %arg21[%c0_i32_154] : memref<1x!tpu.dma_semaphore, #tpu.memory_space<semaphore_mem>> -> memref<1x!tpu.dma_semaphore, #tpu.memory_space<semaphore_mem>>
      %185 = tpu.memref_squeeze %184 : memref<1x!tpu.dma_semaphore, #tpu.memory_space<semaphore_mem>> -> memref<!tpu.dma_semaphore, #tpu.memory_space<semaphore_mem>>
      tpu.wait_dma2 semaphore(%185 : memref<!tpu.dma_semaphore, #tpu.memory_space<semaphore_mem>>) src(%181 : memref<32xf32, #tpu.memory_space<any>>) dst(%183 : memref<32xf32, #tpu.memory_space<vmem>>)
    }
    %c16_i32_56 = arith.constant 16 : i32
    %c0_i32_57 = arith.constant 0 : i32
    %c16_i32_58 = arith.constant 16 : i32
    %18 = arith.addi %c0_i32_57, %c16_i32_58 : i32
    %c1_i32_59 = arith.constant 1 : i32
    scf.for %arg22 = %c0_i32_57 to %18 step %c1_i32_59  : i32 {
      %c7_i32 = arith.constant 7 : i32
      %175 = arith.addi %0, %c7_i32 : i32
      %176 = arith.index_cast %175 : i32 to index
      %177 = arith.index_cast %arg22 : i32 to index
      %178 = memref.load %arg1[%176, %177] : memref<8x16xi32, #tpu.memory_space<smem>>
      %c112_i32 = arith.constant 112 : i32
      %179 = arith.addi %c112_i32, %arg22 : i32
      %c0_i32_154 = arith.constant 0 : i32
      %c0_i32_155 = arith.constant 0 : i32
      %180 = tpu.memref_slice %arg2[%178, %c0_i32_155] : memref<50x32xf32, #tpu.memory_space<any>> -> memref<1x32xf32, #tpu.memory_space<any>>
      %181 = tpu.memref_squeeze %180 : memref<1x32xf32, #tpu.memory_space<any>> -> memref<32xf32, #tpu.memory_space<any>>
      %c0_i32_156 = arith.constant 0 : i32
      %182 = tpu.memref_slice %arg20[%179, %c0_i32_156] : memref<144x32xf32, #tpu.memory_space<vmem>> -> memref<1x32xf32, #tpu.memory_space<vmem>>
      %183 = tpu.memref_squeeze %182 : memref<1x32xf32, #tpu.memory_space<vmem>> -> memref<32xf32, #tpu.memory_space<vmem>>
      %184 = tpu.memref_slice %arg21[%c0_i32_154] : memref<1x!tpu.dma_semaphore, #tpu.memory_space<semaphore_mem>> -> memref<1x!tpu.dma_semaphore, #tpu.memory_space<semaphore_mem>>
      %185 = tpu.memref_squeeze %184 : memref<1x!tpu.dma_semaphore, #tpu.memory_space<semaphore_mem>> -> memref<!tpu.dma_semaphore, #tpu.memory_space<semaphore_mem>>
      tpu.wait_dma2 semaphore(%185 : memref<!tpu.dma_semaphore, #tpu.memory_space<semaphore_mem>>) src(%181 : memref<32xf32, #tpu.memory_space<any>>) dst(%183 : memref<32xf32, #tpu.memory_space<vmem>>)
    }
    %c16_i32_60 = arith.constant 16 : i32
    %c0_61 = arith.constant 0 : index
    %c0_62 = arith.constant 0 : index
    %19 = vector.load %arg20[%c0_61, %c0_62] : memref<144x32xf32, #tpu.memory_space<vmem>>, vector<144x32xf32>
    %20 = arith.truncf %19 : vector<144x32xf32> to vector<144x32xbf16>
    %21 = vector.extract_strided_slice %20 {offsets = [0, 0], sizes = [136, 32], strides = [1, 1]} : vector<144x32xbf16> to vector<136x32xbf16>
    %c0_63 = arith.constant 0 : index
    %c0_64 = arith.constant 0 : index
    %c0_65 = arith.constant 0 : index
    %22 = vector.load %arg3[%c0_63, %c0_64, %c0_65] : memref<2x32x128xbf16, #tpu.memory_space<vmem>>, vector<1x32x128xbf16>
    %23 = vector.shape_cast %22 : vector<1x32x128xbf16> to vector<32x128xbf16>
    %cst_66 = arith.constant dense<0.000000e+00> : vector<136x128xf32>
    %24 = tpu.matmul %21, %23, %cst_66 {dimension_numbers = #tpu.dot_dimension_numbers<[1], [0], [0], [1], [0, 0, 1, 1], [], []>} : vector<136x32xbf16>, vector<32x128xbf16>, vector<136x128xf32> -> vector<136x128xf32>
    %25 = vector.extract_strided_slice %20 {offsets = [1, 0], sizes = [136, 32], strides = [1, 1]} : vector<144x32xbf16> to vector<136x32xbf16>
    %c1 = arith.constant 1 : index
    %c0_67 = arith.constant 0 : index
    %c0_68 = arith.constant 0 : index
    %26 = vector.load %arg3[%c1, %c0_67, %c0_68] : memref<2x32x128xbf16, #tpu.memory_space<vmem>>, vector<1x32x128xbf16>
    %27 = vector.shape_cast %26 : vector<1x32x128xbf16> to vector<32x128xbf16>
    %cst_69 = arith.constant dense<0.000000e+00> : vector<136x128xf32>
    %28 = tpu.matmul %25, %27, %cst_69 {dimension_numbers = #tpu.dot_dimension_numbers<[1], [0], [0], [1], [0, 0, 1, 1], [], []>} : vector<136x32xbf16>, vector<32x128xbf16>, vector<136x128xf32> -> vector<136x128xf32>
    %29 = arith.addf %24, %28 : vector<136x128xf32>
    %c0_70 = arith.constant 0 : index
    %c0_71 = arith.constant 0 : index
    %30 = vector.load %arg4[%c0_70, %c0_71] : memref<1x128xf32, #tpu.memory_space<vmem>>, vector<1x128xf32>
    %31 = vector.broadcast %30 : vector<1x128xf32> to vector<136x128xf32>
    %32 = arith.addf %29, %31 : vector<136x128xf32>
    %cst_72 = arith.constant 0.000000e+00 : f32
    %33 = vector.broadcast %cst_72 : f32 to vector<136x128xf32>
    %34 = arith.maximumf %32, %33 : vector<136x128xf32>
    %35 = arith.truncf %34 : vector<136x128xf32> to vector<136x128xbf16>
    %36 = vector.extract_strided_slice %35 {offsets = [0, 0], sizes = [128, 128], strides = [1, 1]} : vector<136x128xbf16> to vector<128x128xbf16>
    %c0_73 = arith.constant 0 : index
    %c0_74 = arith.constant 0 : index
    %c0_75 = arith.constant 0 : index
    %37 = vector.load %arg5[%c0_73, %c0_74, %c0_75] : memref<2x128x128xbf16, #tpu.memory_space<vmem>>, vector<1x128x128xbf16>
    %38 = vector.shape_cast %37 : vector<1x128x128xbf16> to vector<128x128xbf16>
    %cst_76 = arith.constant dense<0.000000e+00> : vector<128x128xf32>
    %39 = tpu.matmul %36, %38, %cst_76 {dimension_numbers = #tpu.dot_dimension_numbers<[1], [0], [0], [1], [0, 0, 1, 1], [], []>} : vector<128x128xbf16>, vector<128x128xbf16>, vector<128x128xf32> -> vector<128x128xf32>
    %40 = vector.extract_strided_slice %35 {offsets = [1, 0], sizes = [128, 128], strides = [1, 1]} : vector<136x128xbf16> to vector<128x128xbf16>
    %c1_77 = arith.constant 1 : index
    %c0_78 = arith.constant 0 : index
    %c0_79 = arith.constant 0 : index
    %41 = vector.load %arg5[%c1_77, %c0_78, %c0_79] : memref<2x128x128xbf16, #tpu.memory_space<vmem>>, vector<1x128x128xbf16>
    %42 = vector.shape_cast %41 : vector<1x128x128xbf16> to vector<128x128xbf16>
    %cst_80 = arith.constant dense<0.000000e+00> : vector<128x128xf32>
    %43 = tpu.matmul %40, %42, %cst_80 {dimension_numbers = #tpu.dot_dimension_numbers<[1], [0], [0], [1], [0, 0, 1, 1], [], []>} : vector<128x128xbf16>, vector<128x128xbf16>, vector<128x128xf32> -> vector<128x128xf32>
    %44 = arith.addf %39, %43 : vector<128x128xf32>
    %c0_81 = arith.constant 0 : index
    %c0_82 = arith.constant 0 : index
    %45 = vector.load %arg6[%c0_81, %c0_82] : memref<1x128xf32, #tpu.memory_space<vmem>>, vector<1x128xf32>
    %46 = vector.broadcast %45 : vector<1x128xf32> to vector<128x128xf32>
    %47 = arith.addf %44, %46 : vector<128x128xf32>
    %cst_83 = arith.constant 0.000000e+00 : f32
    %48 = vector.broadcast %cst_83 : f32 to vector<128x128xf32>
    %49 = arith.maximumf %47, %48 : vector<128x128xf32>
    %50 = vector.extract_strided_slice %49 {offsets = [0, 0], sizes = [14, 128], strides = [1, 1]} : vector<128x128xf32> to vector<14x128xf32>
    %cst_84 = arith.constant dense<0xFF800000> : vector<128xf32>
    %51 = vector.multi_reduction <maximumf>, %50, %cst_84 [0] : vector<14x128xf32> to vector<128xf32>
    %52 = vector.shape_cast %51 : vector<128xf32> to vector<1x128xf32>
    %53 = vector.extract_strided_slice %49 {offsets = [16, 0], sizes = [14, 128], strides = [1, 1]} : vector<128x128xf32> to vector<14x128xf32>
    %cst_85 = arith.constant dense<0xFF800000> : vector<128xf32>
    %54 = vector.multi_reduction <maximumf>, %53, %cst_85 [0] : vector<14x128xf32> to vector<128xf32>
    %55 = vector.shape_cast %54 : vector<128xf32> to vector<1x128xf32>
    %56 = vector.extract_strided_slice %49 {offsets = [32, 0], sizes = [14, 128], strides = [1, 1]} : vector<128x128xf32> to vector<14x128xf32>
    %cst_86 = arith.constant dense<0xFF800000> : vector<128xf32>
    %57 = vector.multi_reduction <maximumf>, %56, %cst_86 [0] : vector<14x128xf32> to vector<128xf32>
    %58 = vector.shape_cast %57 : vector<128xf32> to vector<1x128xf32>
    %59 = vector.extract_strided_slice %49 {offsets = [48, 0], sizes = [14, 128], strides = [1, 1]} : vector<128x128xf32> to vector<14x128xf32>
    %cst_87 = arith.constant dense<0xFF800000> : vector<128xf32>
    %60 = vector.multi_reduction <maximumf>, %59, %cst_87 [0] : vector<14x128xf32> to vector<128xf32>
    %61 = vector.shape_cast %60 : vector<128xf32> to vector<1x128xf32>
    %62 = vector.extract_strided_slice %49 {offsets = [64, 0], sizes = [14, 128], strides = [1, 1]} : vector<128x128xf32> to vector<14x128xf32>
    %cst_88 = arith.constant dense<0xFF800000> : vector<128xf32>
    %63 = vector.multi_reduction <maximumf>, %62, %cst_88 [0] : vector<14x128xf32> to vector<128xf32>
    %64 = vector.shape_cast %63 : vector<128xf32> to vector<1x128xf32>
    %65 = vector.extract_strided_slice %49 {offsets = [80, 0], sizes = [14, 128], strides = [1, 1]} : vector<128x128xf32> to vector<14x128xf32>
    %cst_89 = arith.constant dense<0xFF800000> : vector<128xf32>
    %66 = vector.multi_reduction <maximumf>, %65, %cst_89 [0] : vector<14x128xf32> to vector<128xf32>
    %67 = vector.shape_cast %66 : vector<128xf32> to vector<1x128xf32>
    %68 = vector.extract_strided_slice %49 {offsets = [96, 0], sizes = [14, 128], strides = [1, 1]} : vector<128x128xf32> to vector<14x128xf32>
    %cst_90 = arith.constant dense<0xFF800000> : vector<128xf32>
    %69 = vector.multi_reduction <maximumf>, %68, %cst_90 [0] : vector<14x128xf32> to vector<128xf32>
    %70 = vector.shape_cast %69 : vector<128xf32> to vector<1x128xf32>
    %71 = vector.extract_strided_slice %49 {offsets = [112, 0], sizes = [14, 128], strides = [1, 1]} : vector<128x128xf32> to vector<14x128xf32>
    %cst_91 = arith.constant dense<0xFF800000> : vector<128xf32>
    %72 = vector.multi_reduction <maximumf>, %71, %cst_91 [0] : vector<14x128xf32> to vector<128xf32>
    %73 = vector.shape_cast %72 : vector<128xf32> to vector<1x128xf32>
    %74 = tpu.concatenate %52, %55, %58, %61, %64, %67, %70, %73 in 0 : vector<1x128xf32>, vector<1x128xf32>, vector<1x128xf32>, vector<1x128xf32>, vector<1x128xf32>, vector<1x128xf32>, vector<1x128xf32>, vector<1x128xf32> -> vector<8x128xf32>
    %75 = arith.truncf %74 : vector<8x128xf32> to vector<8x128xbf16>
    %76 = vector.extract_strided_slice %20 {offsets = [0, 0], sizes = [136, 32], strides = [1, 1]} : vector<144x32xbf16> to vector<136x32xbf16>
    %c0_92 = arith.constant 0 : index
    %c0_93 = arith.constant 0 : index
    %c0_94 = arith.constant 0 : index
    %77 = vector.load %arg7[%c0_92, %c0_93, %c0_94] : memref<3x32x128xbf16, #tpu.memory_space<vmem>>, vector<1x32x128xbf16>
    %78 = vector.shape_cast %77 : vector<1x32x128xbf16> to vector<32x128xbf16>
    %cst_95 = arith.constant dense<0.000000e+00> : vector<136x128xf32>
    %79 = tpu.matmul %76, %78, %cst_95 {dimension_numbers = #tpu.dot_dimension_numbers<[1], [0], [0], [1], [0, 0, 1, 1], [], []>} : vector<136x32xbf16>, vector<32x128xbf16>, vector<136x128xf32> -> vector<136x128xf32>
    %80 = vector.extract_strided_slice %20 {offsets = [1, 0], sizes = [136, 32], strides = [1, 1]} : vector<144x32xbf16> to vector<136x32xbf16>
    %c1_96 = arith.constant 1 : index
    %c0_97 = arith.constant 0 : index
    %c0_98 = arith.constant 0 : index
    %81 = vector.load %arg7[%c1_96, %c0_97, %c0_98] : memref<3x32x128xbf16, #tpu.memory_space<vmem>>, vector<1x32x128xbf16>
    %82 = vector.shape_cast %81 : vector<1x32x128xbf16> to vector<32x128xbf16>
    %cst_99 = arith.constant dense<0.000000e+00> : vector<136x128xf32>
    %83 = tpu.matmul %80, %82, %cst_99 {dimension_numbers = #tpu.dot_dimension_numbers<[1], [0], [0], [1], [0, 0, 1, 1], [], []>} : vector<136x32xbf16>, vector<32x128xbf16>, vector<136x128xf32> -> vector<136x128xf32>
    %84 = arith.addf %79, %83 : vector<136x128xf32>
    %85 = vector.extract_strided_slice %20 {offsets = [2, 0], sizes = [136, 32], strides = [1, 1]} : vector<144x32xbf16> to vector<136x32xbf16>
    %c2 = arith.constant 2 : index
    %c0_100 = arith.constant 0 : index
    %c0_101 = arith.constant 0 : index
    %86 = vector.load %arg7[%c2, %c0_100, %c0_101] : memref<3x32x128xbf16, #tpu.memory_space<vmem>>, vector<1x32x128xbf16>
    %87 = vector.shape_cast %86 : vector<1x32x128xbf16> to vector<32x128xbf16>
    %cst_102 = arith.constant dense<0.000000e+00> : vector<136x128xf32>
    %88 = tpu.matmul %85, %87, %cst_102 {dimension_numbers = #tpu.dot_dimension_numbers<[1], [0], [0], [1], [0, 0, 1, 1], [], []>} : vector<136x32xbf16>, vector<32x128xbf16>, vector<136x128xf32> -> vector<136x128xf32>
    %89 = arith.addf %84, %88 : vector<136x128xf32>
    %c0_103 = arith.constant 0 : index
    %c0_104 = arith.constant 0 : index
    %90 = vector.load %arg8[%c0_103, %c0_104] : memref<1x128xf32, #tpu.memory_space<vmem>>, vector<1x128xf32>
    %91 = vector.broadcast %90 : vector<1x128xf32> to vector<136x128xf32>
    %92 = arith.addf %89, %91 : vector<136x128xf32>
    %cst_105 = arith.constant 0.000000e+00 : f32
    %93 = vector.broadcast %cst_105 : f32 to vector<136x128xf32>
    %94 = arith.maximumf %92, %93 : vector<136x128xf32>
    %95 = arith.truncf %94 : vector<136x128xf32> to vector<136x128xbf16>
    %96 = vector.extract_strided_slice %95 {offsets = [0, 0], sizes = [128, 128], strides = [1, 1]} : vector<136x128xbf16> to vector<128x128xbf16>
    %c0_106 = arith.constant 0 : index
    %c0_107 = arith.constant 0 : index
    %c0_108 = arith.constant 0 : index
    %97 = vector.load %arg9[%c0_106, %c0_107, %c0_108] : memref<3x128x128xbf16, #tpu.memory_space<vmem>>, vector<1x128x128xbf16>
    %98 = vector.shape_cast %97 : vector<1x128x128xbf16> to vector<128x128xbf16>
    %cst_109 = arith.constant dense<0.000000e+00> : vector<128x128xf32>
    %99 = tpu.matmul %96, %98, %cst_109 {dimension_numbers = #tpu.dot_dimension_numbers<[1], [0], [0], [1], [0, 0, 1, 1], [], []>} : vector<128x128xbf16>, vector<128x128xbf16>, vector<128x128xf32> -> vector<128x128xf32>
    %100 = vector.extract_strided_slice %95 {offsets = [1, 0], sizes = [128, 128], strides = [1, 1]} : vector<136x128xbf16> to vector<128x128xbf16>
    %c1_110 = arith.constant 1 : index
    %c0_111 = arith.constant 0 : index
    %c0_112 = arith.constant 0 : index
    %101 = vector.load %arg9[%c1_110, %c0_111, %c0_112] : memref<3x128x128xbf16, #tpu.memory_space<vmem>>, vector<1x128x128xbf16>
    %102 = vector.shape_cast %101 : vector<1x128x128xbf16> to vector<128x128xbf16>
    %cst_113 = arith.constant dense<0.000000e+00> : vector<128x128xf32>
    %103 = tpu.matmul %100, %102, %cst_113 {dimension_numbers = #tpu.dot_dimension_numbers<[1], [0], [0], [1], [0, 0, 1, 1], [], []>} : vector<128x128xbf16>, vector<128x128xbf16>, vector<128x128xf32> -> vector<128x128xf32>
    %104 = arith.addf %99, %103 : vector<128x128xf32>
    %105 = vector.extract_strided_slice %95 {offsets = [2, 0], sizes = [128, 128], strides = [1, 1]} : vector<136x128xbf16> to vector<128x128xbf16>
    %c2_114 = arith.constant 2 : index
    %c0_115 = arith.constant 0 : index
    %c0_116 = arith.constant 0 : index
    %106 = vector.load %arg9[%c2_114, %c0_115, %c0_116] : memref<3x128x128xbf16, #tpu.memory_space<vmem>>, vector<1x128x128xbf16>
    %107 = vector.shape_cast %106 : vector<1x128x128xbf16> to vector<128x128xbf16>
    %cst_117 = arith.constant dense<0.000000e+00> : vector<128x128xf32>
    %108 = tpu.matmul %105, %107, %cst_117 {dimension_numbers = #tpu.dot_dimension_numbers<[1], [0], [0], [1], [0, 0, 1, 1], [], []>} : vector<128x128xbf16>, vector<128x128xbf16>, vector<128x128xf32> -> vector<128x128xf32>
    %109 = arith.addf %104, %108 : vector<128x128xf32>
    %c0_118 = arith.constant 0 : index
    %c0_119 = arith.constant 0 : index
    %110 = vector.load %arg10[%c0_118, %c0_119] : memref<1x128xf32, #tpu.memory_space<vmem>>, vector<1x128xf32>
    %111 = vector.broadcast %110 : vector<1x128xf32> to vector<128x128xf32>
    %112 = arith.addf %109, %111 : vector<128x128xf32>
    %cst_120 = arith.constant 0.000000e+00 : f32
    %113 = vector.broadcast %cst_120 : f32 to vector<128x128xf32>
    %114 = arith.maximumf %112, %113 : vector<128x128xf32>
    %115 = vector.extract_strided_slice %114 {offsets = [0, 0], sizes = [12, 128], strides = [1, 1]} : vector<128x128xf32> to vector<12x128xf32>
    %cst_121 = arith.constant dense<0xFF800000> : vector<128xf32>
    %116 = vector.multi_reduction <maximumf>, %115, %cst_121 [0] : vector<12x128xf32> to vector<128xf32>
    %117 = vector.shape_cast %116 : vector<128xf32> to vector<1x128xf32>
    %118 = vector.extract_strided_slice %114 {offsets = [16, 0], sizes = [12, 128], strides = [1, 1]} : vector<128x128xf32> to vector<12x128xf32>
    %cst_122 = arith.constant dense<0xFF800000> : vector<128xf32>
    %119 = vector.multi_reduction <maximumf>, %118, %cst_122 [0] : vector<12x128xf32> to vector<128xf32>
    %120 = vector.shape_cast %119 : vector<128xf32> to vector<1x128xf32>
    %121 = vector.extract_strided_slice %114 {offsets = [32, 0], sizes = [12, 128], strides = [1, 1]} : vector<128x128xf32> to vector<12x128xf32>
    %cst_123 = arith.constant dense<0xFF800000> : vector<128xf32>
    %122 = vector.multi_reduction <maximumf>, %121, %cst_123 [0] : vector<12x128xf32> to vector<128xf32>
    %123 = vector.shape_cast %122 : vector<128xf32> to vector<1x128xf32>
    %124 = vector.extract_strided_slice %114 {offsets = [48, 0], sizes = [12, 128], strides = [1, 1]} : vector<128x128xf32> to vector<12x128xf32>
    %cst_124 = arith.constant dense<0xFF800000> : vector<128xf32>
    %125 = vector.multi_reduction <maximumf>, %124, %cst_124 [0] : vector<12x128xf32> to vector<128xf32>
    %126 = vector.shape_cast %125 : vector<128xf32> to vector<1x128xf32>
    %127 = vector.extract_strided_slice %114 {offsets = [64, 0], sizes = [12, 128], strides = [1, 1]} : vector<128x128xf32> to vector<12x128xf32>
    %cst_125 = arith.constant dense<0xFF800000> : vector<128xf32>
    %128 = vector.multi_reduction <maximumf>, %127, %cst_125 [0] : vector<12x128xf32> to vector<128xf32>
    %129 = vector.shape_cast %128 : vector<128xf32> to vector<1x128xf32>
    %130 = vector.extract_strided_slice %114 {offsets = [80, 0], sizes = [12, 128], strides = [1, 1]} : vector<128x128xf32> to vector<12x128xf32>
    %cst_126 = arith.constant dense<0xFF800000> : vector<128xf32>
    %131 = vector.multi_reduction <maximumf>, %130, %cst_126 [0] : vector<12x128xf32> to vector<128xf32>
    %132 = vector.shape_cast %131 : vector<128xf32> to vector<1x128xf32>
    %133 = vector.extract_strided_slice %114 {offsets = [96, 0], sizes = [12, 128], strides = [1, 1]} : vector<128x128xf32> to vector<12x128xf32>
    %cst_127 = arith.constant dense<0xFF800000> : vector<128xf32>
    %134 = vector.multi_reduction <maximumf>, %133, %cst_127 [0] : vector<12x128xf32> to vector<128xf32>
    %135 = vector.shape_cast %134 : vector<128xf32> to vector<1x128xf32>
    %136 = vector.extract_strided_slice %114 {offsets = [112, 0], sizes = [12, 128], strides = [1, 1]} : vector<128x128xf32> to vector<12x128xf32>
    %cst_128 = arith.constant dense<0xFF800000> : vector<128xf32>
    %137 = vector.multi_reduction <maximumf>, %136, %cst_128 [0] : vector<12x128xf32> to vector<128xf32>
    %138 = vector.shape_cast %137 : vector<128xf32> to vector<1x128xf32>
    %139 = tpu.concatenate %117, %120, %123, %126, %129, %132, %135, %138 in 0 : vector<1x128xf32>, vector<1x128xf32>, vector<1x128xf32>, vector<1x128xf32>, vector<1x128xf32>, vector<1x128xf32>, vector<1x128xf32>, vector<1x128xf32> -> vector<8x128xf32>
    %140 = arith.truncf %139 : vector<8x128xf32> to vector<8x128xbf16>
    %141 = tpu.concatenate %75, %140 in 1 : vector<8x128xbf16>, vector<8x128xbf16> -> vector<8x256xbf16>
    %c0_129 = arith.constant 0 : index
    %c0_130 = arith.constant 0 : index
    %142 = vector.load %arg11[%c0_129, %c0_130] : memref<256x512xbf16, #tpu.memory_space<vmem>>, vector<256x512xbf16>
    %cst_131 = arith.constant dense<0.000000e+00> : vector<8x512xf32>
    %143 = tpu.matmul %141, %142, %cst_131 {dimension_numbers = #tpu.dot_dimension_numbers<[1], [0], [0], [1], [0, 0, 1, 1], [], []>} : vector<8x256xbf16>, vector<256x512xbf16>, vector<8x512xf32> -> vector<8x512xf32>
    %c0_132 = arith.constant 0 : index
    %c0_133 = arith.constant 0 : index
    %144 = vector.load %arg12[%c0_132, %c0_133] : memref<1x512xf32, #tpu.memory_space<vmem>>, vector<1x512xf32>
    %145 = vector.broadcast %144 : vector<1x512xf32> to vector<8x512xf32>
    %146 = arith.addf %143, %145 : vector<8x512xf32>
    %147 = vector.extract_strided_slice %146 {offsets = [0, 0], sizes = [8, 256], strides = [1, 1]} : vector<8x512xf32> to vector<8x256xf32>
    %148 = vector.extract_strided_slice %146 {offsets = [0, 256], sizes = [8, 256], strides = [1, 1]} : vector<8x512xf32> to vector<8x256xf32>
    %cst_134 = arith.constant 0.000000e+00 : f32
    %149 = vector.broadcast %cst_134 : f32 to vector<8x256xf32>
    %150 = arith.maximumf %148, %149 : vector<8x256xf32>
    %151 = arith.truncf %150 : vector<8x256xf32> to vector<8x256xbf16>
    %c0_135 = arith.constant 0 : index
    %c0_136 = arith.constant 0 : index
    %152 = vector.load %arg13[%c0_135, %c0_136] : memref<256x256xbf16, #tpu.memory_space<vmem>>, vector<256x256xbf16>
    %cst_137 = arith.constant dense<0.000000e+00> : vector<8x256xf32>
    %153 = tpu.matmul %151, %152, %cst_137 {dimension_numbers = #tpu.dot_dimension_numbers<[1], [0], [0], [1], [0, 0, 1, 1], [], []>} : vector<8x256xbf16>, vector<256x256xbf16>, vector<8x256xf32> -> vector<8x256xf32>
    %c0_138 = arith.constant 0 : index
    %c0_139 = arith.constant 0 : index
    %154 = vector.load %arg14[%c0_138, %c0_139] : memref<1x256xf32, #tpu.memory_space<vmem>>, vector<1x256xf32>
    %155 = vector.broadcast %154 : vector<1x256xf32> to vector<8x256xf32>
    %156 = arith.addf %153, %155 : vector<8x256xf32>
    %cst_140 = arith.constant 0.000000e+00 : f32
    %157 = vector.broadcast %cst_140 : f32 to vector<8x256xf32>
    %158 = arith.maximumf %156, %157 : vector<8x256xf32>
    %159 = arith.addf %158, %147 : vector<8x256xf32>
    %160 = arith.truncf %159 : vector<8x256xf32> to vector<8x256xbf16>
    %c0_141 = arith.constant 0 : index
    %c0_142 = arith.constant 0 : index
    %161 = vector.load %arg15[%c0_141, %c0_142] : memref<256x128xbf16, #tpu.memory_space<vmem>>, vector<256x128xbf16>
    %cst_143 = arith.constant dense<0.000000e+00> : vector<8x128xf32>
    %162 = tpu.matmul %160, %161, %cst_143 {dimension_numbers = #tpu.dot_dimension_numbers<[1], [0], [0], [1], [0, 0, 1, 1], [], []>} : vector<8x256xbf16>, vector<256x128xbf16>, vector<8x128xf32> -> vector<8x128xf32>
    %c0_144 = arith.constant 0 : index
    %c0_145 = arith.constant 0 : index
    %163 = vector.load %arg16[%c0_144, %c0_145] : memref<1x128xf32, #tpu.memory_space<vmem>>, vector<1x128xf32>
    %164 = vector.broadcast %163 : vector<1x128xf32> to vector<8x128xf32>
    %165 = arith.addf %162, %164 : vector<8x128xf32>
    %cst_146 = arith.constant 0.000000e+00 : f32
    %166 = vector.broadcast %cst_146 : f32 to vector<8x128xf32>
    %167 = arith.maximumf %165, %166 : vector<8x128xf32>
    %168 = arith.truncf %167 : vector<8x128xf32> to vector<8x128xbf16>
    %c0_147 = arith.constant 0 : index
    %c0_148 = arith.constant 0 : index
    %169 = vector.load %arg17[%c0_147, %c0_148] : memref<128x128xbf16, #tpu.memory_space<vmem>>, vector<128x128xbf16>
    %cst_149 = arith.constant dense<0.000000e+00> : vector<8x128xf32>
    %170 = tpu.matmul %168, %169, %cst_149 {dimension_numbers = #tpu.dot_dimension_numbers<[1], [0], [0], [1], [0, 0, 1, 1], [], []>} : vector<8x128xbf16>, vector<128x128xbf16>, vector<8x128xf32> -> vector<8x128xf32>
    %c0_150 = arith.constant 0 : index
    %c0_151 = arith.constant 0 : index
    %171 = vector.load %arg18[%c0_150, %c0_151] : memref<1x128xf32, #tpu.memory_space<vmem>>, vector<1x128xf32>
    %172 = vector.broadcast %171 : vector<1x128xf32> to vector<8x128xf32>
    %173 = arith.addf %170, %172 : vector<8x128xf32>
    %c0_152 = arith.constant 0 : index
    %c0_153 = arith.constant 0 : index
    %174 = vector.load %arg19[%c0_152, %c0_153] : memref<8x128xf32, #tpu.memory_space<vmem>>, vector<8x128xf32>
    tpu.vector_store %arg19[%c0_152, %c0_153], %173 {strides = array<i32>} : memref<8x128xf32, #tpu.memory_space<vmem>>, vector<8x128xf32>,
    return
  }
  func.func @transform_1(%arg0: i32, %arg1: memref<8x16xi32, #tpu.memory_space<smem>>) -> (i32, i32, i32) {
    %c0_i32 = arith.constant 0 : i32
    %c0_i32_0 = arith.constant 0 : i32
    %c0_i32_1 = arith.constant 0 : i32
    %c0_i32_2 = arith.constant 0 : i32
    return %c0_i32, %c0_i32_0, %c0_i32_1 : i32, i32, i32
  }
  func.func @transform_2(%arg0: i32, %arg1: memref<8x16xi32, #tpu.memory_space<smem>>) -> (i32, i32) {
    %c0_i32 = arith.constant 0 : i32
    %c0_i32_0 = arith.constant 0 : i32
    %c0_i32_1 = arith.constant 0 : i32
    return %c0_i32, %c0_i32_0 : i32, i32
  }
  func.func @transform_3(%arg0: i32, %arg1: memref<8x16xi32, #tpu.memory_space<smem>>) -> (i32, i32, i32) {
    %c0_i32 = arith.constant 0 : i32
    %c0_i32_0 = arith.constant 0 : i32
    %c0_i32_1 = arith.constant 0 : i32
    %c0_i32_2 = arith.constant 0 : i32
    return %c0_i32, %c0_i32_0, %c0_i32_1 : i32, i32, i32
  }
  func.func @transform_4(%arg0: i32, %arg1: memref<8x16xi32, #tpu.memory_space<smem>>) -> (i32, i32) {
    %c0_i32 = arith.constant 0 : i32
    %c0_i32_0 = arith.constant 0 : i32
    %c0_i32_1 = arith.constant 0 : i32
    return %c0_i32, %c0_i32_0 : i32, i32
  }
  func.func @transform_5(%arg0: i32, %arg1: memref<8x16xi32, #tpu.memory_space<smem>>) -> (i32, i32, i32) {
    %c0_i32 = arith.constant 0 : i32
    %c0_i32_0 = arith.constant 0 : i32
    %c0_i32_1 = arith.constant 0 : i32
    %c0_i32_2 = arith.constant 0 : i32
    return %c0_i32, %c0_i32_0, %c0_i32_1 : i32, i32, i32
  }
  func.func @transform_6(%arg0: i32, %arg1: memref<8x16xi32, #tpu.memory_space<smem>>) -> (i32, i32) {
    %c0_i32 = arith.constant 0 : i32
    %c0_i32_0 = arith.constant 0 : i32
    %c0_i32_1 = arith.constant 0 : i32
    return %c0_i32, %c0_i32_0 : i32, i32
  }
  func.func @transform_7(%arg0: i32, %arg1: memref<8x16xi32, #tpu.memory_space<smem>>) -> (i32, i32, i32) {
    %c0_i32 = arith.constant 0 : i32
    %c0_i32_0 = arith.constant 0 : i32
    %c0_i32_1 = arith.constant 0 : i32
    %c0_i32_2 = arith.constant 0 : i32
    return %c0_i32, %c0_i32_0, %c0_i32_1 : i32, i32, i32
  }
  func.func @transform_8(%arg0: i32, %arg1: memref<8x16xi32, #tpu.memory_space<smem>>) -> (i32, i32) {
    %c0_i32 = arith.constant 0 : i32
    %c0_i32_0 = arith.constant 0 : i32
    %c0_i32_1 = arith.constant 0 : i32
    return %c0_i32, %c0_i32_0 : i32, i32
  }
  func.func @transform_9(%arg0: i32, %arg1: memref<8x16xi32, #tpu.memory_space<smem>>) -> (i32, i32) {
    %c0_i32 = arith.constant 0 : i32
    %c0_i32_0 = arith.constant 0 : i32
    %c0_i32_1 = arith.constant 0 : i32
    return %c0_i32, %c0_i32_0 : i32, i32
  }
  func.func @transform_10(%arg0: i32, %arg1: memref<8x16xi32, #tpu.memory_space<smem>>) -> (i32, i32) {
    %c0_i32 = arith.constant 0 : i32
    %c0_i32_0 = arith.constant 0 : i32
    %c0_i32_1 = arith.constant 0 : i32
    return %c0_i32, %c0_i32_0 : i32, i32
  }
  func.func @transform_11(%arg0: i32, %arg1: memref<8x16xi32, #tpu.memory_space<smem>>) -> (i32, i32) {
    %c0_i32 = arith.constant 0 : i32
    %c0_i32_0 = arith.constant 0 : i32
    %c0_i32_1 = arith.constant 0 : i32
    return %c0_i32, %c0_i32_0 : i32, i32
  }
  func.func @transform_12(%arg0: i32, %arg1: memref<8x16xi32, #tpu.memory_space<smem>>) -> (i32, i32) {
    %c0_i32 = arith.constant 0 : i32
    %c0_i32_0 = arith.constant 0 : i32
    %c0_i32_1 = arith.constant 0 : i32
    return %c0_i32, %c0_i32_0 : i32, i32
  }
  func.func @transform_13(%arg0: i32, %arg1: memref<8x16xi32, #tpu.memory_space<smem>>) -> (i32, i32) {
    %c0_i32 = arith.constant 0 : i32
    %c0_i32_0 = arith.constant 0 : i32
    %c0_i32_1 = arith.constant 0 : i32
    return %c0_i32, %c0_i32_0 : i32, i32
  }
  func.func @transform_14(%arg0: i32, %arg1: memref<8x16xi32, #tpu.memory_space<smem>>) -> (i32, i32) {
    %c0_i32 = arith.constant 0 : i32
    %c0_i32_0 = arith.constant 0 : i32
    %c0_i32_1 = arith.constant 0 : i32
    return %c0_i32, %c0_i32_0 : i32, i32
  }
  func.func @transform_15(%arg0: i32, %arg1: memref<8x16xi32, #tpu.memory_space<smem>>) -> (i32, i32) {
    %c0_i32 = arith.constant 0 : i32
    %c0_i32_0 = arith.constant 0 : i32
    %c0_i32_1 = arith.constant 0 : i32
    return %c0_i32, %c0_i32_0 : i32, i32
  }
  func.func @transform_16(%arg0: i32, %arg1: memref<8x16xi32, #tpu.memory_space<smem>>) -> (i32, i32) {
    %c0_i32 = arith.constant 0 : i32
    %c0_i32_0 = arith.constant 0 : i32
    %c0_i32_1 = arith.constant 0 : i32
    return %c0_i32, %c0_i32_0 : i32, i32
  }
  func.func @transform_17(%arg0: i32, %arg1: memref<8x16xi32, #tpu.memory_space<smem>>) -> (i32, i32) {
    %c0_i32 = arith.constant 0 : i32
    %c0_i32_0 = arith.constant 0 : i32
    return %arg0, %c0_i32 : i32, i32
  }
}

</mosaic_0001>

<bundles_post_ra>
// kernel: tpu_custom_call.1
= control target key start
LH: loop header
LB: loop body
LE: loop exit
PB: predicated region body
PF: predicated region fallthrough
CT: control target
= control target key end

     0   :  { %s5291_s30 = smov [#allocation5]   ;;  %s6041_s0 = inlined_call_operand.hbm [shape: s32[8,16], index: 0, kind: input, shape index: {}]   ;;  %s6042_s1 = inlined_call_operand.vmem [shape: f32[50,32], index: 1, kind: input, shape index: {}]   ;;  %s6043_s2 = inlined_call_operand.vmem [shape: bf16[2,32,128], index: 2, kind: input, shape index: {}]   ;;  %s6044_s3 = inlined_call_operand.vmem [shape: f32[1,128], index: 3, kind: input, shape index: {}]   ;;  %s6045_s4 = inlined_call_operand.hbm [shape: bf16[2,128,128], index: 4, kind: input, shape index: {}]   ;;  %s6046_s5 = inlined_call_operand.hbm [shape: f32[1,128], index: 5, kind: input, shape index: {}]   ;;  %s6047_s6 = inlined_call_operand.hbm [shape: bf16[3,32,128], index: 6, kind: input, shape index: {}]   ;;  %s6048_s7 = inlined_call_operand.hbm [shape: f32[1,128], index: 7, kind: input, shape index: {}]   ;;  %s6049_s8 = inlined_call_operand.hbm [shape: bf16[3,128,128], index: 8, kind: input, shape index: {}]   ;;  %s6050_s9 = inlined_call_operand.hbm [shape: f32[1,128], index: 9, kind: input, shape index: {}]   ;;  %s6051_s10 = inlined_call_operand.hbm [shape: bf16[256,512], index: 10, kind: input, shape index: {}]   ;;  %s6052_s11 = inlined_call_operand.vmem [shape: f32[1,512], index: 11, kind: input, shape index: {}]   ;;  %s6053_s12 = inlined_call_operand.hbm [shape: bf16[256,256], index: 12, kind: input, shape index: {}]   ;;  %s6054_s13 = inlined_call_operand.vmem [shape: f32[1,256], index: 13, kind: input, shape index: {}]   ;;  %s6055_s14 = inlined_call_operand.hbm [shape: bf16[256,128], index: 14, kind: input, shape index: {}]   ;;  %s6056_s15 = inlined_call_operand.hbm [shape: f32[1,128], index: 15, kind: input, shape index: {}]   ;;  %s6057_s16 = inlined_call_operand.vmem [shape: bf16[128,128], index: 16, kind: input, shape index: {}]   ;;  %s6058_s17 = inlined_call_operand.hbm [shape: f32[1,128], index: 17, kind: input, shape index: {}]   ;;  %s6059_s18 = inlined_call_operand.hbm [shape: f32[8,128], index: 18, kind: output, shape index: {}]  }
   0x1   :  { %6061 = sst [smem:[#allocation49_spill]] %s6041_s0 }
   0x2   :  { %6062 = sst [smem:[#allocation50_spill]] %s6042_s1 }
   0x3   :  { %6063 = sst [smem:[#allocation51_spill]] %s6043_s2 }
   0x4   :  { %6064 = sst [smem:[#allocation52_spill]] %s6052_s11 }
   0x5   :  { %s6065_s29 = sld [smem:[#allocation49_spill]] }
   0xb   :  { %s24_s11 = sshll.u32 %s6065_s29, 4  ;;  %s25_s11 = int_to_ptr.hbm [resolvable:$true] %s24_s11 }
   0xc   :  { %27 = dma.hbm_to_smem %s25_s11, 128, %s5291_s30, [#allocation4] }
   0xd   :  { %5195 = dma.done.wait [#allocation4], 128 }
   0xe   :  { %5196 = vsyncadd [#allocation4], 4294967168 }
   0xf   :  { %30 = sfence }
  0x10   :  { %31 = vsyncpa [#allocation7], 0 }
  0x11   :  { %32 = vsyncpa [#allocation10], 0 }
  0x12   :  { %33 = vsyncpa [#allocation13], 0 }
  0x13   :  { %34 = vsyncpa [#allocation16], 0 }
  0x14   :  { %35 = vsyncpa [#allocation19], 0 }
  0x15   :  { %36 = vsyncpa [#allocation22], 0  ;;  %s60_s1 = sshll.u32 %s6046_s5, 4  ;;  %s61_s1 = int_to_ptr.hbm [resolvable:$true] %s60_s1 }
  0x16   :  { %37 = vsyncpa [#allocation8], 0  ;;  %s5292_s20 = smov [#allocation9]   ;;  %s84_s2 = sshll.u32 %s6048_s7, 4  ;;  %s85_s2 = int_to_ptr.hbm [resolvable:$true] %s84_s2 }
  0x17   :  { %s62_s21 = sshll.u32 %s5292_s20, 4  ;;  %s5293_s23 = smov [#allocation12]   ;;  %s63_s21 = int_to_ptr.vmem [resolvable:$true] %s62_s21 }
  0x18   :  { %65 = dma.hbm_to_vmem [thread:$0]  %s61_s1, 16, %s63_s21, [#allocation10]  }
  0x19   :  { %s86_s24 = sshll.u32 %s5293_s23, 4  ;;  %s108_s27 = sshll.u32 %s6050_s9, 4  ;;  %s87_s24 = int_to_ptr.vmem [resolvable:$true] %s86_s24  ;;  %s109_s27 = int_to_ptr.hbm [resolvable:$true] %s108_s27 }
  0x1a   :  { %89 = dma.hbm_to_vmem [thread:$0]  %s85_s2, 16, %s87_s24, [#allocation13]  }
  0x1b   :  { %s133_s29 = sshll.u32 %s6053_s12, 4  ;;  %s5294_s30 = smov [#allocation15]   ;;  %s134_s29 = int_to_ptr.hbm [resolvable:$true] %s133_s29 }
  0x1c   :  { %s110_s0 = sshll.u32 %s5294_s30, 4  ;;  %s5295_s7 = smov [#allocation18]   ;;  %s111_s0 = int_to_ptr.vmem [resolvable:$true] %s110_s0 }
  0x1d   :  { %113 = dma.hbm_to_vmem [thread:$0]  %s109_s27, 16, %s111_s0, [#allocation16]  }
  0x1e   :  { %s135_s19 = sshll.u32 %s5295_s7, 4  ;;  %s5296_s1 = smov 128   ;;  %s136_s19 = int_to_ptr.vmem [resolvable:$true] %s135_s19 }
  0x1f   :  { %s5297_s20 = smov 8   ;;  %s162_s22 = sshll.u32 %s6056_s15, 4  ;;  %s163_s22 = int_to_ptr.hbm [resolvable:$true] %s162_s22 }
  0x20   :  { %141 = dma.hbm_to_vmem [thread:$0]  %s134_s29, 4096, %s136_s19, [#allocation19], %s5296_s1, %s5296_s1, %s5297_s20  }
  0x21   :  { %s5298_s11 = smov [#allocation21]   ;;  %s46_s24 = sshll.u32 %s6045_s4, 4  ;;  %s47_s24 = int_to_ptr.hbm [resolvable:$true] %s46_s24 }
  0x22   :  { %s164_s2 = sshll.u32 %s5298_s11, 4  ;;  %s5299_s25 = smov [#allocation6]   ;;  %s165_s2 = int_to_ptr.vmem [resolvable:$true] %s164_s2 }
  0x23   :  { %167 = dma.hbm_to_vmem [thread:$0]  %s163_s22, 16, %s165_s2, [#allocation22]  }
  0x24   :  { %s48_s26 = sshll.u32 %s5299_s25, 4  ;;  %s5300_s27 = smov 64   ;;  %s49_s26 = int_to_ptr.vmem [resolvable:$true] %s48_s26 }
  0x25   :  { %s5301_s5 = smov 4   ;;  %s70_s29 = sshll.u32 %s6047_s6, 4  ;;  %s71_s29 = int_to_ptr.hbm [resolvable:$true] %s70_s29 }
  0x26   :  { %54 = dma.hbm_to_vmem [thread:$0]  %s47_s24, 2048, %s49_s26, [#allocation7], %s5300_s27, %s5300_s27, %s5301_s5  }
  0x27   :  { %s5302_s30 = smov [#allocation11]   ;;  %s94_s19 = sshll.u32 %s6049_s8, 4  ;;  %s95_s19 = int_to_ptr.hbm [resolvable:$true] %s94_s19 }
  0x28   :  { %s72_s0 = sshll.u32 %s5302_s30, 4  ;;  %s5303_s1 = smov [#allocation14]   ;;  %s73_s0 = int_to_ptr.vmem [resolvable:$true] %s72_s0 }
  0x29   :  { %78 = dma.hbm_to_vmem [thread:$0]  %s71_s29, 768, %s73_s0, [#allocation10], %s5300_s27, %s5300_s27, %s5301_s5  }
  0x2a   :  { %s96_s20 = sshll.u32 %s5303_s1, 4  ;;  %s118_s22 = sshll.u32 %s6051_s10, 4  ;;  %s97_s20 = int_to_ptr.vmem [resolvable:$true] %s96_s20  ;;  %s119_s22 = int_to_ptr.hbm [resolvable:$true] %s118_s22 }
  0x2b   :  { %102 = dma.hbm_to_vmem [thread:$0]  %s95_s19, 3072, %s97_s20, [#allocation13], %s5300_s27, %s5300_s27, %s5301_s5  }
  0x2c   :  { %s5304_s6 = smov [#allocation17]   ;;  %s148_s12 = sshll.u32 %s6055_s14, 4  ;;  %s149_s12 = int_to_ptr.hbm [resolvable:$true] %s148_s12 }
  0x2d   :  { %s120_s11 = sshll.u32 %s5304_s6, 4  ;;  %s5305_s23 = smov 256   ;;  %s121_s11 = int_to_ptr.vmem [resolvable:$true] %s120_s11 }
  0x2e   :  { %s5306_s24 = smov 16   ;;  %s5307_s25 = smov [#allocation20]  }
  0x2f   :  { %126 = dma.hbm_to_vmem [thread:$0]  %s119_s22, 8192, %s121_s11, [#allocation16], %s5305_s23, %s5305_s23, %s5306_s24  }
  0x30   :  { %s150_s26 = sshll.u32 %s5307_s25, 4  ;;  %s175_s28 = sshll.u32 %s6058_s17, 4  ;;  %s151_s26 = int_to_ptr.vmem [resolvable:$true] %s150_s26  ;;  %s176_s28 = int_to_ptr.hbm [resolvable:$true] %s175_s28 }
  0x31   :  { %156 = dma.hbm_to_vmem [thread:$0]  %s149_s12, 2048, %s151_s26, [#allocation19], %s5300_s27, %s5300_s27, %s5301_s5  }
  0x32   :  { %s5308_s29 = smov [#allocation23]  }
  0x33   :  { %s177_s30 = sshll.u32 %s5308_s29, 4  ;;  %s178_s30 = int_to_ptr.vmem [resolvable:$true] %s177_s30 }
  0x34   :  { %180 = dma.hbm_to_vmem [thread:$0]  %s176_s28, 16, %s178_s30, [#allocation22]  }
  0x35   :  { %5197 = dma.done.wait [#allocation7], 2048  }
  0x36   :  { %5198 = vsyncadd [#allocation7], 4294965248 }
  0x37   :  { %5199 = dma.done.wait [#allocation10], 784  }
  0x38   :  { %5200 = vsyncadd [#allocation10], 4294966512 }
  0x39   :  { %5201 = dma.done.wait [#allocation13], 3088  }
  0x3a   :  { %5202 = vsyncadd [#allocation13], 4294964208 }
  0x3b   :  { %5203 = dma.done.wait [#allocation16], 8208  }
  0x3c   :  { %5204 = vsyncadd [#allocation16], 4294959088 }
  0x3d   :  { %5205 = dma.done.wait [#allocation19], 6144  }
  0x3e   :  { %5206 = vsyncadd [#allocation19], 4294961152 }
  0x3f   :  { %5207 = dma.done.wait [#allocation22], 32  }
  0x40   :  { %5208 = vsyncadd [#allocation22], 4294967264  ;;  %vm227_vm0 = vcmask 261120   ;;  %v5309_v0 = vmov 0.0   ;;  %s5227_s14 = smov 0  }
  0x41   :  { %228 = vst.msk [vmem:[#allocation2 + $0x80] sm:$0xff] %vm227_vm0, %v5309_v0 }
  0x42   :  { %229 = vst.msk [vmem:[#allocation2 + $0x88] sm:$0xff] %vm227_vm0, %v5309_v0 }
  0x43 LB: > { %s236_s17 = sshra.s32 %s5229_s14, 7  ;;  %s241_s27 = sand.u32 127, %s5229_s14  ;;  %s5229_s14 = sphi %s5227_s14, %s235_s14  }
  0x44   : > { %s3748_s5 = sshll.u32 %s236_s17, 7  ;;  %s6066_s1 = sld [smem:[#allocation50_spill]] }
  0x45   : > { %s242_s0 = sadd.s32 %s3748_s5, %s241_s27  ;;  %s245_s21 = scalar_lea.vmem [#allocation2], %s5229_s14 }
  0x46   : > { %s243_s4 = sld [smem:[#allocation5 + %s242_s0]] }
  0x4c   : > { %s244_s20 = scalar_lea.vmem %s6066_s1, %s243_s4 }
  0x4d   : > { %v260_v1 = vld [vmem:[%s244_s20] sm:$0x1] }
  0x4e   : > { %261 = vst [vmem:[%s245_s21] sm:$0x1] %v260_v1 }
  0x4f   : > { %279 = vsyncadd [#allocation3], 16  ;;  %s235_s14 = sadd.s32 1, %s5229_s14  }
  0x50   : > { %p232_p0 = scmp.ge.s32.totalorder %s235_s14, 16  }
  0x51   :  { %s5231_s9 = smov (%p232_p0), 0  }
  0x52   :  { %234 = sbr.rel (!%p232_p0) target bundleno = 67 (0x43), region = 534 }
  0x57 LB: > { %s287_s22 = sshra.s32 %s5233_s9, 7  ;;  %s292_s6 = sand.u32 127, %s5233_s9  ;;  %s5233_s9 = sphi %s5231_s9, %s285_s9  }
  0x58   : > { %s4493_s11 = sshll.u32 %s287_s22, 7  ;;  %s6067_s25 = sld [smem:[#allocation50_spill]] }
  0x59   : > { %s4494_s8 = sadd.s32 128, %s4493_s11  ;;  %s3616_s10 = scalar_lea.vmem [#allocation2], %s5233_s9 }
  0x5a   : > { %s293_s2 = sadd.s32 %s4494_s8, %s292_s6 }
  0x5b   : > { %s294_s12 = sld [smem:[#allocation5 + %s293_s2]] }
  0x61   : > { %s296_s26 = scalar_lea.vmem %s6067_s25, %s294_s12 }
  0x62   : > { %v312_v2 = vld [vmem:[%s296_s26] sm:$0x1] }
  0x63   : > { %3750 = vst [vmem:[%s3616_s10 + $0x10] sm:$0x1] %v312_v2 }
  0x64   : > { %331 = vsyncadd [#allocation3], 16  ;;  %s285_s9 = sadd.s32 1, %s5233_s9  }
  0x65   : > { %p282_p1 = scmp.ge.s32.totalorder %s285_s9, 16  }
  0x66   :  { %s5235_s15 = smov (%p282_p1), 0  }
  0x67   :  { %284 = sbr.rel (!%p282_p1) target bundleno = 87 (0x57), region = 545 }
  0x6c LB: > { %s339_s28 = sshra.s32 %s5237_s15, 7  ;;  %s344_s29 = sand.u32 127, %s5237_s15  ;;  %s5237_s15 = sphi %s5235_s15, %s337_s15  }
  0x6d   : > { %s4495_s30 = sshll.u32 %s339_s28, 7  ;;  %s6068_s4 = sld [smem:[#allocation50_spill]] }
  0x6e   : > { %s4496_s14 = sadd.s32 256, %s4495_s30  ;;  %s3619_s19 = scalar_lea.vmem [#allocation2], %s5237_s15 }
  0x6f   : > { %s345_s17 = sadd.s32 %s4496_s14, %s344_s29 }
  0x70   : > { %s346_s27 = sld [smem:[#allocation5 + %s345_s17]] }
  0x76   : > { %s348_s7 = scalar_lea.vmem %s6068_s4, %s346_s27 }
  0x77   : > { %v364_v3 = vld [vmem:[%s348_s7] sm:$0x1] }
  0x78   : > { %3752 = vst [vmem:[%s3619_s19 + $0x20] sm:$0x1] %v364_v3 }
  0x79   : > { %383 = vsyncadd [#allocation3], 16  ;;  %s337_s15 = sadd.s32 1, %s5237_s15  }
  0x7a   : > { %p334_p2 = scmp.ge.s32.totalorder %s337_s15, 16  }
  0x7b   :  { %s5239_s1 = smov (%p334_p2), 0  }
  0x7c   :  { %336 = sbr.rel (!%p334_p2) target bundleno = 108 (0x6c), region = 556 }
  0x81 LB: > { %s391_s20 = sshra.s32 %s5241_s1, 7  ;;  %s396_s21 = sand.u32 127, %s5241_s1  ;;  %s5241_s1 = sphi %s5239_s1, %s389_s1  }
  0x82   : > { %s4497_s9 = sshll.u32 %s391_s20, 7  ;;  %s6069_s12 = sld [smem:[#allocation50_spill]] }
  0x83   : > { %s4498_s22 = sadd.s32 384, %s4497_s9  ;;  %s3622_s24 = scalar_lea.vmem [#allocation2], %s5241_s1 }
  0x84   : > { %s397_s6 = sadd.s32 %s4498_s22, %s396_s21 }
  0x85   : > { %s398_s11 = sld [smem:[#allocation5 + %s397_s6]] }
  0x8b   : > { %s400_s23 = scalar_lea.vmem %s6069_s12, %s398_s11 }
  0x8c   : > { %v416_v4 = vld [vmem:[%s400_s23] sm:$0x1] }
  0x8d   : > { %3754 = vst [vmem:[%s3622_s24 + $0x30] sm:$0x1] %v416_v4 }
  0x8e   : > { %435 = vsyncadd [#allocation3], 16  ;;  %s389_s1 = sadd.s32 1, %s5241_s1  }
  0x8f   : > { %p386_p3 = scmp.ge.s32.totalorder %s389_s1, 16  }
  0x90   :  { %s5243_s25 = smov (%p386_p3), 0  }
  0x91   :  { %388 = sbr.rel (!%p386_p3) target bundleno = 129 (0x81), region = 567 }
  0x96 LB: > { %s443_s26 = sshra.s32 %s5245_s25, 7  ;;  %s448_s10 = sand.u32 127, %s5245_s25  ;;  %s5245_s25 = sphi %s5243_s25, %s441_s25  }
  0x97   : > { %s4499_s15 = sshll.u32 %s443_s26, 7  ;;  %s6070_s27 = sld [smem:[#allocation50_spill]] }
  0x98   : > { %s4500_s28 = sadd.s32 512, %s4499_s15  ;;  %s3625_s0 = scalar_lea.vmem [#allocation2], %s5245_s25 }
  0x99   : > { %s449_s29 = sadd.s32 %s4500_s28, %s448_s10 }
  0x9a   : > { %s450_s30 = sld [smem:[#allocation5 + %s449_s29]] }
  0xa0   : > { %s452_s5 = scalar_lea.vmem %s6070_s27, %s450_s30 }
  0xa1   : > { %v468_v5 = vld [vmem:[%s452_s5] sm:$0x1] }
  0xa2   : > { %3756 = vst [vmem:[%s3625_s0 + $0x40] sm:$0x1] %v468_v5 }
  0xa3   : > { %487 = vsyncadd [#allocation3], 16  ;;  %s441_s25 = sadd.s32 1, %s5245_s25  }
  0xa4   : > { %p438_p4 = scmp.ge.s32.totalorder %s441_s25, 16  }
  0xa5   :  { %s5247_s4 = smov (%p438_p4), 0  }
  0xa6   :  { %440 = sbr.rel (!%p438_p4) target bundleno = 150 (0x96), region = 578 }
  0xab LB: > { %s495_s7 = sshra.s32 %s5249_s4, 7  ;;  %s500_s19 = sand.u32 127, %s5249_s4  ;;  %s5249_s4 = sphi %s5247_s4, %s493_s4  }
  0xac   : > { %s4501_s1 = sshll.u32 %s495_s7, 7  ;;  %s6071_s11 = sld [smem:[#allocation50_spill]] }
  0xad   : > { %s4502_s20 = sadd.s32 640, %s4501_s1  ;;  %s3628_s2 = scalar_lea.vmem [#allocation2], %s5249_s4 }
  0xae   : > { %s501_s21 = sadd.s32 %s4502_s20, %s500_s19 }
  0xaf   : > { %s502_s9 = sld [smem:[#allocation5 + %s501_s21]] }
  0xb5   : > { %s504_s8 = scalar_lea.vmem %s6071_s11, %s502_s9 }
  0xb6   : > { %v520_v6 = vld [vmem:[%s504_s8] sm:$0x1] }
  0xb7   : > { %3758 = vst [vmem:[%s3628_s2 + $0x50] sm:$0x1] %v520_v6 }
  0xb8   : > { %539 = vsyncadd [#allocation3], 16  ;;  %s493_s4 = sadd.s32 1, %s5249_s4  }
  0xb9   : > { %p490_p5 = scmp.ge.s32.totalorder %s493_s4, 16  }
  0xba   :  { %s5251_s12 = smov (%p490_p5), 0  }
  0xbb   :  { %492 = sbr.rel (!%p490_p5) target bundleno = 171 (0xab), region = 589 }
  0xc0 LB: > { %s547_s23 = sshra.s32 %s5253_s12, 7  ;;  %s552_s24 = sand.u32 127, %s5253_s12  ;;  %s5253_s12 = sphi %s5251_s12, %s545_s12  }
  0xc1   : > { %s4503_s25 = sshll.u32 %s547_s23, 7  ;;  %s6072_s30 = sld [smem:[#allocation50_spill]] }
  0xc2   : > { %s4504_s26 = sadd.s32 768, %s4503_s25  ;;  %s3631_s17 = scalar_lea.vmem [#allocation2], %s5253_s12 }
  0xc3   : > { %s553_s10 = sadd.s32 %s4504_s26, %s552_s24 }
  0xc4   : > { %s554_s15 = sld [smem:[#allocation5 + %s553_s10]] }
  0xca   : > { %s556_s14 = scalar_lea.vmem %s6072_s30, %s554_s15 }
  0xcb   : > { %v572_v7 = vld [vmem:[%s556_s14] sm:$0x1] }
  0xcc   : > { %3760 = vst [vmem:[%s3631_s17 + $0x60] sm:$0x1] %v572_v7 }
  0xcd   : > { %591 = vsyncadd [#allocation3], 16  ;;  %s545_s12 = sadd.s32 1, %s5253_s12  }
  0xce   : > { %p542_p6 = scmp.ge.s32.totalorder %s545_s12, 16  }
  0xcf   :  { %s5255_s27 = smov (%p542_p6), 0  }
  0xd0   :  { %544 = sbr.rel (!%p542_p6) target bundleno = 192 (0xc0), region = 600 }
  0xd5 LB: > { %s599_s5 = sshra.s32 %s5257_s27, 7  ;;  %s604_s0 = sand.u32 127, %s5257_s27  ;;  %s5257_s27 = sphi %s5255_s27, %s597_s27  }
  0xd6   : > { %s4505_s4 = sshll.u32 %s599_s5, 7  ;;  %s6073_s9 = sld [smem:[#allocation50_spill]] }
  0xd7   : > { %s4506_s7 = sadd.s32 896, %s4505_s4  ;;  %s3634_s6 = scalar_lea.vmem [#allocation2], %s5257_s27 }
  0xd8   : > { %s605_s19 = sadd.s32 %s4506_s7, %s604_s0 }
  0xd9   : > { %s606_s1 = sld [smem:[#allocation5 + %s605_s19]] }
  0xdf   : > { %s608_s22 = scalar_lea.vmem %s6073_s9, %s606_s1 }
  0xe0   : > { %v624_v8 = vld [vmem:[%s608_s22] sm:$0x1] }
  0xe1   : > { %3762 = vst [vmem:[%s3634_s6 + $0x70] sm:$0x1] %v624_v8 }
  0xe2   : > { %643 = vsyncadd [#allocation3], 16  ;;  %s597_s27 = sadd.s32 1, %s5257_s27  }
  0xe3   : > { %p594_p7 = scmp.ge.s32.totalorder %s597_s27, 16  }
  0xe4   :  { %s5259_s11 = smov (%p594_p7), 0  }
  0xe5   :  { %596 = sbr.rel (!%p594_p7) target bundleno = 213 (0xd5), region = 611 }
  0xea LB: > { %5209 = dma.done.wait [#allocation3], 16  ;;  %s5261_s11 = sphi %s5259_s11, %s649_s11  }
  0xeb   : > { %5210 = vsyncadd [#allocation3], 4294967280  ;;  %s649_s11 = sadd.s32 1, %s5261_s11  }
  0xec   : > { %p646_p8 = scmp.ge.s32.totalorder %s649_s11, 16  }
  0xed   :  { %s5263_s8 = smov (%p646_p8), 0  }
  0xee   :  { %648 = sbr.rel (!%p646_p8) target bundleno = 234 (0xea), region = 622 }
  0xf3 LB: > { %5211 = dma.done.wait [#allocation3], 16  ;;  %s5265_s8 = sphi %s5263_s8, %s665_s8  }
  0xf4   : > { %5212 = vsyncadd [#allocation3], 4294967280  ;;  %s665_s8 = sadd.s32 1, %s5265_s8  }
  0xf5   : > { %p662_p9 = scmp.ge.s32.totalorder %s665_s8, 16  }
  0xf6   :  { %s5267_s2 = smov (%p662_p9), 0  }
  0xf7   :  { %664 = sbr.rel (!%p662_p9) target bundleno = 243 (0xf3), region = 633 }
  0xfc LB: > { %5213 = dma.done.wait [#allocation3], 16  ;;  %s5269_s2 = sphi %s5267_s2, %s682_s2  }
  0xfd   : > { %5214 = vsyncadd [#allocation3], 4294967280  ;;  %s682_s2 = sadd.s32 1, %s5269_s2  }
  0xfe   : > { %p679_p10 = scmp.ge.s32.totalorder %s682_s2, 16  }
  0xff   :  { %s5271_s12 = smov (%p679_p10), 0  }
 0x100   :  { %681 = sbr.rel (!%p679_p10) target bundleno = 252 (0xfc), region = 644 }
 0x105 LB: > { %5215 = dma.done.wait [#allocation3], 16  ;;  %s5273_s12 = sphi %s5271_s12, %s699_s12  }
 0x106   : > { %5216 = vsyncadd [#allocation3], 4294967280  ;;  %s699_s12 = sadd.s32 1, %s5273_s12  }
 0x107   : > { %p696_p11 = scmp.ge.s32.totalorder %s699_s12, 16  }
 0x108   :  { %s5275_s23 = smov (%p696_p11), 0  }
 0x109   :  { %698 = sbr.rel (!%p696_p11) target bundleno = 261 (0x105), region = 655 }
 0x10e LB: > { %5217 = dma.done.wait [#allocation3], 16  ;;  %s5277_s23 = sphi %s5275_s23, %s716_s23  }
 0x10f   : > { %5218 = vsyncadd [#allocation3], 4294967280  ;;  %s716_s23 = sadd.s32 1, %s5277_s23  }
 0x110   : > { %p713_p12 = scmp.ge.s32.totalorder %s716_s23, 16  }
 0x111   :  { %s5279_s24 = smov (%p713_p12), 0  }
 0x112   :  { %715 = sbr.rel (!%p713_p12) target bundleno = 270 (0x10e), region = 666 }
 0x117 LB: > { %5219 = dma.done.wait [#allocation3], 16  ;;  %s5281_s24 = sphi %s5279_s24, %s733_s24  }
 0x118   : > { %5220 = vsyncadd [#allocation3], 4294967280  ;;  %s733_s24 = sadd.s32 1, %s5281_s24  }
 0x119   : > { %p730_p13 = scmp.ge.s32.totalorder %s733_s24, 16  }
 0x11a   :  { %s5283_s25 = smov (%p730_p13), 0  }
 0x11b   :  { %732 = sbr.rel (!%p730_p13) target bundleno = 279 (0x117), region = 677 }
 0x120 LB: > { %5221 = dma.done.wait [#allocation3], 16  ;;  %s5285_s25 = sphi %s5283_s25, %s750_s25  }
 0x121   : > { %5222 = vsyncadd [#allocation3], 4294967280  ;;  %s750_s25 = sadd.s32 1, %s5285_s25  }
 0x122   : > { %p747_p0 = scmp.ge.s32.totalorder %s750_s25, 16  }
 0x123   :  { %s5287_s26 = smov (%p747_p0), 0  }
 0x124   :  { %749 = sbr.rel (!%p747_p0) target bundleno = 288 (0x120), region = 688 }
 0x129 LB: > { %5223 = dma.done.wait [#allocation3], 16  ;;  %s5289_s26 = sphi %s5287_s26, %s767_s26  }
 0x12a   : > { %5224 = vsyncadd [#allocation3], 4294967280  ;;  %s767_s26 = sadd.s32 1, %s5289_s26  }
 0x12b   : > { %p764_p1 = scmp.ge.s32.totalorder %s767_s26, 16  }
 0x12c   :  { %s6074_s28 = sld [smem:[#allocation51_spill]] (%p764_p1)  ;;  %v779_v12 = vld [vmem:[#allocation2] sm:$0xff] (%p764_p1)  ;;  %v780_v13 = vld [vmem:[#allocation2 + $0x8] sm:$0xff] (%p764_p1)  ;;  %v781_v17 = vld [vmem:[#allocation2 + $0x10] sm:$0xff] (%p764_p1)  ;;  %vm869_vm1 = vsmask.f32 (%p764_p1), 7424 }
 0x12d   :  { %766 = sbr.rel (!%p764_p1) target bundleno = 297 (0x129), region = 699  ;;  %v797_v14 = vpack.c.bf16 (%p764_p1), %v779_v12, %v779_v12  ;;  %v798_v15 = vpack.c.bf16 (%p764_p1), %v780_v13, %v780_v13  ;;  %v782_v18 = vld [vmem:[#allocation2 + $0x18] sm:$0xff] (%p764_p1)  ;;  %v799_v19 = vpack.c.bf16 (%p764_p1), %v781_v17, %v781_v17  ;;  %v783_v21 = vld [vmem:[#allocation2 + $0x20] sm:$0xff] (%p764_p1)  ;;  %v784_v22 = vld [vmem:[#allocation2 + $0x28] sm:$0xff] (%p764_p1)  ;;  %vm1639_vm2 = vcmask (%p764_p1), 1046528   ;;  %s6075_s19 = sld [smem:[#allocation52_spill]] (%p764_p1) }
 0x12e   :  { %v800_v20 = vpack.c.bf16 (%p764_p1), %v782_v18, %v782_v18  ;;  %v801_v31 = vpack.c.bf16 (%p764_p1), %v783_v21, %v783_v21  ;;  %v802_v32 = vpack.c.bf16 (%p764_p1), %v784_v22, %v784_v22  ;;  %v785_v43 = vld [vmem:[#allocation2 + $0x30] sm:$0xff] (%p764_p1)  ;;  %v786_v44 = vld [vmem:[#allocation2 + $0x38] sm:$0xff] (%p764_p1)  ;;  %v787_v55 = vld [vmem:[#allocation2 + $0x40] sm:$0xff] (%p764_p1)  ;;  %vm1563_vm3 = vcmask (%p764_p1), 1045504   ;;  %s5310_s29 = smov (%p764_p1), [#allocation24]   ;;  %s3592_s27 = sshll.u32 (%p764_p1), %s6059_s18, 4  ;;  %s3593_s27 = int_to_ptr.hbm [resolvable:$true] %s3592_s27 }
 0x12f   :  { %v842_v23 = vunpack.c.l.b16 (%p764_p1), %v797_v14  ;;  %v843_v24 = vunpack.c.l.b16 (%p764_p1), %v798_v15  ;;  %v844_v25 = vunpack.c.l.b16 (%p764_p1), %v799_v19  ;;  %v803_v47 = vpack.c.bf16 (%p764_p1), %v785_v43, %v785_v43  ;;  %v788_v56 = vld [vmem:[#allocation2 + $0x48] sm:$0xff] (%p764_p1)  ;;  %v789_v3 = vld [vmem:[#allocation2 + $0x50] sm:$0xff] (%p764_p1)  ;;  %v790_v4 = vld [vmem:[#allocation2 + $0x58] sm:$0xff] (%p764_p1)  ;;  %s3590_s30 = sshll.u32 (%p764_p1), %s5310_s29, 4  ;;  %s3591_s30 = int_to_ptr.vmem [resolvable:$true] %s3590_s30 }
 0x130   :  { %v845_v26 = vunpack.c.l.b16 (%p764_p1), %v800_v20  ;;  %v846_v37 = vunpack.c.l.b16 (%p764_p1), %v801_v31  ;;  %v847_v38 = vunpack.c.l.b16 (%p764_p1), %v802_v32  ;;  %v804_v48 = vpack.c.bf16 (%p764_p1), %v786_v44, %v786_v44  ;;  %v791_v15 = vld [vmem:[#allocation2 + $0x60] sm:$0xff] (%p764_p1) }
 0x131   :  { %v5492_v27 = vpack.c.b16 (%p764_p1), %v843_v24, %v842_v23  ;;  %v848_v50 = vunpack.c.l.b16 (%p764_p1), %v803_v47  ;;  %v805_v59 = vpack.c.bf16 (%p764_p1), %v787_v55, %v787_v55  ;;  %v806_v60 = vpack.c.bf16 (%p764_p1), %v788_v56, %v788_v56  ;;  %v4516_v47 = vld [vmem:[#allocation6 + $0x28] sm:$0xff] (%p764_p1) }
 0x132   :  { %v4508_v9 = vld [vmem:[%s6074_s28 + $0x8] sm:$0xff]  ;;  %v4510_v10 = vld [vmem:[%s6074_s28 + $0x18] sm:$0xff]  ;;  %v4507_v11 = vld [vmem:[%s6074_s28] sm:$0xff]  ;;  %v5494_v28 = vpack.c.b16 %v845_v26, %v844_v25  ;;  %v5506_v40 = vpack.c.b16 %v847_v38, %v846_v37  ;;  %v849_v51 = vunpack.c.l.b16 %v804_v48  ;;  %v807_v7 = vpack.c.bf16 %v789_v3, %v789_v3 }
 0x133   :  { %1071 = vmatpush.bf16.msra.mxu1 %v4508_v9  ;;  %986 = vmatpush.bf16.msra.mxu0 %v4510_v10  ;;  %v4509_v16 = vld [vmem:[%s6074_s28 + $0x10] sm:$0xff]  ;;  %v871_v29 = vshrl.u32 %v5492_v27, 16  ;;  %v873_v30 = vshll.u32 %v5492_v27, 16  ;;  %v850_v62 = vunpack.c.l.b16 %v805_v59  ;;  %v851_v63 = vunpack.c.l.b16 %v806_v60  ;;  %v4518_v38 = vld [vmem:[#allocation6 + $0x38] sm:$0xff] }
 0x134   :  { %v878_v33 = vshll.u32 %v5494_v28, 16  ;;  %v882_v41 = vshrl.u32 %v5494_v28, 16  ;;  %v886_v42 = vshll.u32 %v5506_v40, 16  ;;  %v5517_v52 = vpack.c.b16 %v849_v51, %v848_v50  ;;  %1478 = vmatpush.bf16.msra.mxu3 %v4518_v38  ;;  %v4514_v59 = vld [vmem:[#allocation6 + $0x18] sm:$0xff] }
 0x135   :  { %v875_v34 = vrot.slane %v873_v30, 1  ;;  %v890_v53 = vshrl.u32 %v5506_v40, 16  ;;  %v5528_v0 = vpack.c.b16 %v851_v63, %v850_v62  ;;  %v808_v8 = vpack.c.bf16 %v790_v4, %v790_v4  ;;  %v794_v30 = vld [vmem:[#allocation2 + $0x78] sm:$0xff]  ;;  %v4513_v63 = vld [vmem:[#allocation6 + $0x10] sm:$0xff] }
 0x136   :  { %v880_v35 = vrot.slane %v878_v33, 1  ;;  %v888_v46 = vrot.slane %v886_v42, 1  ;;  %v894_v54 = vshll.u32 %v5517_v52, 16  ;;  %v898_v1 = vshrl.u32 %v5517_v52, 16  ;;  %v4517_v42 = vld [vmem:[#allocation6 + $0x30] sm:$0xff]  ;;  %v4512_v4 = vld [vmem:[#allocation6 + $0x8] sm:$0xff] }
 0x137   :  { %1072 = vmatpush.bf16.msra.mxu1 %v4507_v11  ;;  %987 = vmatpush.bf16.msra.mxu0 %v4509_v16  ;;  %v876_v36 = vor.u32 %v875_v34, %v871_v29  ;;  %v902_v2 = vshll.u32 %v5528_v0, 16  ;;  %v852_v10 = vunpack.c.l.b16 %v807_v7  ;;  %v853_v11 = vunpack.c.l.b16 %v808_v8  ;;  %v792_v16 = vld [vmem:[#allocation2 + $0x68] sm:$0xff]  ;;  %v793_v29 = vld [vmem:[#allocation2 + $0x70] sm:$0xff]  ;;  %v4524_v8 = vld [vmem:[#allocation6 + $0x68] sm:$0xff] }
 0x138   :  { %v884_v45 = vor.u32 %v882_v41, %v880_v35  ;;  %v892_v57 = vor.u32 %v890_v53, %v888_v46  ;;  %v896_v58 = vrot.slane %v894_v54, 1  ;;  %v906_v13 = vshrl.u32 %v5528_v0, 16  ;;  %1479 = vmatpush.bf16.msra.mxu3 %v4517_v42  ;;  %v4511_v7 = vld [vmem:[#allocation6] sm:$0xff] }
 0x139   :  { %v5502_v39 = vsel %vm869_vm1, %v876_v36, %v880_v35  ;;  %v904_v6 = vrot.slane %v902_v2, 1  ;;  %v5539_v12 = vpack.c.b16 %v853_v11, %v852_v10  ;;  %v809_v19 = vpack.c.bf16 %v791_v15, %v791_v15  ;;  %v4523_v10 = vld [vmem:[#allocation6 + $0x60] sm:$0xff] }
 0x13a   :  { %3792 = vmatmul.msk.bf16.vlgmr.msra.gmra.mxu1 %vm227_vm0, %v5492_v27  ;;  %3775 = vmatmul.msk.bf16.vlgmr.msra.gmra.mxu0 %vm227_vm0, %v5502_v39  ;;  %v5513_v49 = vsel %vm869_vm1, %v884_v45, %v888_v46  ;;  %v5524_v61 = vsel %vm869_vm1, %v892_v57, %v896_v58  ;;  %v900_v5 = vor.u32 %v898_v1, %v896_v58  ;;  %v795_v45 = vld [vmem:[#allocation2 + $0x80] sm:$0xff]  ;;  %v796_v46 = vld [vmem:[#allocation2 + $0x88] sm:$0xff]  ;;  %v4515_v57 = vld [vmem:[#allocation6 + $0x20] sm:$0xff]  ;;  %vm1628_vm4 = vcmask 1040384  }
 0x13b   :  { %v910_v14 = vshll.u32 %v5539_v12, 16  ;;  %v908_v17 = vor.u32 %v906_v13, %v904_v6  ;;  %v810_v20 = vpack.c.bf16 %v792_v16, %v792_v16  ;;  %v854_v22 = vunpack.c.l.b16 %v809_v19  ;;  %v4526_v1 = vld [vmem:[#allocation6 + $0x78] sm:$0xff]  ;;  %v4521_v16 = vld [vmem:[#allocation6 + $0x50] sm:$0xff] }
 0x13c   :  { %v5535_v9 = vsel %vm869_vm1, %v900_v5, %v904_v6  ;;  %v914_v25 = vshrl.u32 %v5539_v12, 16  ;;  %v811_v33 = vpack.c.bf16 %v793_v29, %v793_v29  ;;  %v812_v34 = vpack.c.bf16 %v794_v30, %v794_v30  ;;  %1480 = vmatpush.bf16.msra.mxu3 %v4516_v47  ;;  %1373 = vmatpush.bf16.msra.mxu2 %v4526_v1  ;;  %v4525_v5 = vld [vmem:[#allocation6 + $0x70] sm:$0xff]  ;;  %v4522_v13 = vld [vmem:[#allocation6 + $0x58] sm:$0xff] }
 0x13d   :  { %v912_v18 = vrot.slane %v910_v14, 1  ;;  %v855_v23 = vunpack.c.l.b16 %v810_v20  ;;  %v813_v51 = vpack.c.bf16 %v795_v45, %v795_v45  ;;  %v814_v53 = vpack.c.bf16 %v796_v46, %v796_v46  ;;  %v5593_v20 = vld [vmem:[%s6044_s3] ss:$0 sm:$0xff]  ;;  %v4530_v45 = vld [vmem:[#allocation11 + $0x18] sm:$0xff] }
 0x13e   :  { %v856_v36 = vunpack.c.l.b16 %v811_v33  ;;  %v857_v37 = vunpack.c.l.b16 %v812_v34  ;;  %v4528_v46 = vld [vmem:[#allocation11 + $0x8] sm:$0xff]  ;;  %1669 = vmatpush.bf16.msrb.mxu0 %v4530_v45  ;;  %vm1630_vm5 = vcmask 1041408   ;;  %vm1632_vm6 = vcmask 1042432  }
 0x13f   :  { %v5546_v21 = vsel %vm869_vm1, %v908_v17, %v912_v18  ;;  %v5550_v24 = vpack.c.b16 %v855_v23, %v854_v22  ;;  %v916_v31 = vor.u32 %v914_v25, %v912_v18  ;;  %v858_v55 = vunpack.c.l.b16 %v813_v51  ;;  %v4520_v22 = vld [vmem:[#allocation6 + $0x48] sm:$0xff]  ;;  %1734 = vmatpush.bf16.msrb.mxu1 %v4528_v46 }
 0x140   :  { %v5561_v41 = vpack.c.b16 %v857_v37, %v856_v36  ;;  %v859_v56 = vunpack.c.l.b16 %v814_v53  ;;  %1481 = vmatpush.bf16.msra.mxu3 %v4515_v57  ;;  %1374 = vmatpush.bf16.msra.mxu2 %v4525_v5  ;;  %vm1634_vm7 = vcmask 1043456   ;;  %vm1636_vm8 = vcmask 1044480  }
 0x141   :  { %v918_v26 = vshll.u32 %v5550_v24, 16  ;;  %v922_v43 = vshrl.u32 %v5550_v24, 16  ;;  %v5583_v11 = vpack.c.b16 %v858_v55, %v858_v55 }
 0x142   :  { %v926_v44 = vshll.u32 %v5561_v41, 16  ;;  %v5572_v58 = vpack.c.b16 %v859_v56, %v858_v55  ;;  %v930_v60 = vshrl.u32 %v5561_v41, 16  ;;  %v4532_v56 = vld [vmem:[#allocation11 + $0x28] sm:$0xff] }
 0x143   :  { %v920_v32 = vrot.slane %v918_v26, 1  ;;  %v4519_v26 = vld [vmem:[#allocation6 + $0x40] sm:$0xff] }
 0x144   :  { %v928_v50 = vrot.slane %v926_v44, 1  ;;  %1482 = vmatpush.bf16.msra.mxu3 %v4514_v59  ;;  %v934_v62 = vshll.u32 %v5572_v58, 16  ;;  %1375 = vmatpush.bf16.msra.mxu2 %v4524_v8  ;;  %v938_v15 = vshrl.u32 %v5572_v58, 16 }
 0x145   :  { %v5557_v35 = vsel %vm869_vm1, %v916_v31, %v920_v32  ;;  %v924_v48 = vor.u32 %v922_v43, %v920_v32 }
 0x146   :  { %v932_v2 = vor.u32 %v930_v60, %v928_v50  ;;  %v936_v3 = vrot.slane %v934_v62, 1 }
 0x147   :  { %v5568_v54 = vsel %vm869_vm1, %v924_v48, %v928_v50 }
 0x148   :  { %1483 = vmatpush.bf16.msra.mxu3 %v4513_v63  ;;  %v5579_v6 = vsel %vm869_vm1, %v932_v2, %v936_v3  ;;  %1376 = vmatpush.bf16.msra.mxu2 %v4523_v10  ;;  %v5588_v17 = vor.u32 %v938_v15, %v936_v3 }
 0x14a   :  { %3793 = vmatmul.msk.bf16.gmra.mxu1 %vm227_vm0, %v5494_v28  ;;  %3776 = vmatmul.msk.bf16.gmra.mxu0 %vm227_vm0, %v5513_v49 }
 0x14c   :  { %1484 = vmatpush.bf16.msra.mxu3 %v4512_v4  ;;  %1377 = vmatpush.bf16.msra.mxu2 %v4522_v13 }
 0x150   :  { %1485 = vmatpush.bf16.msra.mxu3 %v4511_v7  ;;  %1378 = vmatpush.bf16.msra.mxu2 %v4521_v16 }
 0x154   :  { %1379 = vmatpush.bf16.msra.mxu2 %v4520_v22 }
 0x158   :  { %1380 = vmatpush.bf16.msra.mxu2 %v4519_v26 }
 0x15a   :  { %3794 = vmatmul.msk.bf16.gmra.mxu1 %vm227_vm0, %v5506_v40  ;;  %3777 = vmatmul.msk.bf16.gmra.mxu0 %vm227_vm0, %v5524_v61 }
 0x15c   :  { %1849 = vmatpush.bf16.msrb.mxu2 %v4532_v56 }
 0x16a   :  { %3795 = vmatmul.msk.bf16.gmra.mxu1 %vm227_vm0, %v5517_v52  ;;  %3778 = vmatmul.msk.bf16.gmra.mxu0 %vm227_vm0, %v5535_v9 }
 0x17a   :  { %3796 = vmatmul.msk.bf16.gmra.mxu1 %vm227_vm0, %v5528_v0  ;;  %3779 = vmatmul.msk.bf16.gmra.mxu0 %vm227_vm0, %v5546_v21 }
 0x18a   :  { %3797 = vmatmul.msk.bf16.gmra.mxu1 %vm227_vm0, %v5539_v12  ;;  %3780 = vmatmul.msk.bf16.gmra.mxu0 %vm227_vm0, %v5557_v35 }
 0x19a   :  { %3798 = vmatmul.msk.bf16.gmra.mxu1 %vm227_vm0, %v5550_v24  ;;  %3781 = vmatmul.msk.bf16.gmra.mxu0 %vm227_vm0, %v5568_v54 }
 0x1aa   :  { %3799 = vmatmul.msk.bf16.gmra.mxu1 %vm227_vm0, %v5561_v41  ;;  %3782 = vmatmul.msk.bf16.gmra.mxu0 %vm227_vm0, %v5579_v6 }
 0x1b7   :  { %v1074_v14 = vpop.f32.mrf.mxu1  ;;  %v989_v18 = vpop.f32.mrf.mxu0 }
 0x1b8   :  { %v1075_v19 = vadd.f32 %v1074_v14, %v989_v18 }
 0x1ba   :  { %3800 = vmatmul.msk.bf16.gmra.mxu1 %vm227_vm0, %v5583_v11  ;;  %3783 = vmatmul.msk.bf16.gmra.mxu0 %vm227_vm0, %v5588_v17  ;;  %v1122_v25 = vadd.f32 %v5593_v20, %v1075_v19 }
 0x1bc   :  { %v1139_v30 = vmax.f32 %v1122_v25, 0.0 }
 0x1be   :  { %v1156_v34 = vpack.c.bf16 %v1139_v30, %v1139_v30 }
 0x1bf   :  { %v1076_v23 = vpop.f32.mrf.mxu1  ;;  %v991_v29 = vpop.f32.mrf.mxu0 }
 0x1c0   :  { %v1077_v31 = vadd.f32 %v1076_v23, %v991_v29  ;;  %v1223_v42 = vunpack.c.l.b16 %v1156_v34 }
 0x1c2   :  { %v1123_v33 = vadd.f32 %v5593_v20, %v1077_v31 }
 0x1c4   :  { %v1140_v36 = vmax.f32 %v1123_v33, 0.0 }
 0x1c6   :  { %v1157_v37 = vpack.c.bf16 %v1140_v36, %v1140_v36 }
 0x1c7   :  { %v1079_v32 = vpop.f32.mrf.mxu1  ;;  %v994_v38 = vpop.f32.mrf.mxu0 }
 0x1c8   :  { %v1224_v43 = vunpack.c.l.b16 %v1157_v37  ;;  %v1080_v44 = vadd.f32 %v1079_v32, %v994_v38 }
 0x1ca   :  { %v1240_v48 = vpack.c.b16 %v1224_v43, %v1223_v42  ;;  %v1124_v50 = vadd.f32 %v5593_v20, %v1080_v44 }
 0x1cc   :  { %1486 = vmatmul.bf16.vlgmr.msra.gmra.mxu3 %v1240_v48  ;;  %v1141_v53 = vmax.f32 %v1124_v50, 0.0  ;;  %v1252_v1 = vshll.u32 %v1240_v48, 16  ;;  %v1250_v14 = vshrl.u32 %v1240_v48, 16 }
 0x1ce   :  { %v1158_v60 = vpack.c.bf16 %v1141_v53, %v1141_v53  ;;  %v1254_v10 = vrot.slane %v1252_v1, 1 }
 0x1cf   :  { %v1081_v47 = vpop.f32.mrf.mxu1  ;;  %v996_v51 = vpop.f32.mrf.mxu0 }
 0x1d0   :  { %v1082_v55 = vadd.f32 %v1081_v47, %v996_v51  ;;  %v1225_v3 = vunpack.c.l.b16 %v1158_v60  ;;  %v1255_v16 = vor.u32 %v1254_v10, %v1250_v14 }
 0x1d2   :  { %v1125_v59 = vadd.f32 %v5593_v20, %v1082_v55 }
 0x1d4   :  { %v1142_v62 = vmax.f32 %v1125_v59, 0.0 }
 0x1d6   :  { %v1159_v63 = vpack.c.bf16 %v1142_v62, %v1142_v62 }
 0x1d7   :  { %v1084_v57 = vpop.f32.mrf.mxu1  ;;  %v999_v2 = vpop.f32.mrf.mxu0 }
 0x1d8   :  { %v1226_v4 = vunpack.c.l.b16 %v1159_v63  ;;  %v1085_v5 = vadd.f32 %v1084_v57, %v999_v2 }
 0x1da   :  { %v1241_v8 = vpack.c.b16 %v1226_v4, %v1225_v3  ;;  %v1126_v13 = vadd.f32 %v5593_v20, %v1085_v5 }
 0x1dc   :  { %1491 = vmatmul.bf16.gmra.mxu3 %v1241_v8  ;;  %v1257_v15 = vshll.u32 %v1241_v8, 16  ;;  %v1143_v22 = vmax.f32 %v1126_v13, 0.0  ;;  %v1261_v44 = vshrl.u32 %v1241_v8, 16 }
 0x1de   :  { %v1259_v18 = vrot.slane %v1257_v15, 1  ;;  %v1160_v30 = vpack.c.bf16 %v1143_v22, %v1143_v22 }
 0x1df   :  { %v1086_v7 = vpop.f32.mrf.mxu1  ;;  %v1001_v19 = vpop.f32.mrf.mxu0 }
 0x1e0   :  { %v1087_v23 = vadd.f32 %v1086_v7, %v1001_v19  ;;  %v1260_v25 = vsel %vm869_vm1, %v1255_v16, %v1259_v18  ;;  %v1227_v34 = vunpack.c.l.b16 %v1160_v30  ;;  %v1263_v46 = vor.u32 %v1261_v44, %v1259_v18 }
 0x1e1   :  { %1381 = vmatmul.bf16.vlgmr.msra.gmra.mxu2 %v1260_v25 }
 0x1e2   :  { %v1127_v29 = vadd.f32 %v5593_v20, %v1087_v23 }
 0x1e4   :  { %v1144_v31 = vmax.f32 %v1127_v29, 0.0 }
 0x1e6   :  { %v1161_v32 = vpack.c.bf16 %v1144_v31, %v1144_v31 }
 0x1e7   :  { %v1089_v26 = vpop.f32.mrf.mxu1  ;;  %v1004_v33 = vpop.f32.mrf.mxu0 }
 0x1e8   :  { %v1228_v36 = vunpack.c.l.b16 %v1161_v32  ;;  %v1090_v37 = vadd.f32 %v1089_v26, %v1004_v33 }
 0x1ea   :  { %v1242_v42 = vpack.c.b16 %v1228_v36, %v1227_v34  ;;  %v1128_v43 = vadd.f32 %v5593_v20, %v1090_v37 }
 0x1ec   :  { %1496 = vmatmul.bf16.gmra.mxu3 %v1242_v42  ;;  %v1265_v45 = vshll.u32 %v1242_v42, 16  ;;  %v1145_v50 = vmax.f32 %v1128_v43, 0.0  ;;  %v1269_v7 = vshrl.u32 %v1242_v42, 16 }
 0x1ee   :  { %v1267_v47 = vrot.slane %v1265_v45, 1  ;;  %v1162_v57 = vpack.c.bf16 %v1145_v50, %v1145_v50  ;;  %v4527_v50 = vld [vmem:[#allocation11] sm:$0xff] }
 0x1ef   :  { %v1091_v38 = vpop.f32.mrf.mxu1  ;;  %v1006_v48 = vpop.f32.mrf.mxu0  ;;  %1735 = vmatpush.bf16.msrb.mxu1 %v4527_v50 }
 0x1f0   :  { %v1092_v51 = vadd.f32 %v1091_v38, %v1006_v48  ;;  %v1268_v53 = vsel %vm869_vm1, %v1263_v46, %v1267_v47  ;;  %v1229_v63 = vunpack.c.l.b16 %v1162_v57  ;;  %v1271_v10 = vor.u32 %v1269_v7, %v1267_v47  ;;  %v4529_v48 = vld [vmem:[#allocation11 + $0x10] sm:$0xff] }
 0x1f1   :  { %1386 = vmatmul.bf16.gmra.mxu2 %v1268_v53  ;;  %1670 = vmatpush.bf16.msrb.mxu0 %v4529_v48 }
 0x1f2   :  { %v1129_v56 = vadd.f32 %v5593_v20, %v1092_v51  ;;  %v4531_v51 = vld [vmem:[#allocation11 + $0x20] sm:$0xff]  ;;  %3890 = vmatmul.msk.bf16.vlgmr.msrb.gmra.mxu1 %vm227_vm0, %v5492_v27 }
 0x1f3   :  { %1850 = vmatpush.bf16.msrb.mxu2 %v4531_v51 }
 0x1f4   :  { %v1146_v59 = vmax.f32 %v1129_v56, 0.0  ;;  %3873 = vmatmul.msk.bf16.vlgmr.msrb.gmra.mxu0 %vm227_vm0, %v5502_v39 }
 0x1f6   :  { %v1163_v60 = vpack.c.bf16 %v1146_v59, %v1146_v59 }
 0x1f7   :  { %v1094_v55 = vpop.f32.mrf.mxu1  ;;  %v1009_v62 = vpop.f32.mrf.mxu0 }
 0x1f8   :  { %v1230_v1 = vunpack.c.l.b16 %v1163_v60  ;;  %v1095_v2 = vadd.f32 %v1094_v55, %v1009_v62 }
 0x1fa   :  { %v1243_v4 = vpack.c.b16 %v1230_v1, %v1229_v63  ;;  %v1130_v5 = vadd.f32 %v5593_v20, %v1095_v2 }
 0x1fc   :  { %1501 = vmatmul.bf16.gmra.mxu3 %v1243_v4  ;;  %v1273_v8 = vshll.u32 %v1243_v4, 16  ;;  %v1147_v15 = vmax.f32 %v1130_v5, 0.0  ;;  %v1277_v37 = vshrl.u32 %v1243_v4, 16 }
 0x1fe   :  { %v1275_v13 = vrot.slane %v1273_v8, 1  ;;  %v1164_v23 = vpack.c.bf16 %v1147_v15, %v1147_v15 }
 0x1ff   :  { %v1096_v3 = vpop.f32.mrf.mxu1  ;;  %v1011_v14 = vpop.f32.mrf.mxu0 }
 0x200   :  { %v1097_v16 = vadd.f32 %v1096_v3, %v1011_v14  ;;  %v1276_v18 = vsel %vm869_vm1, %v1271_v10, %v1275_v13  ;;  %v1231_v30 = vunpack.c.l.b16 %v1164_v23  ;;  %v1279_v42 = vor.u32 %v1277_v37, %v1275_v13 }
 0x201   :  { %1391 = vmatmul.bf16.gmra.mxu2 %v1276_v18 }
 0x202   :  { %v1131_v22 = vadd.f32 %v5593_v20, %v1097_v16  ;;  %3891 = vmatmul.msk.bf16.gmra.mxu1 %vm227_vm0, %v5494_v28 }
 0x204   :  { %v1148_v25 = vmax.f32 %v1131_v22, 0.0  ;;  %3874 = vmatmul.msk.bf16.gmra.mxu0 %vm227_vm0, %v5513_v49 }
 0x206   :  { %v1165_v26 = vpack.c.bf16 %v1148_v25, %v1148_v25 }
 0x207   :  { %v1099_v19 = vpop.f32.mrf.mxu1  ;;  %v1014_v29 = vpop.f32.mrf.mxu0 }
 0x208   :  { %v1232_v31 = vunpack.c.l.b16 %v1165_v26  ;;  %v1100_v32 = vadd.f32 %v1099_v19, %v1014_v29 }
 0x20a   :  { %v1244_v34 = vpack.c.b16 %v1232_v31, %v1231_v30  ;;  %v1132_v36 = vadd.f32 %v5593_v20, %v1100_v32 }
 0x20c   :  { %1506 = vmatmul.bf16.gmra.mxu3 %v1244_v34  ;;  %v1281_v38 = vshll.u32 %v1244_v34, 16  ;;  %v1149_v45 = vmax.f32 %v1132_v36, 0.0  ;;  %v1285_v5 = vshrl.u32 %v1244_v34, 16 }
 0x20e   :  { %v1283_v43 = vrot.slane %v1281_v38, 1  ;;  %v1166_v56 = vpack.c.bf16 %v1149_v45, %v1149_v45 }
 0x20f   :  { %v1101_v33 = vpop.f32.mrf.mxu1  ;;  %v1016_v44 = vpop.f32.mrf.mxu0 }
 0x210   :  { %v1102_v46 = vadd.f32 %v1101_v33, %v1016_v44  ;;  %v1284_v47 = vsel %vm869_vm1, %v1279_v42, %v1283_v43  ;;  %v1233_v62 = vunpack.c.l.b16 %v1166_v56  ;;  %v1287_v8 = vor.u32 %v1285_v5, %v1283_v43 }
 0x211   :  { %1396 = vmatmul.bf16.gmra.mxu2 %v1284_v47 }
 0x212   :  { %v1133_v55 = vadd.f32 %v5593_v20, %v1102_v46  ;;  %3892 = vmatmul.msk.bf16.gmra.mxu1 %vm227_vm0, %v5506_v40 }
 0x214   :  { %v1150_v57 = vmax.f32 %v1133_v55, 0.0  ;;  %3875 = vmatmul.msk.bf16.gmra.mxu0 %vm227_vm0, %v5524_v61 }
 0x216   :  { %v1167_v59 = vpack.c.bf16 %v1150_v57, %v1150_v57 }
 0x217   :  { %v1104_v53 = vpop.f32.mrf.mxu1  ;;  %v1019_v60 = vpop.f32.mrf.mxu0 }
 0x218   :  { %v1234_v63 = vunpack.c.l.b16 %v1167_v59  ;;  %v1105_v1 = vadd.f32 %v1104_v53, %v1019_v60 }
 0x21a   :  { %v1245_v3 = vpack.c.b16 %v1234_v63, %v1233_v62  ;;  %v1134_v4 = vadd.f32 %v5593_v20, %v1105_v1 }
 0x21c   :  { %1511 = vmatmul.bf16.gmra.mxu3 %v1245_v3  ;;  %v1289_v7 = vshll.u32 %v1245_v3, 16  ;;  %v1151_v14 = vmax.f32 %v1134_v4, 0.0  ;;  %v1293_v34 = vshrl.u32 %v1245_v3, 16 }
 0x21e   :  { %v1291_v10 = vrot.slane %v1289_v7, 1  ;;  %v1168_v19 = vpack.c.bf16 %v1151_v14, %v1151_v14 }
 0x21f   :  { %v1106_v2 = vpop.f32.mrf.mxu1  ;;  %v1021_v13 = vpop.f32.mrf.mxu0 }
 0x220   :  { %v1107_v39 = vadd.f32 %v1106_v2, %v1021_v13  ;;  %v1292_v15 = vsel %vm869_vm1, %v1287_v8, %v1291_v10  ;;  %v1235_v26 = vunpack.c.l.b16 %v1168_v19  ;;  %v1295_v37 = vor.u32 %v1293_v34, %v1291_v10 }
 0x221   :  { %1401 = vmatmul.bf16.gmra.mxu2 %v1292_v15 }
 0x222   :  { %v1135_v18 = vadd.f32 %v5593_v20, %v1107_v39  ;;  %3893 = vmatmul.msk.bf16.gmra.mxu1 %vm227_vm0, %v5517_v52 }
 0x224   :  { %v1152_v22 = vmax.f32 %v1135_v18, 0.0  ;;  %3876 = vmatmul.msk.bf16.gmra.mxu0 %vm227_vm0, %v5535_v9  ;;  %v1787_v9 = vrot.slane %v5492_v27, 1  ;;  %v1788_v18 = vrot.slane %v5494_v28, 1  ;;  %v1790_v27 = vrot.slane %v5506_v40, 1 }
 0x226   :  { %v1169_v23 = vpack.c.bf16 %v1152_v22, %v1152_v22  ;;  %v1789_v19 = vsel %vm1639_vm2, %v1787_v9, %v1788_v18  ;;  %v4547_v9 = vld [vmem:[#allocation14 + $0x70] sm:$0xff] }
 0x227   :  { %v1109_v16 = vpop.f32.mrf.mxu1  ;;  %v1024_v25 = vpop.f32.mrf.mxu0 }
 0x228   :  { %v1236_v29 = vunpack.c.l.b16 %v1169_v23  ;;  %v1110_v30 = vadd.f32 %v1109_v16, %v1024_v25 }
 0x22a   :  { %v1246_v32 = vpack.c.b16 %v1236_v29, %v1235_v26  ;;  %v1136_v33 = vadd.f32 %v5593_v20, %v1110_v30  ;;  %v5650_v26 = vld [vmem:[#allocation9] ss:$0 sm:$0xff] }
 0x22c   :  { %1516 = vmatmul.bf16.gmra.mxu3 %v1246_v32  ;;  %v1297_v36 = vshll.u32 %v1246_v32, 16  ;;  %v1153_v43 = vmax.f32 %v1136_v33, 0.0  ;;  %v1301_v63 = vshrl.u32 %v1246_v32, 16 }
 0x22e   :  { %v1299_v38 = vrot.slane %v1297_v36, 1  ;;  %v1170_v47 = vpack.c.bf16 %v1153_v43, %v1153_v43  ;;  %v1792_v43 = vrot.slane %v5517_v52, 1 }
 0x22f   :  { %v1111_v31 = vpop.f32.mrf.mxu1  ;;  %v1026_v42 = vpop.f32.mrf.mxu0 }
 0x230   :  { %v1112_v49 = vadd.f32 %v1111_v31, %v1026_v42  ;;  %v1300_v44 = vsel %vm869_vm1, %v1295_v37, %v1299_v38  ;;  %v1237_v53 = vunpack.c.l.b16 %v1170_v47  ;;  %v1303_v3 = vor.u32 %v1301_v63, %v1299_v38 }
 0x231   :  { %1406 = vmatmul.bf16.gmra.mxu2 %v1300_v44  ;;  %v1791_v31 = vsel %vm1639_vm2, %v1788_v18, %v1790_v27  ;;  %v1793_v47 = vsel %vm1639_vm2, %v1790_v27, %v1792_v43 }
 0x232   :  { %v1137_v46 = vadd.f32 %v5593_v20, %v1112_v49  ;;  %3894 = vmatmul.msk.bf16.gmra.mxu1 %vm227_vm0, %v5528_v0 }
 0x234   :  { %v1154_v48 = vmax.f32 %v1137_v46, 0.0  ;;  %3877 = vmatmul.msk.bf16.gmra.mxu0 %vm227_vm0, %v5546_v21 }
 0x236   :  { %v1171_v50 = vpack.c.bf16 %v1154_v48, %v1154_v48 }
 0x237   :  { %v1114_v45 = vpop.f32.mrf.mxu1  ;;  %v1029_v51 = vpop.f32.mrf.mxu0 }
 0x238   :  { %v1238_v55 = vunpack.c.l.b16 %v1171_v50  ;;  %v1115_v56 = vadd.f32 %v1114_v45, %v1029_v51 }
 0x23a   :  { %v1138_v59 = vadd.f32 %v5593_v20, %v1115_v56  ;;  %v1247_v60 = vpack.c.b16 %v1238_v55, %v1237_v53  ;;  %v4548_v55 = vld [vmem:[#allocation14 + $0x78] sm:$0xff] }
 0x23b   :  { %2168 = vmatpush.bf16.msrb.mxu3 %v4548_v55  ;;  %v4078_v55 = vld [vmem:[#allocation17 + $0x80] sm:$0xf] }
 0x23c   :  { %v1155_v62 = vmax.f32 %v1138_v59, 0.0  ;;  %1521 = vmatmul.bf16.gmra.mxu3 %v1247_v60  ;;  %v1305_v1 = vshll.u32 %v1247_v60, 16  ;;  %v1309_v10 = vshrl.u32 %v1247_v60, 16 }
 0x23e   :  { %v1172_v2 = vpack.c.bf16 %v1155_v62, %v1155_v62  ;;  %v1307_v4 = vrot.slane %v1305_v1, 1 }
 0x23f   :  { %v1116_v57 = vpop.f32.mrf.mxu1  ;;  %v1031_v61 = vpop.f32.mrf.mxu0  ;;  %2169 = vmatpush.bf16.msrb.mxu3 %v4547_v9  ;;  %v4014_v9 = vld [vmem:[#allocation17] sm:$0xf] }
 0x240   :  { %v1239_v5 = vunpack.c.l.b16 %v1172_v2  ;;  %v1308_v7 = vsel %vm869_vm1, %v1303_v3, %v1307_v4  ;;  %v1311_v14 = vor.u32 %v1309_v10, %v1307_v4  ;;  %v1794_v3 = vrot.slane %v5528_v0, 1 }
 0x241   :  { %1411 = vmatmul.bf16.gmra.mxu2 %v1308_v7 }
 0x242   :  { %v1248_v8 = vpack.c.b16 %v1239_v5, %v1239_v5  ;;  %3895 = vmatmul.msk.bf16.gmra.mxu1 %vm227_vm0, %v5539_v12 }
 0x244   :  { %v1313_v20 = vshll.u32 %v1248_v8, 16  ;;  %3878 = vmatmul.msk.bf16.gmra.mxu0 %vm227_vm0, %v5557_v35 }
 0x246   :  { %v1315_v13 = vrot.slane %v1313_v20, 1 }
 0x248   :  { %v1316_v15 = vsel %vm869_vm1, %v1311_v14, %v1315_v13  ;;  %v1795_v13 = vsel %vm1639_vm2, %v1792_v43, %v1794_v3 }
 0x24f   :  { %v1487_v39 = vpop.f32.mrf.mxu3 }
 0x251   :  { %1416 = vmatmul.bf16.gmra.mxu2 %v1316_v15 }
 0x252   :  { %3896 = vmatmul.msk.bf16.gmra.mxu1 %vm227_vm0, %v5550_v24 }
 0x254   :  { %3879 = vmatmul.msk.bf16.gmra.mxu0 %vm227_vm0, %v5568_v54 }
 0x257   :  { %v1489_v16 = vpop.f32.mrf.mxu3 }
 0x25f   :  { %v1492_v22 = vpop.f32.mrf.mxu3 }
 0x261   :  { %3907 = vmatmul.msk.bf16.vlgmr.msrb.gmra.mxu2 %vm227_vm0, %v1789_v19 }
 0x262   :  { %3897 = vmatmul.msk.bf16.gmra.mxu1 %vm227_vm0, %v5561_v41 }
 0x264   :  { %v1382_v23 = vpop.f32.mrf.mxu2  ;;  %3880 = vmatmul.msk.bf16.gmra.mxu0 %vm227_vm0, %v5579_v6 }
 0x265   :  { %v1488_v25 = vadd.f32 %v1487_v39, %v1382_v23 }
 0x267   :  { %v1494_v21 = vpop.f32.mrf.mxu3  ;;  %v1531_v30 = vadd.f32 %v5650_v26, %v1488_v25 }
 0x269   :  { %v1547_v35 = vmax.f32 %v1531_v30, 0.0 }
 0x26c   :  { %v1384_v28 = vpop.f32.mrf.mxu2 }
 0x26d   :  { %v1490_v29 = vadd.f32 %v1489_v16, %v1384_v28  ;;  %v4126_v28 = vld [vmem:[#allocation17 + $0xe0] sm:$0xf] }
 0x26f   :  { %v1532_v32 = vadd.f32 %v5650_v26, %v1490_v29  ;;  %v1497_v33 = vpop.f32.mrf.mxu3  ;;  %v4587_v29 = vld [vmem:[#allocation17 + $0xec] sm:$0xf0] }
 0x270   :  { %v4127_v30 = vor.u32 %v4587_v29, %v4126_v28  ;;  %v4112_v28 = vld [vmem:[#allocation17 + $0xd0] sm:$0xf0]  ;;  %v1800_v29 = vrot.slane %v5561_v41, 1 }
 0x271   :  { %v1548_v34 = vmax.f32 %v1532_v32, 0.0  ;;  %3908 = vmatmul.msk.bf16.gmra.mxu2 %vm227_vm0, %v1791_v31  ;;  %v1796_v32 = vrot.slane %v5539_v12, 1  ;;  %v4094_v12 = vld [vmem:[#allocation17 + $0xa0] sm:$0xf] }
 0x272   :  { %3898 = vmatmul.msk.bf16.gmra.mxu1 %vm227_vm0, %v5583_v11 }
 0x273   :  { %v1564_v36 = vsel %vm1563_vm3, %v1548_v34, -inf  ;;  %2979 = vmatpush.bf16.msra.mxu1 %v4127_v30  ;;  %v1797_v11 = vsel %vm1639_vm2, %v1794_v3, %v1796_v32  ;;  %v1798_v3 = vrot.slane %v5550_v24, 1  ;;  %v5705_v30 = vpop.f32.mrf.mxu0 }
 0x274   :  { %v1565_v37 = vmax.f32 %v1547_v35, %v1564_v36  ;;  %v1387_v38 = vpop.f32.mrf.mxu2  ;;  %3881 = vmatmul.msk.bf16.gmra.mxu0 %vm227_vm0, %v5588_v17  ;;  %v4110_v35 = vld [vmem:[#allocation17 + $0xc0] sm:$0xf]  ;;  %v4583_v36 = vld [vmem:[#allocation17 + $0xcc] sm:$0xf0] }
 0x275   :  { %v1493_v42 = vadd.f32 %v1492_v22, %v1387_v38  ;;  %v4111_v38 = vor.u32 %v4583_v36, %v4110_v35  ;;  %v4577_v35 = vld [vmem:[#allocation17 + $0xa4] sm:$0xf]  ;;  %v4096_v36 = vld [vmem:[#allocation17 + $0xb0] sm:$0xf0] }
 0x276   :  { %v1566_v49 = vrot.slane %v1565_v37, 4 }
 0x277   :  { %v1499_v40 = vpop.f32.mrf.mxu3  ;;  %v1533_v46 = vadd.f32 %v5650_v26, %v1493_v42  ;;  %2980 = vmatpush.bf16.msra.mxu1 %v4111_v38  ;;  %v4099_v38 = vor.u32 %v4577_v35, %v4096_v36 }
 0x278   :  { %v1567_v50 = vmax.f32 %v1565_v37, %v1566_v49 }
 0x279   :  { %v1549_v54 = vmax.f32 %v1533_v46, 0.0 }
 0x27a   :  { %v1568_v57 = vrot.slane %v1567_v50, 2 }
 0x27b   :  { %v5711_v41 = vpop.f32.mrf.mxu0 }
 0x27c   :  { %v1389_v44 = vpop.f32.mrf.mxu2  ;;  %v1569_v63 = vmax.f32 %v1567_v50, %v1568_v57  ;;  %v4546_v50 = vld [vmem:[#allocation14 + $0x68] sm:$0xff] }
 0x27d   :  { %v1495_v45 = vadd.f32 %v1494_v21, %v1389_v44  ;;  %v4579_v44 = vld [vmem:[#allocation17 + $0xac] sm:$0xf0]  ;;  %2170 = vmatpush.bf16.msrb.mxu3 %v4546_v50 }
 0x27e   :  { %v1570_v61 = vrot.slane %v1569_v63, 1  ;;  %v4095_v46 = vor.u32 %v4579_v44, %v4094_v12 }
 0x27f   :  { %v1534_v48 = vadd.f32 %v5650_v26, %v1495_v45  ;;  %v1502_v53 = vpop.f32.mrf.mxu3 }
 0x280   :  { %v1571_v14 = vmax.f32 %v1569_v63, %v1570_v61  ;;  %2981 = vmatpush.bf16.msra.mxu1 %v4095_v46  ;;  %v4569_v46 = vld [vmem:[#allocation17 + $0x64] sm:$0xf] }
 0x281   :  { %v1550_v51 = vmax.f32 %v1534_v48, 0.0  ;;  %3909 = vmatmul.msk.bf16.gmra.mxu2 %vm227_vm0, %v1793_v47 }
 0x283   :  { %v1572_v56 = vsel %vm1563_vm3, %v1550_v51, -inf }
 0x284   :  { %v1573_v52 = vmax.f32 %v1549_v54, %v1572_v56  ;;  %v1392_v59 = vpop.f32.mrf.mxu2  ;;  %v4575_v56 = vld [vmem:[#allocation17 + $0x8c] sm:$0xf0] }
 0x285   :  { %v1498_v60 = vadd.f32 %v1497_v33, %v1392_v59  ;;  %v4079_v57 = vor.u32 %v4575_v56, %v4078_v55  ;;  %v4565_v56 = vld [vmem:[#allocation17 + $0x44] sm:$0xf] }
 0x286   :  { %v1574_v62 = vrot.slane %v1573_v52, 4 }
 0x287   :  { %v1504_v4 = vpop.f32.mrf.mxu3  ;;  %v1535_v10 = vadd.f32 %v5650_v26, %v1498_v60  ;;  %2982 = vmatpush.bf16.msra.mxu1 %v4079_v57  ;;  %v4062_v60 = vld [vmem:[#allocation17 + $0x60] sm:$0xf]  ;;  %v4048_v57 = vld [vmem:[#allocation17 + $0x50] sm:$0xf0] }
 0x288   :  { %v1575_v1 = vmax.f32 %v1573_v52, %v1574_v62  ;;  %v4571_v62 = vld [vmem:[#allocation17 + $0x6c] sm:$0xf0] }
 0x289   :  { %v1551_v16 = vmax.f32 %v1535_v10, 0.0  ;;  %v1799_v10 = vsel %vm1639_vm2, %v1796_v32, %v1798_v3 }
 0x28a   :  { %v1576_v2 = vrot.slane %v1575_v1, 2 }
 0x28c   :  { %v1577_v5 = vmax.f32 %v1575_v1, %v1576_v2  ;;  %v1394_v7 = vpop.f32.mrf.mxu2  ;;  %v4063_v1 = vor.u32 %v4571_v62, %v4062_v60  ;;  %v4051_v62 = vor.u32 %v4565_v56, %v4048_v57 }
 0x28d   :  { %v1500_v8 = vadd.f32 %v1499_v40, %v1394_v7  ;;  %v4567_v7 = vld [vmem:[#allocation17 + $0x4c] sm:$0xf0] }
 0x28e   :  { %v1578_v20 = vrot.slane %v1577_v5, 1  ;;  %2983 = vmatpush.bf16.msra.mxu1 %v4063_v1 }
 0x28f   :  { %v1536_v6 = vadd.f32 %v5650_v26, %v1500_v8  ;;  %v5679_v23 = vpop.f32.mrf.mxu3 }
 0x290   :  { %v1579_v39 = vmax.f32 %v1577_v5, %v1578_v20  ;;  %v4046_v5 = vld [vmem:[#allocation17 + $0x40] sm:$0xf] }
 0x291   :  { %v1552_v15 = vmax.f32 %v1536_v6, 0.0  ;;  %3910 = vmatmul.msk.bf16.gmra.mxu2 %vm227_vm0, %v1795_v13  ;;  %v4047_v8 = vor.u32 %v4567_v7, %v4046_v5  ;;  %v4545_v6 = vld [vmem:[#allocation14 + $0x60] sm:$0xff]  ;;  %v4032_v7 = vld [vmem:[#allocation17 + $0x30] sm:$0xf0] }
 0x292   :  { %v1629_v0 = vsel %vm1628_vm4, %v1571_v14, %v1579_v39  ;;  %v4030_v14 = vld [vmem:[#allocation17 + $0x20] sm:$0xf]  ;;  %v4563_v39 = vld [vmem:[#allocation17 + $0x2c] sm:$0xf0]  ;;  %2171 = vmatpush.bf16.msrb.mxu3 %v4545_v6  ;;  %v4561_v5 = vld [vmem:[#allocation17 + $0x24] sm:$0xf] }
 0x293   :  { %v1580_v18 = vsel %vm1563_vm3, %v1552_v15, -inf  ;;  %2984 = vmatpush.bf16.msra.mxu1 %v4047_v8  ;;  %v4031_v15 = vor.u32 %v4563_v39, %v4030_v14  ;;  %v4555_v6 = vld [vmem:[#allocation14 + $0xb0] sm:$0xff] }
 0x294   :  { %v1581_v19 = vmax.f32 %v1551_v16, %v1580_v18  ;;  %v1397_v22 = vpop.f32.mrf.mxu2  ;;  %v4559_v18 = vld [vmem:[#allocation17 + $0xc] sm:$0xf0] }
 0x295   :  { %v1503_v25 = vadd.f32 %v1502_v53, %v1397_v22  ;;  %v4585_v22 = vld [vmem:[#allocation17 + $0xe4] sm:$0xf] }
 0x296   :  { %v1582_v21 = vrot.slane %v1581_v19, 4 }
 0x297   :  { %v1537_v17 = vadd.f32 %v5650_v26, %v1503_v25  ;;  %v5688_v40 = vpop.f32.mrf.mxu3  ;;  %2985 = vmatpush.bf16.msra.mxu1 %v4031_v15  ;;  %v4128_v25 = vld [vmem:[#allocation17 + $0xf0] sm:$0xf0] }
 0x298   :  { %v1583_v27 = vmax.f32 %v1581_v19, %v1582_v21  ;;  %v4015_v19 = vor.u32 %v4559_v18, %v4014_v9  ;;  %v4131_v21 = vor.u32 %v4585_v22, %v4128_v25  ;;  %v4543_v15 = vld [vmem:[#allocation14 + $0x50] sm:$0xff]  ;;  %v4557_v18 = vld [vmem:[#allocation17 + $0x4] sm:$0xf] }
 0x299   :  { %v1553_v48 = vmax.f32 %v1537_v17, 0.0  ;;  %v4573_v17 = vld [vmem:[#allocation17 + $0x84] sm:$0xf] }
 0x29a   :  { %v1584_v31 = vrot.slane %v1583_v27, 2 }
 0x29b   :  { %2986 = vmatpush.bf16.msra.mxu1 %v4015_v19  ;;  %v4016_v19 = vld [vmem:[#allocation17 + $0x10] sm:$0xf0] }
 0x29c   :  { %v1585_v33 = vmax.f32 %v1583_v27, %v1584_v31  ;;  %v1399_v34 = vpop.f32.mrf.mxu2  ;;  %v4581_v27 = vld [vmem:[#allocation17 + $0xc4] sm:$0xf]  ;;  %v5707_v31 = vpop.f32.mrf.mxu1 }
 0x29d   :  { %v1505_v37 = vadd.f32 %v1504_v4, %v1399_v34  ;;  %v4115_v32 = vor.u32 %v4581_v27, %v4112_v28  ;;  %v4019_v27 = vor.u32 %v4557_v18, %v4016_v19 }
 0x29e   :  { %v1586_v42 = vrot.slane %v1585_v33, 1 }
 0x29f   :  { %v1538_v43 = vadd.f32 %v5650_v26, %v1505_v37  ;;  %v5696_v63 = vpop.f32.mrf.mxu3  ;;  %3005 = vmatpush.bf16.msrb.mxu1 %v4131_v21  ;;  %v1801_v37 = vsel %vm1639_vm2, %v1798_v3, %v1800_v29 }
 0x2a0   :  { %v1587_v49 = vmax.f32 %v1585_v33, %v1586_v42  ;;  %v4544_v42 = vld [vmem:[#allocation14 + $0x58] sm:$0xff] }
 0x2a1   :  { %v1554_v45 = vmax.f32 %v1538_v43, 0.0  ;;  %3911 = vmatmul.msk.bf16.gmra.mxu2 %vm227_vm0, %v1797_v11  ;;  %v4080_v11 = vld [vmem:[#allocation17 + $0x90] sm:$0xf0]  ;;  %2172 = vmatpush.bf16.msrb.mxu3 %v4544_v42  ;;  %v4553_v42 = vld [vmem:[#allocation14 + $0xa0] sm:$0xff] }
 0x2a2   :  { %v1631_v47 = vsel %vm1630_vm5, %v1629_v0, %v1587_v49  ;;  %v4083_v49 = vor.u32 %v4573_v17, %v4080_v11 }
 0x2a3   :  { %v1588_v51 = vsel %vm1563_vm3, %v1554_v45, -inf  ;;  %3006 = vmatpush.bf16.msrb.mxu1 %v4115_v32 }
 0x2a4   :  { %v1589_v53 = vmax.f32 %v1553_v48, %v1588_v51  ;;  %v5694_v54 = vpop.f32.mrf.mxu2  ;;  %v5713_v43 = vpop.f32.mrf.mxu1 }
 0x2a5   :  { %v1508_v51 = vadd.f32 %v5679_v23, %v5694_v54  ;;  %2173 = vmatpush.bf16.msrb.mxu3 %v4543_v15  ;;  %v4541_v15 = vld [vmem:[#allocation14 + $0x40] sm:$0xff] }
 0x2a6   :  { %v1590_v52 = vrot.slane %v1589_v53, 4 }
 0x2a7   :  { %v1514_v0 = vpop.f32.mrf.mxu3  ;;  %3007 = vmatpush.bf16.msrb.mxu1 %v4099_v38  ;;  %v1539_v23 = vadd.f32 %v5650_v26, %v1508_v51 }
 0x2a8   :  { %v1591_v59 = vmax.f32 %v1589_v53, %v1590_v52 }
 0x2a9   :  { %v1555_v14 = vmax.f32 %v1539_v23, 0.0 }
 0x2aa   :  { %v1592_v2 = vrot.slane %v1591_v59, 2 }
 0x2ab   :  { %3008 = vmatpush.bf16.msrb.mxu1 %v4083_v49 }
 0x2ac   :  { %v1593_v4 = vmax.f32 %v1591_v59, %v1592_v2  ;;  %v1404_v61 = vpop.f32.mrf.mxu2  ;;  %v5722_v59 = vpop.f32.mrf.mxu0  ;;  %v4556_v2 = vld [vmem:[#allocation14 + $0xb8] sm:$0xff] }
 0x2ad   :  { %v1510_v12 = vadd.f32 %v5688_v40, %v1404_v61  ;;  %v1802_v40 = vrot.slane %v5572_v58, 1  ;;  %v5724_v60 = vpop.f32.mrf.mxu1  ;;  %2412 = vmatpush.bf16.msra.mxu0 %v4556_v2 }
 0x2ae   :  { %v1594_v20 = vrot.slane %v1593_v4, 1 }
 0x2af   :  { %v1517_v34 = vpop.f32.mrf.mxu3  ;;  %v1540_v53 = vadd.f32 %v5650_v26, %v1510_v12  ;;  %v1803_v8 = vsel %vm1639_vm2, %v1800_v29, %v1802_v40 }
 0x2b0   :  { %v1595_v13 = vmax.f32 %v1593_v4, %v1594_v20  ;;  %v4035_v20 = vor.u32 %v4561_v5, %v4032_v7 }
 0x2b1   :  { %3912 = vmatmul.msk.bf16.gmra.mxu2 %vm227_vm0, %v1799_v10  ;;  %v1556_v54 = vmax.f32 %v1540_v53, 0.0  ;;  %2413 = vmatpush.bf16.msra.mxu0 %v4555_v6  ;;  %v4542_v53 = vld [vmem:[#allocation14 + $0x48] sm:$0xff] }
 0x2b2   :  { %v5702_v24 = vsel %vm1632_vm6, %v1631_v47, %v1595_v13  ;;  %v4064_v47 = vld [vmem:[#allocation17 + $0x70] sm:$0xf0]  ;;  %2174 = vmatpush.bf16.msrb.mxu3 %v4542_v53 }
 0x2b3   :  { %v4067_v48 = vor.u32 %v4569_v46, %v4064_v47  ;;  %v1596_v39 = vsel %vm1563_vm3, %v1556_v54, -inf }
 0x2b4   :  { %v1407_v16 = vpop.f32.mrf.mxu2  ;;  %v5736_v25 = vpop.f32.mrf.mxu0  ;;  %v1597_v28 = vmax.f32 %v1555_v14, %v1596_v39  ;;  %v1738_v14 = vadd.f32 %v5707_v31, %v5705_v30 }
 0x2b5   :  { %3009 = vmatpush.bf16.msrb.mxu1 %v4067_v48  ;;  %v1513_v52 = vadd.f32 %v5696_v63, %v1407_v16  ;;  %v5738_v21 = vpop.f32.mrf.mxu1  ;;  %v4552_v48 = vld [vmem:[#allocation14 + $0x98] sm:$0xff] }
 0x2b6   :  { %2175 = vmatpush.bf16.msrb.mxu3 %v4541_v15 }
 0x2b7   :  { %v1519_v50 = vpop.f32.mrf.mxu3  ;;  %v1541_v63 = vadd.f32 %v5650_v26, %v1513_v52 }
 0x2b9   :  { %3010 = vmatpush.bf16.msrb.mxu1 %v4051_v62  ;;  %v1557_v22 = vmax.f32 %v1541_v63, 0.0  ;;  %v4551_v62 = vld [vmem:[#allocation14 + $0x90] sm:$0xff]  ;;  %v4550_v63 = vld [vmem:[#allocation14 + $0x88] sm:$0xff] }
 0x2bc   :  { %v1409_v33 = vpop.f32.mrf.mxu2  ;;  %v5741_v12 = vpop.f32.mrf.mxu0 }
 0x2bd   :  { %v1515_v45 = vadd.f32 %v1514_v0, %v1409_v33  ;;  %3011 = vmatpush.bf16.msrb.mxu1 %v4035_v20  ;;  %v4554_v33 = vld [vmem:[#allocation14 + $0xa8] sm:$0xff] }
 0x2be   :  { %2414 = vmatpush.bf16.msra.mxu0 %v4554_v33 }
 0x2bf   :  { %v1542_v55 = vadd.f32 %v5650_v26, %v1515_v45  ;;  %v1522_v16 = vpop.f32.mrf.mxu3 }
 0x2c1   :  { %3913 = vmatmul.msk.bf16.gmra.mxu2 %vm227_vm0, %v1801_v37  ;;  %v1558_v4 = vmax.f32 %v1542_v55, 0.0  ;;  %3012 = vmatpush.bf16.msrb.mxu1 %v4019_v27  ;;  %v1598_v37 = vrot.slane %v1597_v28, 4 }
 0x2c2   :  { %2415 = vmatpush.bf16.msra.mxu0 %v4553_v42 }
 0x2c3   :  { %v1604_v0 = vsel %vm1563_vm3, %v1558_v4, -inf  ;;  %v1599_v49 = vmax.f32 %v1597_v28, %v1598_v37 }
 0x2c4   :  { %v1412_v44 = vpop.f32.mrf.mxu2  ;;  %v5751_v4 = vpop.f32.mrf.mxu0 }
 0x2c5   :  { %v1518_v1 = vadd.f32 %v1517_v34, %v1412_v44  ;;  %v1605_v34 = vmax.f32 %v1557_v22, %v1604_v0  ;;  %v5743_v44 = vpop.f32.mrf.mxu1  ;;  %v1600_v56 = vrot.slane %v1599_v49, 2 }
 0x2c6   :  { %2416 = vmatpush.bf16.msra.mxu0 %v4552_v48 }
 0x2c7   :  { %v1543_v10 = vadd.f32 %v5650_v26, %v1518_v1  ;;  %v1606_v38 = vrot.slane %v1605_v34, 4  ;;  %v1524_v46 = vpop.f32.mrf.mxu3  ;;  %v1601_v54 = vmax.f32 %v1599_v49, %v1600_v56  ;;  %v4580_v56 = vld [vmem:[#allocation17 + $0xb4] sm:$0xf0] }
 0x2c9   :  { %v1559_v29 = vmax.f32 %v1543_v10, 0.0  ;;  %v1607_v45 = vmax.f32 %v1605_v34, %v1606_v38  ;;  %v1602_v10 = vrot.slane %v1601_v54, 1  ;;  %v4588_v34 = vld [vmem:[#allocation17 + $0xf4] sm:$0xf0]  ;;  %v1743_v38 = vadd.f32 %v5724_v60, %v5722_v59 }
 0x2ca   :  { %2417 = vmatpush.bf16.msra.mxu0 %v4551_v62 }
 0x2cb   :  { %v1608_v52 = vrot.slane %v1607_v45, 2  ;;  %v1603_v0 = vmax.f32 %v1601_v54, %v1602_v10  ;;  %v4576_v54 = vld [vmem:[#allocation17 + $0x94] sm:$0xf0] }
 0x2cc   :  { %v1414_v3 = vpop.f32.mrf.mxu2 }
 0x2cd   :  { %v1520_v61 = vadd.f32 %v1519_v50, %v1414_v3  ;;  %v1609_v5 = vmax.f32 %v1607_v45, %v1608_v52  ;;  %v1635_v33 = vsel %vm1634_vm7, %v5702_v24, %v1603_v0  ;;  %v4118_v24 = vld [vmem:[#allocation17 + $0xc8] sm:$0xf] }
 0x2ce   :  { %2418 = vmatpush.bf16.msra.mxu0 %v4550_v63  ;;  %v4054_v0 = vld [vmem:[#allocation17 + $0x48] sm:$0xf] }
 0x2cf   :  { %v1544_v13 = vadd.f32 %v5650_v26, %v1520_v61  ;;  %v5753_v61 = vpop.f32.mrf.mxu1  ;;  %v1610_v58 = vrot.slane %v1609_v5, 1 }
 0x2d1   :  { %v1560_v9 = vmax.f32 %v1544_v13, 0.0  ;;  %3914 = vmatmul.msk.bf16.gmra.mxu2 %vm227_vm0, %v1803_v8  ;;  %v1611_v19 = vmax.f32 %v1609_v5, %v1610_v58 }
 0x2d3   :  { %v1612_v32 = vsel %vm1563_vm3, %v1560_v9, -inf  ;;  %v5759_v9 = vpop.f32.mrf.mxu0 }
 0x2d4   :  { %v1417_v35 = vpop.f32.mrf.mxu2  ;;  %v1613_v36 = vmax.f32 %v1559_v29, %v1612_v32  ;;  %v5763_v32 = vld [vmem:[#allocation12] ss:$0 sm:$0xff] }
 0x2d5   :  { %v1523_v11 = vadd.f32 %v1522_v16, %v1417_v35  ;;  %v1740_v16 = vadd.f32 %v5713_v43, %v5711_v41  ;;  %v4134_v43 = vld [vmem:[#allocation17 + $0xe8] sm:$0xf] }
 0x2d6   :  { %v1614_v17 = vrot.slane %v1613_v36, 4 }
 0x2d7   :  { %v1545_v55 = vadd.f32 %v5650_v26, %v1523_v11  ;;  %v5761_v18 = vpop.f32.mrf.mxu1  ;;  %v4135_v11 = vor.u32 %v4588_v34, %v4134_v43 }
 0x2d8   :  { %v1615_v50 = vmax.f32 %v1613_v36, %v1614_v17  ;;  %v1637_v36 = vsel %vm1636_vm8, %v1635_v33, %v1611_v19  ;;  %v4038_v33 = vld [vmem:[#allocation17 + $0x28] sm:$0xf] }
 0x2d9   :  { %v1561_v23 = vmax.f32 %v1545_v55, 0.0  ;;  %v4102_v55 = vld [vmem:[#allocation17 + $0xa8] sm:$0xf] }
 0x2da   :  { %v1616_v1 = vrot.slane %v1615_v50, 2  ;;  %v4103_v62 = vor.u32 %v4580_v56, %v4102_v55  ;;  %v4136_v55 = vld [vmem:[#allocation17 + $0xf8] sm:$0xf0] }
 0x2dc   :  { %v1419_v47 = vpop.f32.mrf.mxu2  ;;  %v1617_v8 = vmax.f32 %v1615_v50, %v1616_v1 }
 0x2dd   :  { %v1525_v51 = vadd.f32 %v1524_v46, %v1419_v47  ;;  %v4584_v46 = vld [vmem:[#allocation17 + $0xd4] sm:$0xf0]  ;;  %v5776_v47 = vpop.f32.mrf.mxu0 }
 0x2de   :  { %v1618_v6 = vrot.slane %v1617_v8, 1  ;;  %v4119_v59 = vor.u32 %v4584_v46, %v4118_v24  ;;  %v4022_v46 = vld [vmem:[#allocation17 + $0x8] sm:$0xf] }
 0x2df   :  { %v1546_v57 = vadd.f32 %v5650_v26, %v1525_v51  ;;  %v5778_v48 = vpop.f32.mrf.mxu1 }
 0x2e0   :  { %v1619_v28 = vmax.f32 %v1617_v8, %v1618_v6  ;;  %v4572_v6 = vld [vmem:[#allocation17 + $0x74] sm:$0xf0] }
 0x2e1   :  { %v1562_v2 = vmax.f32 %v1546_v57, 0.0  ;;  %3915 = vmatmul.msk.bf16.gmra.mxu2 %vm227_vm0, %v1802_v40  ;;  %v4549_v40 = vld [vmem:[#allocation14 + $0x80] sm:$0xff] }
 0x2e2   :  { %2419 = vmatpush.bf16.msra.mxu0 %v4549_v40  ;;  %v1638_v42 = vsel %vm1563_vm3, %v1637_v36, %v1619_v28  ;;  %v4070_v40 = vld [vmem:[#allocation17 + $0x68] sm:$0xf] }
 0x2e3   :  { %v1620_v3 = vsel %vm1563_vm3, %v1562_v2, -inf  ;;  %v1745_v2 = vadd.f32 %v5738_v21, %v5736_v25  ;;  %v1748_v21 = vadd.f32 %v5743_v44, %v5741_v12 }
 0x2e4   :  { %v1621_v26 = vmax.f32 %v1561_v23, %v1620_v3  ;;  %v1852_v7 = vpop.f32.mrf.mxu2  ;;  %v4086_v23 = vld [vmem:[#allocation17 + $0x88] sm:$0xf] }
 0x2e5   :  { %v1896_v29 = vadd.f32 %v1852_v7, %v1738_v14  ;;  %v5784_v3 = vpop.f32.mrf.mxu0  ;;  %v4087_v10 = vor.u32 %v4576_v54, %v4086_v23  ;;  %v4120_v23 = vld [vmem:[#allocation17 + $0xd8] sm:$0xf0] }
 0x2e6   :  { %v1622_v20 = vrot.slane %v1621_v26, 4 }
 0x2e7   :  { %v1917_v37 = vadd.f32 %v5763_v32, %v1896_v29  ;;  %v5786_v5 = vpop.f32.mrf.mxu1 }
 0x2e8   :  { %v1623_v13 = vmax.f32 %v1621_v26, %v1622_v20  ;;  %v4540_v20 = vld [vmem:[#allocation14 + $0x38] sm:$0xff] }
 0x2e9   :  { %v1934_v51 = vmax.f32 %v1917_v37, 0.0  ;;  %2273 = vmatpush.bf16.msra.mxu3 %v4540_v20 }
 0x2ea   :  { %v1624_v39 = vrot.slane %v1623_v13, 2 }
 0x2eb   :  { %v1951_v57 = vpack.c.bf16 %v1934_v51, %v1934_v51 }
 0x2ec   :  { %v1625_v22 = vmax.f32 %v1623_v13, %v1624_v39  ;;  %v1854_v27 = vpop.f32.mrf.mxu2  ;;  %v4071_v39 = vor.u32 %v4572_v6, %v4070_v40  ;;  %v4578_v40 = vld [vmem:[#allocation17 + $0xac] sm:$0xf]  ;;  %v4104_v6 = vld [vmem:[#allocation17 + $0xb8] sm:$0xf0] }
 0x2ed   :  { %v1897_v30 = vadd.f32 %v1854_v27, %v1740_v16  ;;  %v2018_v7 = vunpack.c.l.b16 %v1951_v57  ;;  %v4568_v16 = vld [vmem:[#allocation17 + $0x54] sm:$0xf0] }
 0x2ee   :  { %v1626_v31 = vrot.slane %v1625_v22, 1  ;;  %v4055_v12 = vor.u32 %v4568_v16, %v4054_v0 }
 0x2ef   :  { %v1918_v41 = vadd.f32 %v5763_v32, %v1897_v30  ;;  %v5796_v27 = vpop.f32.mrf.mxu1 }
 0x2f0   :  { %v1627_v35 = vmax.f32 %v1625_v22, %v1626_v31  ;;  %v5794_v22 = vpop.f32.mrf.mxu0 }
 0x2f1   :  { %v1935_v49 = vmax.f32 %v1918_v41, 0.0  ;;  %v4564_v41 = vld [vmem:[#allocation17 + $0x34] sm:$0xf0] }
 0x2f2   :  { %v1640_v17 = vsel %vm1639_vm2, %v1638_v42, %v1627_v35  ;;  %v4039_v42 = vor.u32 %v4564_v41, %v4038_v33 }
 0x2f3   :  { %v5774_v45 = vpack.c.bf16 %v1640_v17, %v1640_v17  ;;  %v1952_v60 = vpack.c.bf16 %v1935_v49, %v1935_v49  ;;  %v1750_v17 = vadd.f32 %v5753_v61, %v5751_v4 }
 0x2f4   :  { %v1857_v50 = vpop.f32.mrf.mxu2 }
 0x2f5   :  { %v1898_v53 = vadd.f32 %v1857_v50, %v1743_v38  ;;  %2987 = vmatmul.bf16.vlgmr.msra.gmra.mxu1 %v5774_v45  ;;  %v2019_v1 = vunpack.c.l.b16 %v1952_v60  ;;  %v4560_v50 = vld [vmem:[#allocation17 + $0x14] sm:$0xf0]  ;;  %v4586_v60 = vld [vmem:[#allocation17 + $0xec] sm:$0xf] }
 0x2f6   :  { %3031 = vmatpush.bf16.msra.mxu1 %v4135_v11  ;;  %v4023_v4 = vor.u32 %v4560_v50, %v4022_v46  ;;  %v1758_v46 = vadd.f32 %v5786_v5, %v5784_v3  ;;  %v4024_v3 = vld [vmem:[#allocation17 + $0x18] sm:$0xf0] }
 0x2f7   :  { %v1919_v52 = vadd.f32 %v5763_v32, %v1898_v53  ;;  %v5788_v58 = vpack.c.b16 %v2019_v1, %v2018_v7  ;;  %v5811_v53 = vpop.f32.mrf.mxu1  ;;  %v4139_v1 = vor.u32 %v4586_v60, %v4136_v55 }
 0x2f8   :  { %v5809_v51 = vpop.f32.mrf.mxu0 }
 0x2f9   :  { %v1936_v63 = vmax.f32 %v1919_v52, 0.0  ;;  %v2047_v19 = vshll.u32 %v5788_v58, 16  ;;  %v2339_v34 = vrot.slane %v5788_v58, 1  ;;  %v2045_v37 = vshrl.u32 %v5788_v58, 16 }
 0x2fa   :  { %3032 = vmatpush.bf16.msra.mxu1 %v4119_v59 }
 0x2fb   :  { %v1953_v25 = vpack.c.bf16 %v1936_v63, %v1936_v63  ;;  %v2049_v43 = vrot.slane %v2047_v19, 1 }
 0x2fc   :  { %v1859_v26 = vpop.f32.mrf.mxu2 }
 0x2fd   :  { %v1899_v8 = vadd.f32 %v1859_v26, %v1745_v2  ;;  %v2020_v29 = vunpack.c.l.b16 %v1953_v25  ;;  %v2050_v49 = vor.u32 %v2049_v43, %v2045_v37  ;;  %v4582_v2 = vld [vmem:[#allocation17 + $0xcc] sm:$0xf]  ;;  %v1753_v26 = vadd.f32 %v5761_v18, %v5759_v9 }
 0x2fe   :  { %3033 = vmatpush.bf16.msra.mxu1 %v4103_v62  ;;  %v4539_v62 = vld [vmem:[#allocation14 + $0x30] sm:$0xff]  ;;  %v4107_v9 = vor.u32 %v4578_v40, %v4104_v6 }
 0x2ff   :  { %v1920_v13 = vadd.f32 %v5763_v32, %v1899_v8  ;;  %2274 = vmatpush.bf16.msra.mxu3 %v4539_v62  ;;  %v4123_v8 = vor.u32 %v4582_v2, %v4120_v23  ;;  %v4574_v18 = vld [vmem:[#allocation17 + $0x8c] sm:$0xf] }
 0x300   :  { %v5817_v20 = vpop.f32.mrf.mxu0  ;;  %v4570_v43 = vld [vmem:[#allocation17 + $0x6c] sm:$0xf] }
 0x301   :  { %v1937_v14 = vmax.f32 %v1920_v13, 0.0 }
 0x302   :  { %3034 = vmatpush.bf16.msra.mxu1 %v4087_v10  ;;  %v5819_v10 = vpop.f32.mrf.mxu1 }
 0x303   :  { %v1954_v15 = vpack.c.bf16 %v1937_v14, %v1937_v14 }
 0x304   :  { %v1862_v28 = vpop.f32.mrf.mxu2 }
 0x305   :  { %v2021_v30 = vunpack.c.l.b16 %v1954_v15  ;;  %v1900_v31 = vadd.f32 %v1862_v28, %v1748_v21  ;;  %3013 = vmatmul.bf16.vlgmr.msrb.gmra.mxu1 %v5774_v45  ;;  %v4088_v15 = vld [vmem:[#allocation17 + $0x98] sm:$0xf0] }
 0x306   :  { %3035 = vmatpush.bf16.msra.mxu1 %v4071_v39  ;;  %v4091_v33 = vor.u32 %v4574_v18, %v4088_v15  ;;  %v4537_v15 = vld [vmem:[#allocation14 + $0x20] sm:$0xff] }
 0x307   :  { %v5799_v44 = vpack.c.b16 %v2021_v30, %v2020_v29  ;;  %v1921_v35 = vadd.f32 %v5763_v32, %v1900_v31  ;;  %v1755_v29 = vadd.f32 %v5778_v48, %v5776_v47 }
 0x309   :  { %v2340_v36 = vrot.slane %v5799_v44, 1  ;;  %v2052_v38 = vshll.u32 %v5799_v44, 16  ;;  %v1938_v56 = vmax.f32 %v1921_v35, 0.0  ;;  %v2056_v19 = vshrl.u32 %v5799_v44, 16 }
 0x30a   :  { %3036 = vmatpush.bf16.msra.mxu1 %v4055_v12 }
 0x30b   :  { %v2341_v11 = vsel %vm1639_vm2, %v2339_v34, %v2340_v36  ;;  %v2054_v24 = vrot.slane %v2052_v38, 1  ;;  %v1955_v54 = vpack.c.bf16 %v1938_v56, %v1938_v56  ;;  %v4072_v34 = vld [vmem:[#allocation17 + $0x78] sm:$0xf0]  ;;  %v4562_v56 = vld [vmem:[#allocation17 + $0x2c] sm:$0xf] }
 0x30c   :  { %v1864_v59 = vpop.f32.mrf.mxu2  ;;  %2420 = vmatmul.bf16.vlgmr.msra.gmra.mxu0 %v2341_v11  ;;  %v4538_v11 = vld [vmem:[#allocation14 + $0x28] sm:$0xff]  ;;  %v4075_v48 = vor.u32 %v4570_v43, %v4072_v34 }
 0x30d   :  { %v1901_v57 = vadd.f32 %v1864_v59, %v1750_v17  ;;  %v2055_v52 = vsel %vm869_vm1, %v2050_v49, %v2054_v24  ;;  %v2022_v25 = vunpack.c.l.b16 %v1955_v54  ;;  %v2058_v31 = vor.u32 %v2056_v19, %v2054_v24  ;;  %v5834_v17 = vpop.f32.mrf.mxu1  ;;  %2275 = vmatpush.bf16.msra.mxu3 %v4538_v11  ;;  %v4056_v49 = vld [vmem:[#allocation17 + $0x58] sm:$0xf0]  ;;  %v4558_v54 = vld [vmem:[#allocation17 + $0xc] sm:$0xf] }
 0x30e   :  { %3037 = vmatpush.bf16.msra.mxu1 %v4039_v42  ;;  %2176 = vmatmul.bf16.vlgmr.msrb.gmra.mxu3 %v2055_v52  ;;  %v5832_v42 = vpop.f32.mrf.mxu0 }
 0x30f   :  { %v1922_v61 = vadd.f32 %v5763_v32, %v1901_v57  ;;  %v4040_v57 = vld [vmem:[#allocation17 + $0x38] sm:$0xf0] }
 0x311   :  { %v1939_v7 = vmax.f32 %v1922_v61, 0.0  ;;  %2276 = vmatpush.bf16.msra.mxu3 %v4537_v15 }
 0x312   :  { %3038 = vmatpush.bf16.msra.mxu1 %v4023_v4 }
 0x313   :  { %v1956_v63 = vpack.c.bf16 %v1939_v7, %v1939_v7 }
 0x314   :  { %v1867_v13 = vpop.f32.mrf.mxu2 }
 0x315   :  { %v2023_v21 = vunpack.c.l.b16 %v1956_v63  ;;  %v1902_v14 = vadd.f32 %v1867_v13, %v1753_v26  ;;  %3039 = vmatmul.bf16.vlgmr.msra.gmra.mxu1 %v5774_v45  ;;  %v5843_v23 = vpop.f32.mrf.mxu1 }
 0x316   :  { %3057 = vmatpush.bf16.msrb.mxu1 %v4139_v1  ;;  %v4043_v1 = vor.u32 %v4562_v56, %v4040_v57  ;;  %v5841_v2 = vpop.f32.mrf.mxu0 }
 0x317   :  { %v5822_v39 = vpack.c.b16 %v2023_v21, %v2022_v25  ;;  %v1923_v0 = vadd.f32 %v5763_v32, %v1902_v14  ;;  %v4027_v25 = vor.u32 %v4558_v54, %v4024_v3 }
 0x319   :  { %v2342_v16 = vrot.slane %v5822_v39, 1  ;;  %v2060_v28 = vshll.u32 %v5822_v39, 16  ;;  %v1940_v35 = vmax.f32 %v1923_v0, 0.0  ;;  %v2064_v7 = vshrl.u32 %v5822_v39, 16 }
 0x31a   :  { %3058 = vmatpush.bf16.msrb.mxu1 %v4123_v8  ;;  %v1760_v8 = vadd.f32 %v5796_v27, %v5794_v22  ;;  %v1763_v22 = vadd.f32 %v5811_v53, %v5809_v51  ;;  %v1765_v53 = vadd.f32 %v5819_v10, %v5817_v20  ;;  %v1768_v20 = vadd.f32 %v5834_v17, %v5832_v42 }
 0x31b   :  { %v2343_v30 = vsel %vm1639_vm2, %v2340_v36, %v2342_v16  ;;  %v2062_v12 = vrot.slane %v2060_v28, 1  ;;  %v4566_v36 = vld [vmem:[#allocation17 + $0x4c] sm:$0xf]  ;;  %v1957_v24 = vpack.c.bf16 %v1940_v35, %v1940_v35  ;;  %v1770_v42 = vadd.f32 %v5843_v23, %v5841_v2 }
 0x31c   :  { %v1869_v41 = vpop.f32.mrf.mxu2  ;;  %2425 = vmatmul.bf16.gmra.mxu0 %v2343_v30  ;;  %v4059_v60 = vor.u32 %v4566_v36, %v4056_v49  ;;  %v4534_v23 = vld [vmem:[#allocation14 + $0x8] sm:$0xff] }
 0x31d   :  { %v1903_v37 = vadd.f32 %v1869_v41, %v1755_v29  ;;  %v2063_v38 = vsel %vm869_vm1, %v2058_v31, %v2062_v12  ;;  %v2024_v52 = vunpack.c.l.b16 %v1957_v24  ;;  %v2066_v40 = vor.u32 %v2064_v7, %v2062_v12  ;;  %v1772_v28 = vpop.f32.mrf.mxu1 }
 0x31e   :  { %3059 = vmatpush.bf16.msrb.mxu1 %v4107_v9  ;;  %2181 = vmatmul.bf16.gmra.mxu3 %v2063_v38 }
 0x31f   :  { %v1924_v47 = vadd.f32 %v5763_v32, %v1903_v37 }
 0x321   :  { %v1941_v50 = vmax.f32 %v1924_v47, 0.0 }
 0x322   :  { %3060 = vmatpush.bf16.msrb.mxu1 %v4091_v33 }
 0x323   :  { %v1958_v59 = vpack.c.bf16 %v1941_v50, %v1941_v50 }
 0x324   :  { %v1872_v55 = vpop.f32.mrf.mxu2 }
 0x325   :  { %v2025_v62 = vunpack.c.l.b16 %v1958_v59  ;;  %v1904_v4 = vadd.f32 %v1872_v55, %v1758_v46  ;;  %v1774_v47 = vpop.f32.mrf.mxu1  ;;  %v4536_v46 = vld [vmem:[#allocation14 + $0x18] sm:$0xff] }
 0x326   :  { %3061 = vmatpush.bf16.msrb.mxu1 %v4075_v48  ;;  %2277 = vmatpush.bf16.msra.mxu3 %v4536_v46 }
 0x327   :  { %v5839_v61 = vpack.c.b16 %v2025_v62, %v2024_v52  ;;  %v1925_v5 = vadd.f32 %v5763_v32, %v1904_v4 }
 0x329   :  { %v2344_v26 = vrot.slane %v5839_v61, 1  ;;  %v2068_v63 = vshll.u32 %v5839_v61, 16  ;;  %v1942_v14 = vmax.f32 %v1925_v5, 0.0  ;;  %v2072_v35 = vshrl.u32 %v5839_v61, 16 }
 0x32a   :  { %3062 = vmatpush.bf16.msrb.mxu1 %v4059_v60 }
 0x32b   :  { %v2345_v13 = vsel %vm1639_vm2, %v2342_v16, %v2344_v26  ;;  %v2070_v6 = vrot.slane %v2068_v63, 1  ;;  %v1959_v19 = vpack.c.bf16 %v1942_v14, %v1942_v14  ;;  %v1707_v16 = vpop.f32.mrf.mxu0 }
 0x32c   :  { %v1874_v21 = vpop.f32.mrf.mxu2  ;;  %2430 = vmatmul.bf16.gmra.mxu0 %v2345_v13 }
 0x32d   :  { %v1905_v9 = vadd.f32 %v1874_v21, %v1760_v8  ;;  %v2071_v18 = vsel %vm869_vm1, %v2066_v40, %v2070_v6  ;;  %v2026_v31 = vunpack.c.l.b16 %v1959_v19  ;;  %v2074_v37 = vor.u32 %v2072_v35, %v2070_v6  ;;  %v1777_v56 = vpop.f32.mrf.mxu1 }
 0x32e   :  { %3063 = vmatpush.bf16.msrb.mxu1 %v4043_v1  ;;  %2186 = vmatmul.bf16.gmra.mxu3 %v2071_v18  ;;  %v1773_v18 = vadd.f32 %v1772_v28, %v1707_v16 }
 0x32f   :  { %v1926_v0 = vadd.f32 %v5763_v32, %v1905_v9 }
 0x331   :  { %v1943_v27 = vmax.f32 %v1926_v0, 0.0  ;;  %v4535_v0 = vld [vmem:[#allocation14 + $0x10] sm:$0xff] }
 0x332   :  { %3064 = vmatpush.bf16.msrb.mxu1 %v4027_v25  ;;  %2278 = vmatpush.bf16.msra.mxu3 %v4535_v0 }
 0x333   :  { %v1960_v29 = vpack.c.bf16 %v1943_v27, %v1943_v27  ;;  %v1709_v11 = vpop.f32.mrf.mxu0 }
 0x334   :  { %v1877_v30 = vpop.f32.mrf.mxu2  ;;  %v1775_v28 = vadd.f32 %v1774_v47, %v1709_v11 }
 0x335   :  { %3065 = vmatmul.bf16.vlgmr.msrb.gmra.mxu1 %v5774_v45  ;;  %v2027_v12 = vunpack.c.l.b16 %v1960_v29  ;;  %v1906_v33 = vadd.f32 %v1877_v30, %v1763_v22  ;;  %v1779_v13 = vpop.f32.mrf.mxu1 }
 0x336   :  { %2279 = vmatpush.bf16.msra.mxu3 %v4534_v23 }
 0x337   :  { %v5857_v41 = vpack.c.b16 %v2027_v12, %v2026_v31  ;;  %v1927_v43 = vadd.f32 %v5763_v32, %v1906_v33 }
 0x339   :  { %v2346_v34 = vrot.slane %v5857_v41, 1  ;;  %v2076_v51 = vshll.u32 %v5857_v41, 16  ;;  %v1944_v36 = vmax.f32 %v1927_v43, 0.0  ;;  %v2080_v5 = vshrl.u32 %v5857_v41, 16 }
 0x33b   :  { %v2347_v45 = vsel %vm1639_vm2, %v2344_v26, %v2346_v34  ;;  %v2078_v38 = vrot.slane %v2076_v51, 1  ;;  %v1961_v59 = vpack.c.bf16 %v1944_v36, %v1944_v36  ;;  %v1712_v55 = vpop.f32.mrf.mxu0 }
 0x33c   :  { %v1879_v48 = vpop.f32.mrf.mxu2  ;;  %2435 = vmatmul.bf16.gmra.mxu0 %v2347_v45 }
 0x33d   :  { %v1907_v49 = vadd.f32 %v1879_v48, %v1765_v53  ;;  %v2079_v24 = vsel %vm869_vm1, %v2074_v37, %v2078_v38  ;;  %v2028_v52 = vunpack.c.l.b16 %v1961_v59  ;;  %v2082_v7 = vor.u32 %v2080_v5, %v2078_v38 }
 0x33e   :  { %2191 = vmatmul.bf16.gmra.mxu3 %v2079_v24 }
 0x33f   :  { %v1928_v50 = vadd.f32 %v5763_v32, %v1907_v49  ;;  %v1778_v49 = vadd.f32 %v1777_v56, %v1712_v55  ;;  %v5896_v56 = vld [vmem:[%s6075_s19] sm:$0xf] }
 0x341   :  { %v1945_v10 = vmax.f32 %v1928_v50, 0.0 }
 0x343   :  { %v1962_v60 = vpack.c.bf16 %v1945_v10, %v1945_v10  ;;  %v1714_v8 = vpop.f32.mrf.mxu0 }
 0x344   :  { %v1882_v57 = vpop.f32.mrf.mxu2 }
 0x345   :  { %v2029_v62 = vunpack.c.l.b16 %v1962_v60  ;;  %v1908_v4 = vadd.f32 %v1882_v57, %v1768_v20 }
 0x347   :  { %v5870_v1 = vpack.c.b16 %v2029_v62, %v2028_v52  ;;  %v1929_v54 = vadd.f32 %v5763_v32, %v1908_v4  ;;  %v4533_v62 = vld [vmem:[#allocation14] sm:$0xff] }
 0x348   :  { %2280 = vmatpush.bf16.msra.mxu3 %v4533_v62 }
 0x349   :  { %v2348_v3 = vrot.slane %v5870_v1, 1  ;;  %v2084_v26 = vshll.u32 %v5870_v1, 16  ;;  %v1946_v6 = vmax.f32 %v1929_v54, 0.0  ;;  %v2088_v33 = vshrl.u32 %v5870_v1, 16 }
 0x34b   :  { %v2349_v17 = vsel %vm1639_vm2, %v2346_v34, %v2348_v3  ;;  %v2086_v63 = vrot.slane %v2084_v26, 1  ;;  %v1963_v9 = vpack.c.bf16 %v1946_v6, %v1946_v6 }
 0x34c   :  { %v1884_v40 = vpop.f32.mrf.mxu2  ;;  %2440 = vmatmul.bf16.gmra.mxu0 %v2349_v17 }
 0x34d   :  { %v1909_v25 = vadd.f32 %v1884_v40, %v1770_v42  ;;  %v2087_v21 = vsel %vm869_vm1, %v2082_v7, %v2086_v63  ;;  %v2030_v22 = vunpack.c.l.b16 %v1963_v9  ;;  %v2090_v34 = vor.u32 %v2088_v33, %v2086_v63 }
 0x34e   :  { %2196 = vmatmul.bf16.gmra.mxu3 %v2087_v21  ;;  %v2651_v42 = vperm.slane %v5896_v56, 0 }
 0x34f   :  { %v1930_v14 = vadd.f32 %v5763_v32, %v1909_v25 }
 0x351   :  { %v1947_v15 = vmax.f32 %v1930_v14, 0.0 }
 0x353   :  { %v1964_v2 = vpack.c.bf16 %v1947_v15, %v1947_v15 }
 0x354   :  { %v1887_v19 = vpop.f32.mrf.mxu2 }
 0x355   :  { %v2031_v27 = vunpack.c.l.b16 %v1964_v2  ;;  %v1910_v29 = vadd.f32 %v1887_v19, %v1773_v18  ;;  %v2652_v18 = vperm.slane %v5896_v56, 1 }
 0x357   :  { %v5881_v30 = vpack.c.b16 %v2031_v27, %v2030_v22  ;;  %v1931_v31 = vadd.f32 %v5763_v32, %v1910_v29 }
 0x359   :  { %v2350_v12 = vrot.slane %v5881_v30, 1  ;;  %v2092_v16 = vshll.u32 %v5881_v30, 16  ;;  %v1948_v53 = vmax.f32 %v1931_v31, 0.0  ;;  %v2096_v57 = vshrl.u32 %v5881_v30, 16 }
 0x35b   :  { %v2351_v43 = vsel %vm1639_vm2, %v2348_v3, %v2350_v12  ;;  %v2094_v35 = vrot.slane %v2092_v16, 1  ;;  %v1965_v48 = vpack.c.bf16 %v1948_v53, %v1948_v53 }
 0x35c   :  { %v1889_v51 = vpop.f32.mrf.mxu2  ;;  %2445 = vmatmul.bf16.gmra.mxu0 %v2351_v43 }
 0x35d   :  { %v1911_v45 = vadd.f32 %v1889_v51, %v1775_v28  ;;  %v2095_v37 = vsel %vm869_vm1, %v2090_v34, %v2094_v35  ;;  %v2032_v50 = vunpack.c.l.b16 %v1965_v48  ;;  %v2098_v3 = vor.u32 %v2096_v57, %v2094_v35  ;;  %v4254_v48 = vld [vmem:[#allocation17 + $0x1e0] sm:$0xf] }
 0x35e   :  { %2201 = vmatmul.bf16.gmra.mxu3 %v2095_v37 }
 0x35f   :  { %v1932_v38 = vadd.f32 %v5763_v32, %v1911_v45 }
 0x361   :  { %v1949_v36 = vmax.f32 %v1932_v38, 0.0 }
 0x363   :  { %v1966_v24 = vpack.c.bf16 %v1949_v36, %v1949_v36 }
 0x364   :  { %v1892_v46 = vpop.f32.mrf.mxu2 }
 0x365   :  { %v2033_v11 = vunpack.c.l.b16 %v1966_v24  ;;  %v1912_v47 = vadd.f32 %v1892_v46, %v1778_v49 }
 0x367   :  { %v2042_v59 = vpack.c.b16 %v2033_v11, %v2032_v50  ;;  %v1933_v20 = vadd.f32 %v5763_v32, %v1912_v47  ;;  %v5942_v50 = vld [vmem:[#allocation15] ss:$0 sm:$0xff] }
 0x369   :  { %v1950_v10 = vmax.f32 %v1933_v20, 0.0  ;;  %v2352_v60 = vrot.slane %v2042_v59, 1  ;;  %v2100_v52 = vshll.u32 %v2042_v59, 16  ;;  %v2104_v40 = vshrl.u32 %v2042_v59, 16 }
 0x36b   :  { %v1967_v4 = vpack.c.bf16 %v1950_v10, %v1950_v10  ;;  %v2353_v54 = vsel %vm1639_vm2, %v2350_v12, %v2352_v60  ;;  %v2102_v5 = vrot.slane %v2100_v52, 1 }
 0x36c   :  { %v1894_v55 = vpop.f32.mrf.mxu2  ;;  %2450 = vmatmul.bf16.gmra.mxu0 %v2353_v54  ;;  %v4615_v54 = vld [vmem:[#allocation17 + $0x1cc] sm:$0xf0] }
 0x36d   :  { %v2034_v32 = vunpack.c.l.b16 %v1967_v4  ;;  %v2103_v26 = vsel %vm869_vm1, %v2098_v3, %v2102_v5  ;;  %v2106_v14 = vor.u32 %v2104_v40, %v2102_v5  ;;  %v4238_v4 = vld [vmem:[#allocation17 + $0x1c0] sm:$0xf] }
 0x36e   :  { %2206 = vmatmul.bf16.gmra.mxu3 %v2103_v26  ;;  %v4239_v5 = vor.u32 %v4615_v54, %v4238_v4  ;;  %v4607_v4 = vld [vmem:[#allocation17 + $0x18c] sm:$0xf0] }
 0x36f   :  { %v2043_v17 = vpack.c.b16 %v2034_v32, %v2034_v32 }
 0x371   :  { %v2108_v8 = vshll.u32 %v2043_v17, 16  ;;  %v2354_v13 = vrot.slane %v2043_v17, 1 }
 0x372   :  { %v2988_v7 = vpop.f32.mrf.mxu1 }
 0x373   :  { %v5900_v63 = vadd.f32 %v2988_v7, %v2651_v42  ;;  %v2110_v6 = vrot.slane %v2108_v8, 1  ;;  %v2355_v21 = vsel %vm1639_vm2, %v2352_v60, %v2354_v13 }
 0x375   :  { %v2111_v9 = vsel %vm869_vm1, %v2106_v14, %v2110_v6 }
 0x37a   :  { %v2990_v25 = vpop.f32.mrf.mxu1 }
 0x37c   :  { %2455 = vmatmul.bf16.gmra.mxu0 %v2355_v21 }
 0x37e   :  { %2211 = vmatmul.bf16.gmra.mxu3 %v2111_v9 }
 0x382   :  { %v3014_v15 = vpop.f32.mrf.mxu1 }
 0x383   :  { %v5905_v0 = vadd.f32 %v3014_v15, %v2652_v18  ;;  %v4222_v15 = vld [vmem:[#allocation17 + $0x1a0] sm:$0xf] }
 0x38a   :  { %v3016_v2 = vpop.f32.mrf.mxu1 }
 0x38b   :  { %v4611_v2 = vld [vmem:[#allocation17 + $0x1ac] sm:$0xf0] }
 0x38e   :  { %2281 = vmatmul.bf16.vlgmr.msra.gmra.mxu3 %v5788_v58 }
 0x391   :  { %v2177_v23 = vpop.f32.mrf.mxu3 }
 0x392   :  { %v5908_v19 = vpop.f32.mrf.mxu1 }
 0x399   :  { %v2179_v22 = vpop.f32.mrf.mxu3 }
 0x39a   :  { %v3042_v27 = vpop.f32.mrf.mxu1 }
 0x39e   :  { %2286 = vmatmul.bf16.gmra.mxu3 %v5799_v44 }
 0x3a1   :  { %v2182_v29 = vpop.f32.mrf.mxu3 }
 0x3a9   :  { %v2184_v31 = vpop.f32.mrf.mxu3 }
 0x3ae   :  { %2291 = vmatmul.bf16.gmra.mxu3 %v5822_v39 }
 0x3b1   :  { %v5914_v33 = vpop.f32.mrf.mxu3 }
 0x3b2   :  { %v5912_v12 = vpop.f32.mrf.mxu1 }
 0x3b9   :  { %v5916_v28 = vpop.f32.mrf.mxu3 }
 0x3ba   :  { %v3068_v16 = vpop.f32.mrf.mxu1 }
 0x3be   :  { %2296 = vmatmul.bf16.gmra.mxu3 %v5839_v61  ;;  %v2421_v61 = vpop.f32.mrf.mxu0 }
 0x3c1   :  { %v5919_v58 = vpop.f32.mrf.mxu3 }
 0x3c6   :  { %v2423_v45 = vpop.f32.mrf.mxu0 }
 0x3c9   :  { %v5921_v43 = vpop.f32.mrf.mxu3 }
 0x3ce   :  { %2301 = vmatmul.bf16.gmra.mxu3 %v5857_v41  ;;  %v2426_v37 = vpop.f32.mrf.mxu0 }
 0x3d1   :  { %v5924_v44 = vpop.f32.mrf.mxu3 }
 0x3d6   :  { %v2428_v24 = vpop.f32.mrf.mxu0 }
 0x3d9   :  { %v5926_v34 = vpop.f32.mrf.mxu3 }
 0x3de   :  { %2306 = vmatmul.bf16.gmra.mxu3 %v5870_v1  ;;  %v4619_v1 = vld [vmem:[#allocation17 + $0x1ec] sm:$0xf0] }
 0x3df   :  { %v4255_v36 = vor.u32 %v4619_v1, %v4254_v48 }
 0x3e1   :  { %v5929_v39 = vpop.f32.mrf.mxu3  ;;  %2992 = vmatpush.bf16.msra.mxu2 %v4255_v36 }
 0x3e5   :  { %2993 = vmatpush.bf16.msra.mxu2 %v4239_v5 }
 0x3e9   :  { %v5931_v35 = vpop.f32.mrf.mxu3 }
 0x3ee   :  { %2311 = vmatmul.bf16.gmra.mxu3 %v5881_v30 }
 0x3f1   :  { %v5934_v51 = vpop.f32.mrf.mxu3 }
 0x3f9   :  { %v5936_v53 = vpop.f32.mrf.mxu3 }
 0x3fe   :  { %2316 = vmatmul.bf16.gmra.mxu3 %v2042_v59  ;;  %v2431_v59 = vpop.f32.mrf.mxu0 }
 0x401   :  { %v5938_v41 = vpop.f32.mrf.mxu3 }
 0x406   :  { %v2433_v26 = vpop.f32.mrf.mxu0 }
 0x409   :  { %v5940_v38 = vpop.f32.mrf.mxu3 }
 0x40e   :  { %v2436_v14 = vpop.f32.mrf.mxu0 }
 0x411   :  { %v2282_v49 = vpop.f32.mrf.mxu3 }
 0x412   :  { %v2283_v46 = vadd.f32 %v2282_v49, %v2177_v23 }
 0x414   :  { %v2461_v30 = vadd.f32 %v2421_v61, %v2283_v46 }
 0x416   :  { %v2481_v10 = vadd.f32 %v5942_v50, %v2461_v30  ;;  %v2438_v49 = vpop.f32.mrf.mxu0 }
 0x418   :  { %v2497_v52 = vmax.f32 %v2481_v10, 0.0 }
 0x419   :  { %v2284_v11 = vpop.f32.mrf.mxu3 }
 0x41a   :  { %v2285_v47 = vadd.f32 %v2284_v11, %v2179_v22  ;;  %v4223_v22 = vor.u32 %v4611_v2, %v4222_v15 }
 0x41c   :  { %v2462_v20 = vadd.f32 %v2423_v45, %v2285_v47  ;;  %2994 = vmatpush.bf16.msra.mxu2 %v4223_v22  ;;  %v4603_v22 = vld [vmem:[#allocation17 + $0x16c] sm:$0xf0] }
 0x41e   :  { %v2482_v60 = vadd.f32 %v5942_v50, %v2462_v20 }
 0x420   :  { %v2498_v57 = vmax.f32 %v2482_v60, 0.0 }
 0x421   :  { %v2287_v62 = vpop.f32.mrf.mxu3 }
 0x422   :  { %v2513_v3 = vsel %vm1634_vm7, %v2498_v57, -inf  ;;  %v2288_v32 = vadd.f32 %v2287_v62, %v2182_v29 }
 0x423   :  { %v2514_v55 = vmax.f32 %v2497_v52, %v2513_v3 }
 0x424   :  { %v2463_v42 = vadd.f32 %v2426_v37, %v2288_v32  ;;  %v5957_v32 = vpop.f32.mrf.mxu0 }
 0x425   :  { %v2515_v8 = vrot.slane %v2514_v55, 4 }
 0x426   :  { %v2483_v40 = vadd.f32 %v5942_v50, %v2463_v42 }
 0x427   :  { %v2516_v25 = vmax.f32 %v2514_v55, %v2515_v8 }
 0x428   :  { %v2499_v9 = vmax.f32 %v2483_v40, 0.0 }
 0x429   :  { %v2289_v17 = vpop.f32.mrf.mxu3  ;;  %v2517_v27 = vrot.slane %v2516_v25, 2 }
 0x42a   :  { %v2290_v7 = vadd.f32 %v2289_v17, %v2184_v31 }
 0x42b   :  { %v2518_v61 = vmax.f32 %v2516_v25, %v2517_v27 }
 0x42c   :  { %v2464_v13 = vadd.f32 %v2428_v24, %v2290_v7 }
 0x42d   :  { %v2519_v24 = vrot.slane %v2518_v61, 1 }
 0x42e   :  { %v2484_v6 = vadd.f32 %v5942_v50, %v2464_v13 }
 0x42f   :  { %v2520_v10 = vmax.f32 %v2518_v61, %v2519_v24 }
 0x430   :  { %v2500_v21 = vmax.f32 %v2484_v6, 0.0 }
 0x431   :  { %v2292_v18 = vpop.f32.mrf.mxu3 }
 0x432   :  { %v2521_v23 = vsel %vm1634_vm7, %v2500_v21, -inf  ;;  %v2293_v16 = vadd.f32 %v2292_v18, %v5914_v33 }
 0x433   :  { %v2522_v29 = vmax.f32 %v2499_v9, %v2521_v23  ;;  %v4190_v23 = vld [vmem:[#allocation17 + $0x160] sm:$0xf] }
 0x434   :  { %v2465_v48 = vadd.f32 %v2431_v59, %v2293_v16  ;;  %v4206_v59 = vld [vmem:[#allocation17 + $0x180] sm:$0xf] }
 0x435   :  { %v2523_v31 = vrot.slane %v2522_v29, 4  ;;  %v4207_v3 = vor.u32 %v4607_v4, %v4206_v59  ;;  %v4256_v59 = vld [vmem:[#allocation17 + $0x1f0] sm:$0xf0] }
 0x436   :  { %v2485_v47 = vadd.f32 %v5942_v50, %v2465_v48 }
 0x437   :  { %v2524_v45 = vmax.f32 %v2522_v29, %v2523_v31  ;;  %2995 = vmatpush.bf16.msra.mxu2 %v4207_v3  ;;  %v4191_v29 = vor.u32 %v4603_v22, %v4190_v23  ;;  %v4240_v3 = vld [vmem:[#allocation17 + $0x1d0] sm:$0xf0] }
 0x438   :  { %v2501_v52 = vmax.f32 %v2485_v47, 0.0  ;;  %v4192_v23 = vld [vmem:[#allocation17 + $0x170] sm:$0xf0] }
 0x439   :  { %v2525_v37 = vrot.slane %v2524_v45, 2  ;;  %v2294_v1 = vpop.f32.mrf.mxu3 }
 0x43a   :  { %v2295_v36 = vadd.f32 %v2294_v1, %v5916_v28  ;;  %v4174_v1 = vld [vmem:[#allocation17 + $0x140] sm:$0xf] }
 0x43b   :  { %v2526_v46 = vmax.f32 %v2524_v45, %v2525_v37  ;;  %2996 = vmatpush.bf16.msra.mxu2 %v4191_v29 }
 0x43c   :  { %v2466_v30 = vadd.f32 %v2433_v26, %v2295_v36  ;;  %v4599_v36 = vld [vmem:[#allocation17 + $0x14c] sm:$0xf0] }
 0x43d   :  { %v2527_v11 = vrot.slane %v2526_v46, 1  ;;  %v4175_v24 = vor.u32 %v4599_v36, %v4174_v1 }
 0x43e   :  { %v2486_v20 = vadd.f32 %v5942_v50, %v2466_v30  ;;  %v4158_v30 = vld [vmem:[#allocation17 + $0x120] sm:$0xf] }
 0x43f   :  { %v2528_v60 = vmax.f32 %v2526_v46, %v2527_v11  ;;  %2997 = vmatpush.bf16.msra.mxu2 %v4175_v24  ;;  %v4595_v11 = vld [vmem:[#allocation17 + $0x12c] sm:$0xf0] }
 0x440   :  { %v2502_v57 = vmax.f32 %v2486_v20, 0.0 }
 0x441   :  { %v2577_v33 = vsel %vm1628_vm4, %v2520_v10, %v2528_v60  ;;  %v2297_v62 = vpop.f32.mrf.mxu3  ;;  %v4159_v10 = vor.u32 %v4595_v11, %v4158_v30  ;;  %v4589_v11 = vld [vmem:[#allocation17 + $0x104] sm:$0xf] }
 0x442   :  { %v2529_v28 = vsel %vm1634_vm7, %v2502_v57, -inf  ;;  %v2298_v54 = vadd.f32 %v2297_v62, %v5919_v58  ;;  %v2443_v58 = vpop.f32.mrf.mxu0  ;;  %v4142_v57 = vld [vmem:[#allocation17 + $0x100] sm:$0xf]  ;;  %v4617_v62 = vld [vmem:[#allocation17 + $0x1e4] sm:$0xf] }
 0x443   :  { %v2530_v5 = vmax.f32 %v2501_v52, %v2529_v28  ;;  %2998 = vmatpush.bf16.msra.mxu2 %v4159_v10  ;;  %v4259_v4 = vor.u32 %v4617_v62, %v4256_v59 }
 0x444   :  { %v2467_v55 = vadd.f32 %v2436_v14, %v2298_v54  ;;  %v4613_v54 = vld [vmem:[#allocation17 + $0x1c4] sm:$0xf] }
 0x445   :  { %v2531_v26 = vrot.slane %v2530_v5, 4 }
 0x446   :  { %v2487_v25 = vadd.f32 %v5942_v50, %v2467_v55 }
 0x447   :  { %v2532_v42 = vmax.f32 %v2530_v5, %v2531_v26  ;;  %v4243_v5 = vor.u32 %v4613_v54, %v4240_v3  ;;  %v4609_v26 = vld [vmem:[#allocation17 + $0x1a4] sm:$0xf] }
 0x448   :  { %v2503_v15 = vmax.f32 %v2487_v25, 0.0 }
 0x449   :  { %v2533_v17 = vrot.slane %v2532_v42, 2  ;;  %v2299_v7 = vpop.f32.mrf.mxu3 }
 0x44a   :  { %v2300_v8 = vadd.f32 %v2299_v7, %v5921_v43  ;;  %v2446_v61 = vpop.f32.mrf.mxu0 }
 0x44b   :  { %v2534_v13 = vmax.f32 %v2532_v42, %v2533_v17  ;;  %v4224_v42 = vld [vmem:[#allocation17 + $0x1b0] sm:$0xf0] }
 0x44c   :  { %v2468_v40 = vadd.f32 %v2438_v49, %v2300_v8  ;;  %v4227_v17 = vor.u32 %v4609_v26, %v4224_v42 }
 0x44d   :  { %v2535_v6 = vrot.slane %v2534_v13, 1 }
 0x44e   :  { %v2488_v21 = vadd.f32 %v5942_v50, %v2468_v40  ;;  %v4605_v40 = vld [vmem:[#allocation17 + $0x184] sm:$0xf] }
 0x44f   :  { %v2536_v9 = vmax.f32 %v2534_v13, %v2535_v6  ;;  %v4208_v6 = vld [vmem:[#allocation17 + $0x190] sm:$0xf0] }
 0x450   :  { %v2504_v18 = vmax.f32 %v2488_v21, 0.0  ;;  %v4211_v25 = vor.u32 %v4605_v40, %v4208_v6 }
 0x451   :  { %v2578_v14 = vsel %vm1630_vm5, %v2577_v33, %v2536_v9  ;;  %v2302_v2 = vpop.f32.mrf.mxu3  ;;  %v4591_v33 = vld [vmem:[#allocation17 + $0x10c] sm:$0xf0] }
 0x452   :  { %v2537_v27 = vsel %vm1634_vm7, %v2504_v18, -inf  ;;  %v2448_v60 = vpop.f32.mrf.mxu0  ;;  %v4143_v52 = vor.u32 %v4591_v33, %v4142_v57  ;;  %v2303_v9 = vadd.f32 %v2302_v2, %v5924_v44  ;;  %v4597_v44 = vld [vmem:[#allocation17 + $0x144] sm:$0xf]  ;;  %v4176_v2 = vld [vmem:[#allocation17 + $0x150] sm:$0xf0] }
 0x453   :  { %v2538_v43 = vmax.f32 %v2503_v15, %v2537_v27  ;;  %v4601_v15 = vld [vmem:[#allocation17 + $0x164] sm:$0xf] }
 0x454   :  { %2999 = vmatpush.bf16.msra.mxu2 %v4143_v52  ;;  %v4195_v27 = vor.u32 %v4601_v15, %v4192_v23  ;;  %v2469_v29 = vadd.f32 %v5957_v32, %v2303_v9  ;;  %v4593_v32 = vld [vmem:[#allocation17 + $0x124] sm:$0xf] }
 0x455   :  { %v2539_v31 = vrot.slane %v2538_v43, 4 }
 0x457   :  { %v2540_v16 = vmax.f32 %v2538_v43, %v2539_v31 }
 0x458   :  { %3018 = vmatpush.bf16.msrb.mxu2 %v4259_v4 }
 0x459   :  { %v2541_v45 = vrot.slane %v2540_v16, 2  ;;  %v2304_v37 = vpop.f32.mrf.mxu3 }
 0x45a   :  { %v2451_v55 = vpop.f32.mrf.mxu0  ;;  %v2305_v7 = vadd.f32 %v2304_v37, %v5926_v34 }
 0x45b   :  { %v2542_v48 = vmax.f32 %v2540_v16, %v2541_v45  ;;  %v4179_v45 = vor.u32 %v4597_v44, %v4176_v2 }
 0x45c   :  { %3019 = vmatpush.bf16.msrb.mxu2 %v4243_v5  ;;  %v2470_v21 = vadd.f32 %v2443_v58, %v2305_v7 }
 0x45d   :  { %v2543_v49 = vrot.slane %v2542_v48, 1 }
 0x45f   :  { %v2544_v46 = vmax.f32 %v2542_v48, %v2543_v49  ;;  %v4160_v49 = vld [vmem:[#allocation17 + $0x130] sm:$0xf0] }
 0x460   :  { %3020 = vmatpush.bf16.msrb.mxu2 %v4227_v17 }
 0x461   :  { %v5965_v47 = vsel %vm1632_vm6, %v2578_v14, %v2544_v46  ;;  %v2307_v20 = vpop.f32.mrf.mxu3  ;;  %v4163_v46 = vor.u32 %v4593_v32, %v4160_v49 }
 0x462   :  { %v2308_v14 = vadd.f32 %v2307_v20, %v5929_v39  ;;  %v2453_v34 = vpop.f32.mrf.mxu0 }
 0x464   :  { %3021 = vmatpush.bf16.msrb.mxu2 %v4211_v25  ;;  %v2471_v58 = vadd.f32 %v2446_v61, %v2308_v14 }
 0x466   :  { %v2491_v36 = vadd.f32 %v5942_v50, %v2471_v58 }
 0x468   :  { %3022 = vmatpush.bf16.msrb.mxu2 %v4195_v27  ;;  %v2507_v52 = vmax.f32 %v2491_v36, 0.0  ;;  %v4620_v36 = vld [vmem:[#allocation17 + $0x1f4] sm:$0xf0] }
 0x469   :  { %v2309_v28 = vpop.f32.mrf.mxu3 }
 0x46a   :  { %v2310_v8 = vadd.f32 %v2309_v28, %v5931_v35  ;;  %v2490_v35 = vadd.f32 %v5942_v50, %v2470_v21  ;;  %v2456_v33 = vpop.f32.mrf.mxu0 }
 0x46c   :  { %v2472_v18 = vadd.f32 %v2448_v60, %v2310_v8  ;;  %v2506_v37 = vmax.f32 %v2490_v35, 0.0  ;;  %3023 = vmatpush.bf16.msrb.mxu2 %v4179_v45 }
 0x46e   :  { %v2492_v43 = vadd.f32 %v5942_v50, %v2472_v18  ;;  %v2545_v30 = vsel %vm1634_vm7, %v2506_v37, -inf }
 0x470   :  { %v2508_v48 = vmax.f32 %v2492_v43, 0.0  ;;  %3024 = vmatpush.bf16.msrb.mxu2 %v4163_v46 }
 0x471   :  { %v2312_v13 = vpop.f32.mrf.mxu3 }
 0x472   :  { %v2313_v22 = vadd.f32 %v2312_v13, %v5934_v51  ;;  %v2489_v51 = vadd.f32 %v5942_v50, %v2469_v29  ;;  %v2553_v10 = vsel %vm1634_vm7, %v2508_v48, -inf  ;;  %v2458_v40 = vpop.f32.mrf.mxu0 }
 0x473   :  { %v2554_v54 = vmax.f32 %v2507_v52, %v2553_v10  ;;  %v4230_v10 = vld [vmem:[#allocation17 + $0x1a8] sm:$0xf] }
 0x474   :  { %v2473_v16 = vadd.f32 %v2451_v55, %v2313_v22  ;;  %v2505_v20 = vmax.f32 %v2489_v51, 0.0 }
 0x475   :  { %v2555_v26 = vrot.slane %v2554_v54, 4 }
 0x476   :  { %v2493_v24 = vadd.f32 %v5942_v50, %v2473_v16  ;;  %v2546_v59 = vmax.f32 %v2505_v20, %v2545_v30 }
 0x477   :  { %v2556_v6 = vmax.f32 %v2554_v54, %v2555_v26  ;;  %v4600_v54 = vld [vmem:[#allocation17 + $0x154] sm:$0xf0] }
 0x478   :  { %v2509_v4 = vmax.f32 %v2493_v24, 0.0  ;;  %v2547_v55 = vrot.slane %v2546_v59, 4 }
 0x479   :  { %v2314_v31 = vpop.f32.mrf.mxu3  ;;  %v2557_v15 = vrot.slane %v2556_v6, 2 }
 0x47a   :  { %v2315_v39 = vadd.f32 %v2314_v31, %v5936_v53  ;;  %v4144_v53 = vld [vmem:[#allocation17 + $0x110] sm:$0xf0]  ;;  %v2548_v8 = vmax.f32 %v2546_v59, %v2547_v55  ;;  %v4604_v59 = vld [vmem:[#allocation17 + $0x174] sm:$0xf0] }
 0x47b   :  { %v4147_v57 = vor.u32 %v4589_v11, %v4144_v53  ;;  %v2558_v35 = vmax.f32 %v2556_v6, %v2557_v15  ;;  %v4246_v11 = vld [vmem:[#allocation17 + $0x1c8] sm:$0xf]  ;;  %v4616_v53 = vld [vmem:[#allocation17 + $0x1d4] sm:$0xf0]  ;;  %v4614_v6 = vld [vmem:[#allocation17 + $0x1cc] sm:$0xf] }
 0x47c   :  { %v2474_v1 = vadd.f32 %v2453_v34, %v2315_v39  ;;  %v2549_v18 = vrot.slane %v2548_v8, 2  ;;  %v4247_v20 = vor.u32 %v4616_v53, %v4246_v11  ;;  %v4596_v55 = vld [vmem:[#allocation17 + $0x134] sm:$0xf0]  ;;  %v4294_v53 = vld [vmem:[#allocation18 + $0x30] sm:$0xf] }
 0x47d   :  { %3025 = vmatpush.bf16.msrb.mxu2 %v4147_v57  ;;  %v2559_v31 = vrot.slane %v2558_v35, 1  ;;  %v4214_v57 = vld [vmem:[#allocation17 + $0x188] sm:$0xf] }
 0x47e   :  { %v2494_v61 = vadd.f32 %v5942_v50, %v2474_v1  ;;  %v2550_v27 = vmax.f32 %v2548_v8, %v2549_v18  ;;  %v4262_v1 = vld [vmem:[#allocation17 + $0x1e8] sm:$0xf]  ;;  %v4264_v8 = vld [vmem:[#allocation17 + $0x1f8] sm:$0xf0]  ;;  %v4636_v18 = vld [vmem:[#allocation18 + $0x74] sm:$0xf0] }
 0x47f   :  { %v2560_v45 = vmax.f32 %v2558_v35, %v2559_v31  ;;  %v4263_v46 = vor.u32 %v4620_v36, %v4262_v1  ;;  %v4310_v31 = vld [vmem:[#allocation18 + $0x50] sm:$0xf]  ;;  %v4630_v1 = vld [vmem:[#allocation18 + $0x44] sm:$0xf0] }
 0x480   :  { %v2510_v60 = vmax.f32 %v2494_v61, 0.0  ;;  %v2551_v58 = vrot.slane %v2550_v27, 1 }
 0x481   :  { %v2317_v62 = vpop.f32.mrf.mxu3 }
 0x482   :  { %v2561_v28 = vsel %vm1634_vm7, %v2510_v60, -inf  ;;  %v2318_v5 = vadd.f32 %v2317_v62, %v5938_v41  ;;  %v2552_v39 = vmax.f32 %v2550_v27, %v2551_v58  ;;  %v4198_v62 = vld [vmem:[#allocation17 + $0x168] sm:$0xf] }
 0x483   :  { %v2562_v3 = vmax.f32 %v2509_v4, %v2561_v28  ;;  %v4199_v4 = vor.u32 %v4604_v59, %v4198_v62  ;;  %v4182_v28 = vld [vmem:[#allocation17 + $0x148] sm:$0xf]  ;;  %v4168_v62 = vld [vmem:[#allocation17 + $0x138] sm:$0xf0] }
 0x484   :  { %v2475_v17 = vadd.f32 %v2456_v33, %v2318_v5  ;;  %v2580_v48 = vsel %vm1634_vm7, %v5965_v47, %v2552_v39  ;;  %v4612_v47 = vld [vmem:[#allocation17 + $0x1b4] sm:$0xf0]  ;;  %v4166_v5 = vld [vmem:[#allocation17 + $0x128] sm:$0xf] }
 0x485   :  { %v2563_v42 = vrot.slane %v2562_v3, 4  ;;  %v2581_v49 = vsel %vm1636_vm8, %v2580_v48, %v2560_v45  ;;  %v4231_v60 = vor.u32 %v4612_v47, %v4230_v10  ;;  %v4608_v33 = vld [vmem:[#allocation17 + $0x194] sm:$0xf0]  ;;  %v4167_v26 = vor.u32 %v4596_v55, %v4166_v5  ;;  %v4634_v27 = vld [vmem:[#allocation18 + $0x64] sm:$0xf0] }
 0x486   :  { %v2495_v9 = vadd.f32 %v5942_v50, %v2475_v17  ;;  %v4215_v52 = vor.u32 %v4608_v33, %v4214_v57  ;;  %v4592_v17 = vld [vmem:[#allocation17 + $0x114] sm:$0xf0]  ;;  %v4606_v45 = vld [vmem:[#allocation17 + $0x18c] sm:$0xf]  ;;  %v4302_v48 = vld [vmem:[#allocation18 + $0x40] sm:$0xf] }
 0x487   :  { %v2564_v25 = vmax.f32 %v2562_v3, %v2563_v42  ;;  %v4183_v3 = vor.u32 %v4600_v54, %v4182_v28  ;;  %v4150_v42 = vld [vmem:[#allocation17 + $0x108] sm:$0xf]  ;;  %v4648_v39 = vld [vmem:[#allocation18 + $0xd4] sm:$0xf0]  ;;  %v4598_v47 = vld [vmem:[#allocation17 + $0x14c] sm:$0xf] }
 0x488   :  { %v2511_v22 = vmax.f32 %v2495_v9, 0.0  ;;  %v4326_v9 = vld [vmem:[#allocation18 + $0x70] sm:$0xf]  ;;  %v4152_v28 = vld [vmem:[#allocation17 + $0x118] sm:$0xf0] }
 0x489   :  { %v2319_v7 = vpop.f32.mrf.mxu3  ;;  %v2565_v23 = vrot.slane %v2564_v25, 2  ;;  %v4644_v5 = vld [vmem:[#allocation18 + $0xb4] sm:$0xf0] }
 0x48a   :  { %v2320_v13 = vadd.f32 %v2319_v7, %v5940_v38  ;;  %v4618_v7 = vld [vmem:[#allocation17 + $0x1ec] sm:$0xf] }
 0x48b   :  { %v2566_v43 = vmax.f32 %v2564_v25, %v2565_v23  ;;  %v4248_v25 = vld [vmem:[#allocation17 + $0x1d8] sm:$0xf0]  ;;  %v4327_v23 = vor.u32 %v4636_v18, %v4326_v9 }
 0x48c   :  { %v2476_v21 = vadd.f32 %v2458_v40, %v2320_v13  ;;  %v4151_v13 = vor.u32 %v4592_v17, %v4150_v42  ;;  %v4267_v40 = vor.u32 %v4618_v7, %v4264_v8  ;;  %v4251_v15 = vor.u32 %v4614_v6, %v4248_v25  ;;  %v4328_v42 = vld [vmem:[#allocation18 + $0x78] sm:$0xf0]  ;;  %v4286_v7 = vld [vmem:[#allocation18 + $0x20] sm:$0xf]  ;;  %v4626_v8 = vld [vmem:[#allocation18 + $0x24] sm:$0xf0] }
 0x48d   :  { %v2567_v2 = vrot.slane %v2566_v43, 1  ;;  %3285 = vmatpush.bf16.msrb.mxu3 %v4327_v23  ;;  %v4320_v6 = vld [vmem:[#allocation18 + $0x68] sm:$0xf0]  ;;  %v4312_v9 = vld [vmem:[#allocation18 + $0x58] sm:$0xf0] }
 0x48e   :  { %v2496_v14 = vadd.f32 %v5942_v50, %v2476_v21  ;;  %v4610_v21 = vld [vmem:[#allocation17 + $0x1ac] sm:$0xf] }
 0x48f   :  { %v2568_v50 = vmax.f32 %v2566_v43, %v2567_v2  ;;  %v4650_v43 = vld [vmem:[#allocation18 + $0xe4] sm:$0xf0] }
 0x490   :  { %v2512_v41 = vmax.f32 %v2496_v14, 0.0  ;;  %v4390_v14 = vld [vmem:[#allocation18 + $0xf0] sm:$0xf] }
 0x491   :  { %v2582_v24 = vsel %vm1563_vm3, %v2581_v49, %v2568_v50  ;;  %v4646_v49 = vld [vmem:[#allocation18 + $0xc4] sm:$0xf0] }
 0x492   :  { %v2569_v34 = vsel %vm1634_vm7, %v2512_v41, -inf  ;;  %v4652_v41 = vld [vmem:[#allocation18 + $0xf4] sm:$0xf0] }
 0x493   :  { %v2570_v29 = vmax.f32 %v2511_v22, %v2569_v34  ;;  %v4318_v22 = vld [vmem:[#allocation18 + $0x60] sm:$0xf]  ;;  %v4232_v34 = vld [vmem:[#allocation17 + $0x1b8] sm:$0xf0]  ;;  %v4391_v35 = vor.u32 %v4652_v41, %v4390_v14  ;;  %v4642_v14 = vld [vmem:[#allocation18 + $0xa4] sm:$0xf0] }
 0x494   :  { %v4235_v2 = vor.u32 %v4610_v21, %v4232_v34  ;;  %v4631_v21 = vld [vmem:[#allocation18 + $0x54] sm:$0xf]  ;;  %v4304_v41 = vld [vmem:[#allocation18 + $0x48] sm:$0xf0]  ;;  %v4296_v34 = vld [vmem:[#allocation18 + $0x38] sm:$0xf0] }
 0x495   :  { %v2571_v38 = vrot.slane %v2570_v29, 4  ;;  %3298 = vmatpush.bf16.msrb.mxu0 %v4391_v35  ;;  %v4315_v18 = vor.u32 %v4631_v21, %v4312_v9  ;;  %v4637_v9 = vld [vmem:[#allocation18 + $0x84] sm:$0xf] }
 0x497   :  { %v2572_v44 = vmax.f32 %v2570_v29, %v2571_v38  ;;  %v4382_v29 = vld [vmem:[#allocation18 + $0xe0] sm:$0xf]  ;;  %v4319_v38 = vor.u32 %v4634_v27, %v4318_v22  ;;  %v4627_v27 = vld [vmem:[#allocation18 + $0x34] sm:$0xf] }
 0x498   :  { %v4383_v58 = vor.u32 %v4650_v43, %v4382_v29  ;;  %v4299_v35 = vor.u32 %v4627_v27, %v4296_v34  ;;  %v4278_v29 = vld [vmem:[#allocation18 + $0x10] sm:$0xf]  ;;  %v4624_v43 = vld [vmem:[#allocation18 + $0x14] sm:$0xf0]  ;;  %v2654_v27 = vperm.slane %v5896_v56, 3 }
 0x499   :  { %v2573_v16 = vrot.slane %v2572_v44, 2  ;;  %3286 = vmatpush.bf16.msrb.mxu3 %v4319_v38  ;;  %v4625_v38 = vld [vmem:[#allocation18 + $0x24] sm:$0xf] }
 0x49a   :  { %3299 = vmatpush.bf16.msrb.mxu0 %v4383_v58  ;;  %v4279_v58 = vor.u32 %v4624_v43, %v4278_v29  ;;  %v3067_v34 = vadd.f32 %v5912_v12, %v2654_v27  ;;  %v4656_v12 = vld [vmem:[#allocation20 + $0x18] sm:$0xff] }
 0x49b   :  { %v2574_v37 = vmax.f32 %v2572_v44, %v2573_v16  ;;  %v4632_v44 = vld [vmem:[#allocation18 + $0x54] sm:$0xf0]  ;;  %v4374_v16 = vld [vmem:[#allocation18 + $0xd0] sm:$0xf] }
 0x49c   :  { %v4311_v50 = vor.u32 %v4632_v44, %v4310_v31  ;;  %v4288_v31 = vld [vmem:[#allocation18 + $0x28] sm:$0xf0] }
 0x49d   :  { %v2575_v51 = vrot.slane %v2574_v37, 1  ;;  %v4291_v44 = vor.u32 %v4625_v38, %v4288_v31  ;;  %v4659_v31 = vld [vmem:[#allocation20 + $0x30] sm:$0xff] }
 0x49e   :  { %3287 = vmatpush.bf16.msrb.mxu3 %v4311_v50  ;;  %v4270_v50 = vld [vmem:[#allocation18] sm:$0xf] }
 0x49f   :  { %v2576_v32 = vmax.f32 %v2574_v37, %v2575_v51  ;;  %v4216_v37 = vld [vmem:[#allocation17 + $0x198] sm:$0xf0]  ;;  %v4375_v51 = vor.u32 %v4648_v39, %v4374_v16 }
 0x4a0   :  { %v4219_v36 = vor.u32 %v4606_v45, %v4216_v37  ;;  %v4280_v16 = vld [vmem:[#allocation18 + $0x18] sm:$0xf0] }
 0x4a1   :  { %v2583_v61 = vsel %vm1639_vm2, %v2582_v24, %v2576_v32  ;;  %v4366_v32 = vld [vmem:[#allocation18 + $0xc0] sm:$0xf]  ;;  %v4602_v24 = vld [vmem:[#allocation17 + $0x16c] sm:$0xf]  ;;  %3300 = vmatpush.bf16.msrb.mxu0 %v4375_v51  ;;  %v4622_v51 = vld [vmem:[#allocation18 + $0x4] sm:$0xf0] }
 0x4a2   :  { %v5993_v30 = vpack.c.bf16 %v2583_v61, %v2583_v61  ;;  %v4200_v61 = vld [vmem:[#allocation17 + $0x178] sm:$0xf0]  ;;  %v4367_v11 = vor.u32 %v4646_v49, %v4366_v32  ;;  %v4651_v32 = vld [vmem:[#allocation18 + $0xf4] sm:$0xf] }
 0x4a3   :  { %v4203_v10 = vor.u32 %v4602_v24, %v4200_v61  ;;  %v4392_v49 = vld [vmem:[#allocation18 + $0xf8] sm:$0xf0] }
 0x4a4   :  { %3000 = vmatmul.bf16.vlgmr.msra.gmra.mxu2 %v5993_v30  ;;  %v4395_v61 = vor.u32 %v4651_v32, %v4392_v49  ;;  %v4653_v32 = vld [vmem:[#allocation20] sm:$0xff]  ;;  %v4662_v49 = vld [vmem:[#allocation20 + $0x48] sm:$0xff] }
 0x4a5   :  { %3044 = vmatpush.bf16.msra.mxu2 %v4263_v46  ;;  %v4303_v46 = vor.u32 %v4630_v1, %v4302_v48  ;;  %3301 = vmatpush.bf16.msrb.mxu0 %v4367_v11  ;;  %v4621_v48 = vld [vmem:[#allocation18 + $0x4] sm:$0xf]  ;;  %v4271_v1 = vor.u32 %v4622_v51, %v4270_v50  ;;  %v4640_v11 = vld [vmem:[#allocation18 + $0x94] sm:$0xf0]  ;;  %v4655_v50 = vld [vmem:[#allocation20 + $0x10] sm:$0xff] }
 0x4a6   :  { %v4664_v51 = vld [vmem:[#allocation20 + $0x58] sm:$0xff] }
 0x4a7   :  { %3288 = vmatpush.bf16.msrb.mxu3 %v4303_v46  ;;  %v4342_v46 = vld [vmem:[#allocation18 + $0x90] sm:$0xf] }
 0x4a9   :  { %3045 = vmatpush.bf16.msra.mxu2 %v4247_v20  ;;  %v4628_v20 = vld [vmem:[#allocation18 + $0x34] sm:$0xf0] }
 0x4aa   :  { %v4295_v57 = vor.u32 %v4628_v20, %v4294_v53  ;;  %v4343_v53 = vor.u32 %v4640_v11, %v4342_v46  ;;  %v4649_v20 = vld [vmem:[#allocation18 + $0xe4] sm:$0xf]  ;;  %v4676_v11 = vld [vmem:[%s6057_s16 + $0x38] sm:$0xff] }
 0x4ac   :  { %3289 = vmatpush.bf16.msrb.mxu3 %v4295_v57  ;;  %v4376_v57 = vld [vmem:[#allocation18 + $0xd8] sm:$0xf0] }
 0x4ad   :  { %3046 = vmatpush.bf16.msra.mxu2 %v4231_v60  ;;  %v4184_v60 = vld [vmem:[#allocation17 + $0x158] sm:$0xf0] }
 0x4ae   :  { %v4187_v33 = vor.u32 %v4598_v47, %v4184_v60  ;;  %v4647_v60 = vld [vmem:[#allocation18 + $0xd4] sm:$0xf] }
 0x4b1   :  { %3047 = vmatpush.bf16.msra.mxu2 %v4215_v52  ;;  %v4594_v52 = vld [vmem:[#allocation17 + $0x12c] sm:$0xf] }
 0x4b2   :  { %v4171_v59 = vor.u32 %v4594_v52, %v4168_v62  ;;  %v4638_v52 = vld [vmem:[#allocation18 + $0x84] sm:$0xf0]  ;;  %v4379_v62 = vor.u32 %v4647_v60, %v4376_v57  ;;  %v4672_v57 = vld [vmem:[%s6057_s16 + $0x18] sm:$0xff] }
 0x4b4   :  { %3026 = vmatmul.bf16.vlgmr.msrb.gmra.mxu2 %v5993_v30 }
 0x4b5   :  { %3048 = vmatpush.bf16.msra.mxu2 %v4199_v4  ;;  %v4590_v4 = vld [vmem:[#allocation17 + $0x10c] sm:$0xf] }
 0x4b6   :  { %v4155_v54 = vor.u32 %v4590_v4, %v4152_v28  ;;  %v4645_v4 = vld [vmem:[#allocation18 + $0xc4] sm:$0xf]  ;;  %v4368_v28 = vld [vmem:[#allocation18 + $0xc8] sm:$0xf0] }
 0x4b9   :  { %3049 = vmatpush.bf16.msra.mxu2 %v4183_v3  ;;  %v4358_v3 = vld [vmem:[#allocation18 + $0xb0] sm:$0xf] }
 0x4ba   :  { %v4359_v55 = vor.u32 %v4644_v5, %v4358_v3  ;;  %v4643_v3 = vld [vmem:[#allocation18 + $0xb4] sm:$0xf]  ;;  %v4360_v5 = vld [vmem:[#allocation18 + $0xb8] sm:$0xf0] }
 0x4bc   :  { %3302 = vmatpush.bf16.msrb.mxu0 %v4359_v55 }
 0x4bd   :  { %3050 = vmatpush.bf16.msra.mxu2 %v4167_v26  ;;  %v4635_v26 = vld [vmem:[#allocation18 + $0x74] sm:$0xf] }
 0x4be   :  { %v4331_v17 = vor.u32 %v4635_v26, %v4328_v42  ;;  %v4363_v42 = vor.u32 %v4643_v3, %v4360_v5 }
 0x4c0   :  { %3311 = vmatpush.bf16.msra.mxu1 %v4331_v17  ;;  %v4641_v17 = vld [vmem:[#allocation18 + $0xa4] sm:$0xf] }
 0x4c1   :  { %3051 = vmatpush.bf16.msra.mxu2 %v4151_v13  ;;  %v4633_v13 = vld [vmem:[#allocation18 + $0x64] sm:$0xf] }
 0x4c2   :  { %v4323_v25 = vor.u32 %v4633_v13, %v4320_v6  ;;  %v4344_v6 = vld [vmem:[#allocation18 + $0x98] sm:$0xf0] }
 0x4c4   :  { %3052 = vmatmul.bf16.vlgmr.msra.gmra.mxu2 %v5993_v30  ;;  %3312 = vmatpush.bf16.msra.mxu1 %v4323_v25  ;;  %v2653_v25 = vperm.slane %v5896_v56, 2  ;;  %v4666_v56 = vld [vmem:[#allocation20 + $0x68] sm:$0xff] }
 0x4c5   :  { %3070 = vmatpush.bf16.msrb.mxu2 %v4267_v40  ;;  %v4287_v40 = vor.u32 %v4626_v8, %v4286_v7  ;;  %v4352_v7 = vld [vmem:[#allocation18 + $0xa8] sm:$0xf0] }
 0x4c6   :  { %v4355_v8 = vor.u32 %v4641_v17, %v4352_v7 }
 0x4c7   :  { %3290 = vmatpush.bf16.msrb.mxu3 %v4287_v40  ;;  %v4639_v40 = vld [vmem:[#allocation18 + $0x94] sm:$0xf] }
 0x4c8   :  { %3313 = vmatpush.bf16.msra.mxu1 %v4315_v18  ;;  %v4347_v21 = vor.u32 %v4639_v40, %v4344_v6  ;;  %v4336_v18 = vld [vmem:[#allocation18 + $0x88] sm:$0xf0]  ;;  %v4670_v6 = vld [vmem:[%s6057_s16 + $0x8] sm:$0xff] }
 0x4c9   :  { %3071 = vmatpush.bf16.msrb.mxu2 %v4251_v15  ;;  %v4629_v15 = vld [vmem:[#allocation18 + $0x44] sm:$0xf] }
 0x4ca   :  { %v4307_v22 = vor.u32 %v4629_v15, %v4304_v41 }
 0x4cb   :  { %3291 = vmatpush.bf16.msrb.mxu3 %v4279_v58  ;;  %v4660_v58 = vld [vmem:[#allocation20 + $0x38] sm:$0xff] }
 0x4cc   :  { %3314 = vmatpush.bf16.msra.mxu1 %v4307_v22 }
 0x4cd   :  { %3072 = vmatpush.bf16.msrb.mxu2 %v4235_v2  ;;  %v4623_v2 = vld [vmem:[#allocation18 + $0x14] sm:$0xf] }
 0x4ce   :  { %v4283_v39 = vor.u32 %v4623_v2, %v4280_v16  ;;  %v4658_v2 = vld [vmem:[#allocation20 + $0x28] sm:$0xff]  ;;  %v4667_v16 = vld [vmem:[#allocation20 + $0x70] sm:$0xff] }
 0x4cf   :  { %3292 = vmatpush.bf16.msrb.mxu3 %v4271_v1  ;;  %v4663_v1 = vld [vmem:[#allocation20 + $0x50] sm:$0xff] }
 0x4d0   :  { %3315 = vmatpush.bf16.msra.mxu1 %v4299_v35 }
 0x4d1   :  { %3073 = vmatpush.bf16.msrb.mxu2 %v4219_v36  ;;  %v4272_v36 = vld [vmem:[#allocation18 + $0x8] sm:$0xf0] }
 0x4d2   :  { %v4275_v24 = vor.u32 %v4621_v48, %v4272_v36  ;;  %v4654_v48 = vld [vmem:[#allocation20 + $0x8] sm:$0xff] }
 0x4d3   :  { %3475 = vmatpush.bf16.msra.mxu3 %v4660_v58 }
 0x4d4   :  { %3316 = vmatpush.bf16.msra.mxu1 %v4291_v44  ;;  %v4668_v44 = vld [vmem:[#allocation20 + $0x78] sm:$0xff] }
 0x4d5   :  { %3074 = vmatpush.bf16.msrb.mxu2 %v4203_v10  ;;  %v4384_v10 = vld [vmem:[#allocation18 + $0xe8] sm:$0xf0] }
 0x4d7   :  { %3476 = vmatpush.bf16.msra.mxu3 %v4659_v31 }
 0x4d8   :  { %3317 = vmatpush.bf16.msra.mxu1 %v4283_v39  ;;  %v4657_v39 = vld [vmem:[#allocation20 + $0x20] sm:$0xff] }
 0x4d9   :  { %3075 = vmatpush.bf16.msrb.mxu2 %v4187_v33  ;;  %v4334_v33 = vld [vmem:[#allocation18 + $0x80] sm:$0xf] }
 0x4db   :  { %3477 = vmatpush.bf16.msra.mxu3 %v4658_v2 }
 0x4dc   :  { %3318 = vmatpush.bf16.msra.mxu1 %v4275_v24 }
 0x4dd   :  { %3076 = vmatpush.bf16.msrb.mxu2 %v4171_v59  ;;  %v4335_v59 = vor.u32 %v4638_v52, %v4334_v33 }
 0x4df   :  { %3478 = vmatpush.bf16.msra.mxu3 %v4657_v39 }
 0x4e0   :  { %3571 = vmatpush.bf16.msrb.mxu1 %v4676_v11 }
 0x4e1   :  { %3077 = vmatpush.bf16.msrb.mxu2 %v4155_v54  ;;  %v4371_v54 = vor.u32 %v4645_v4, %v4368_v28  ;;  %v4671_v4 = vld [vmem:[%s6057_s16 + $0x10] sm:$0xff] }
 0x4e3   :  { %3479 = vmatpush.bf16.msra.mxu3 %v4656_v12 }
 0x4e4   :  { %3078 = vmatmul.bf16.vlgmr.msrb.gmra.mxu2 %v5993_v30  ;;  %v4350_v30 = vld [vmem:[#allocation18 + $0xa0] sm:$0xf] }
 0x4e5   :  { %v4351_v23 = vor.u32 %v4642_v14, %v4350_v30  ;;  %3324 = vmatpush.bf16.msra.mxu2 %v4395_v61  ;;  %v3041_v30 = vadd.f32 %v5908_v19, %v2653_v25  ;;  %v4661_v61 = vld [vmem:[#allocation20 + $0x40] sm:$0xff] }
 0x4e6   :  { %v4829_v25 = vld [vmem:[#allocation21] ss:$0 sm:$0xff] }
 0x4e7   :  { %3303 = vmatpush.bf16.msrb.mxu0 %v4351_v23  ;;  %3480 = vmatpush.bf16.msra.mxu3 %v4655_v50 }
 0x4eb   :  { %3304 = vmatpush.bf16.msrb.mxu0 %v4343_v53  ;;  %3481 = vmatpush.bf16.msra.mxu3 %v4654_v48 }
 0x4ef   :  { %3305 = vmatpush.bf16.msrb.mxu0 %v4335_v59  ;;  %3482 = vmatpush.bf16.msra.mxu3 %v4653_v32 }
 0x4f3   :  { %3488 = vmatpush.bf16.msra.mxu0 %v4668_v44 }
 0x4f7   :  { %3489 = vmatpush.bf16.msra.mxu0 %v4667_v16 }
 0x4fb   :  { %3490 = vmatpush.bf16.msra.mxu0 %v4666_v56 }
 0x527   :  { %v3001_v45 = vpop.f32.mrf.mxu2 }
 0x528   :  { %v6000_v37 = vadd.f32 %v3001_v45, %v5900_v63  ;;  %v4387_v63 = vor.u32 %v4649_v20, %v4384_v10  ;;  %v4665_v45 = vld [vmem:[#allocation20 + $0x60] sm:$0xff]  ;;  %v4675_v20 = vld [vmem:[%s6057_s16 + $0x30] sm:$0xff] }
 0x529   :  { %3491 = vmatpush.bf16.msra.mxu0 %v4665_v45  ;;  %3572 = vmatpush.bf16.msrb.mxu1 %v4675_v20  ;;  %v4674_v10 = vld [vmem:[%s6057_s16 + $0x28] sm:$0xff] }
 0x52a   :  { %3325 = vmatpush.bf16.msra.mxu2 %v4387_v63  ;;  %v4673_v63 = vld [vmem:[%s6057_s16 + $0x20] sm:$0xff] }
 0x52d   :  { %3492 = vmatpush.bf16.msra.mxu0 %v4664_v51  ;;  %3573 = vmatpush.bf16.msrb.mxu1 %v4674_v10 }
 0x52e   :  { %3326 = vmatpush.bf16.msra.mxu2 %v4379_v62 }
 0x52f   :  { %v3003_v47 = vpop.f32.mrf.mxu2 }
 0x530   :  { %v3119_v47 = vld [vmem:[%s6054_s13] sm:$0x3] }
 0x531   :  { %3493 = vmatpush.bf16.msra.mxu0 %v4663_v1  ;;  %v3121_v60 = vperm.slane %v3119_v47, 0  ;;  %3574 = vmatpush.bf16.msrb.mxu1 %v4673_v63  ;;  %v3122_v62 = vperm.slane %v3119_v47, 1 }
 0x532   :  { %3327 = vmatpush.bf16.msra.mxu2 %v4371_v54 }
 0x535   :  { %3494 = vmatpush.bf16.msra.mxu0 %v4662_v49  ;;  %3575 = vmatpush.bf16.msrb.mxu1 %v4672_v57 }
 0x536   :  { %3328 = vmatpush.bf16.msra.mxu2 %v4363_v42 }
 0x537   :  { %v3027_v55 = vpop.f32.mrf.mxu2 }
 0x538   :  { %v6003_v26 = vadd.f32 %v3027_v55, %v5905_v0  ;;  %v4339_v0 = vor.u32 %v4637_v9, %v4336_v18 }
 0x539   :  { %3495 = vmatpush.bf16.msra.mxu0 %v4661_v61  ;;  %3576 = vmatpush.bf16.msrb.mxu1 %v4671_v4 }
 0x53a   :  { %3329 = vmatpush.bf16.msra.mxu2 %v4355_v8 }
 0x53d   :  { %3577 = vmatpush.bf16.msrb.mxu1 %v4670_v6 }
 0x53e   :  { %3330 = vmatpush.bf16.msra.mxu2 %v4347_v21 }
 0x53f   :  { %v3029_v13 = vpop.f32.mrf.mxu2 }
 0x542   :  { %3331 = vmatpush.bf16.msra.mxu2 %v4339_v0 }
 0x547   :  { %v3053_v14 = vpop.f32.mrf.mxu2 }
 0x548   :  { %v3054_v15 = vadd.f32 %v3053_v14, %v3041_v30 }
 0x54a   :  { %v3083_v23 = vmax.f32 %v3054_v15, 0.0 }
 0x54c   :  { %v3085_v41 = vpack.c.bf16 %v3083_v23, %v3083_v23  ;;  %v4830_v23 = vld [vmem:[#allocation23] ss:$0 sm:$0xff] }
 0x54e   :  { %3293 = vmatmul.bf16.vlgmr.msrb.gmra.mxu3 %v3085_v41  ;;  %3319 = vmatmul.bf16.vlgmr.msra.gmra.mxu1 %v3085_v41 }
 0x54f   :  { %v3055_v22 = vpop.f32.mrf.mxu2 }
 0x567   :  { %v3079_v35 = vpop.f32.mrf.mxu2 }
 0x568   :  { %v3080_v29 = vadd.f32 %v3079_v35, %v3067_v34 }
 0x56a   :  { %v3084_v43 = vmax.f32 %v3080_v29, 0.0 }
 0x56c   :  { %v3086_v38 = vpack.c.bf16 %v3084_v43, %v3084_v43 }
 0x56e   :  { %3306 = vmatmul.bf16.vlgmr.msrb.gmra.mxu0 %v3086_v38  ;;  %3332 = vmatmul.bf16.vlgmr.msra.gmra.mxu2 %v3086_v38 }
 0x56f   :  { %v3081_v19 = vpop.f32.mrf.mxu2 }
 0x5cb   :  { %v3320_v36 = vpop.f32.mrf.mxu1 }
 0x5cc   :  { %v3321_v54 = vadd.f32 %v3320_v36, %v3122_v62 }
 0x5d1   :  { %v3294_v24 = vpop.f32.mrf.mxu3 }
 0x5d2   :  { %v3295_v33 = vadd.f32 %v3294_v24, %v3121_v60 }
 0x5d3   :  { %v3322_v46 = vpop.f32.mrf.mxu1 }
 0x5d9   :  { %v3296_v53 = vpop.f32.mrf.mxu3 }
 0x5eb   :  { %v3307_v52 = vpop.f32.mrf.mxu0 }
 0x5ec   :  { %v3308_v59 = vadd.f32 %v3307_v52, %v3295_v33 }
 0x5ee   :  { %v3337_v28 = vmax.f32 %v3308_v59, 0.0 }
 0x5f0   :  { %v3339_v3 = vadd.f32 %v3337_v28, %v6000_v37  ;;  %v4669_v37 = vld [vmem:[%s6057_s16] sm:$0xff] }
 0x5f1   :  { %v3333_v5 = vpop.f32.mrf.mxu2  ;;  %3578 = vmatpush.bf16.msrb.mxu1 %v4669_v37 }
 0x5f2   :  { %v3341_v55 = vpack.c.bf16 %v3339_v3, %v3339_v3  ;;  %v3334_v42 = vadd.f32 %v3333_v5, %v3321_v54 }
 0x5f3   :  { %v3309_v17 = vpop.f32.mrf.mxu0 }
 0x5f4   :  { %v3338_v7 = vmax.f32 %v3334_v42, 0.0  ;;  %3483 = vmatmul.bf16.vlgmr.msra.gmra.mxu3 %v3341_v55 }
 0x5f6   :  { %v3340_v8 = vadd.f32 %v3338_v7, %v6003_v26 }
 0x5f8   :  { %v3342_v13 = vpack.c.bf16 %v3340_v8, %v3340_v8 }
 0x5f9   :  { %v3335_v40 = vpop.f32.mrf.mxu2 }
 0x5fa   :  { %3496 = vmatmul.bf16.vlgmr.msra.gmra.mxu0 %v3342_v13 }
 0x677   :  { %v3484_v21 = vpop.f32.mrf.mxu3  ;;  %v3497_v9 = vpop.f32.mrf.mxu0 }
 0x678   :  { %v3485_v18 = vadd.f32 %v4829_v25, %v3484_v21 }
 0x67a   :  { %v3498_v30 = vadd.f32 %v3497_v9, %v3485_v18 }
 0x67c   :  { %v3501_v0 = vmax.f32 %v3498_v30, 0.0 }
 0x67e   :  { %v3502_v26 = vpack.c.bf16 %v3501_v0, %v3501_v0 }
 0x67f   :  { %v3486_v14 = vpop.f32.mrf.mxu3  ;;  %v3499_v15 = vpop.f32.mrf.mxu0 }
 0x680   :  { %3579 = vmatmul.bf16.vlgmr.msrb.gmra.mxu1 %v3502_v26 }
 0x6fd   :  { %v3580_v41 = vpop.f32.mrf.mxu1 }
 0x6fe   :  { %v3581_v22 = vadd.f32 %v4830_v23, %v3580_v41 }
 0x700   :  { %3584 = vst [vmem:[#allocation24] sm:$0xff] %v3581_v22 }
 0x701   :  { %3595 = dma.vmem_to_hbm [thread:$0]  %s3591_s30, 128, %s3593_s27, [#allocation8]  }
 0x705   :  { %v3582_v27 = vpop.f32.mrf.mxu1 }
 0x706   :  { %5225 = dma.done.wait [#allocation8], 128  }
 0x707   :  { %5226 = vsyncadd [#allocation8], 4294967168 }
 0x708   :  { %3600 = vsyncpa [#allocation7], 1 }
 0x709   :  { %3601 = vsyncpa [#allocation10], 1 }
 0x70a   :  { %3602 = vsyncpa [#allocation13], 1 }
 0x70b   :  { %3603 = vsyncpa [#allocation16], 1 }
 0x70c   :  { %3604 = vsyncpa [#allocation19], 1 }
 0x70d   :  { %3605 = vsyncpa [#allocation22], 1 }
 0x70e   :  { %3606 = vsyncpa [#allocation8], 1 }
 0x70f   :  { %3607 = vsyncmov [#allocation3] }
 0x712   :  { %s3608_s16 = vpop.sfrf %3607 }
 0x713   :  { %p4492_p2 = scmp.ne.s32.totalorder %s3608_s16, 0 }
 0x715   :  { %3612 = shalt.err (%p4492_p2)  }

</bundles_post_ra>
